<compile_context>
chip_gen: v7x
topology: tpu7x:2x2x1
jax: 0.10.0
libtpu: 0.0.40
codegen_flags: <defaults>
</compile_context>

<pallas_src>
import functools

import jax
import jax.numpy as jnp
from jax.experimental import pallas as pl
from jax.experimental.pallas import tpu as pltpu

_NEG_FILL = -1e30  # padded-class logit bias; exp underflows to exactly 0


def _round_up(v, m):
    return ((v + m - 1) // m) * m


def _pad_gate_cols(w, H, HP):
    """(d, 4H) -> (d, 4HP): zero-pad each gate block [i|f|g|o] independently."""
    if HP == H:
        return w
    d = w.shape[0]
    w4 = w.reshape(d, 4, H)
    w4 = jnp.pad(w4, ((0, 0), (0, 0), (0, HP - H)))
    return w4.reshape(d, 4 * HP)


def _pad_rows(w, HP):
    pad = HP - w.shape[0]
    return w if pad == 0 else jnp.pad(w, ((0, pad), (0, 0)))


# ----------------------------------------------------------------------------
# Fused Pallas kernel
# ----------------------------------------------------------------------------
def _make_fused_lstm_kernel(num_layers, T, B, HP, D_in, CP):
    """Build the fused kernel for static (num_layers, T, B, HP, D_in, CP)."""

    def kernel(*refs):
        x_ref = refs[0]                                   # (T, B, D_in)
        layer_refs = refs[1:1 + 3 * num_layers]           # per layer: wih, whh, b
        fcw_ref = refs[1 + 3 * num_layers]                # (HP, CP)
        fcb_ref = refs[2 + 3 * num_layers]                # (1, CP)
        out_ref = refs[3 + 3 * num_layers]                # (B, CP)
        seq_ref = refs[4 + 3 * num_layers]                # VMEM (T*B, HP)
        xp_ref = refs[5 + 3 * num_layers]                 # VMEM (T*B, 4*HP)

        def run_layer(x_all, wih_ref, whh_ref, b_ref, write_seq):
            # One big time-parallel input-projection matmul; bias add hoisted
            # out of the recurrence.  Staged in VMEM scratch so the unrolled
            # time loop reads clean (B, 4*HP) ref slices instead of keeping
            # the whole xp live in vregs.
            xp_ref[...] = (
                jnp.dot(x_all, wih_ref[...],
                        preferred_element_type=jnp.float32)
                + b_ref[...]
            )                                              # (T*B, 4*HP)
            whh = whh_ref[...]                             # (HP, 4*HP), resident
            h = jnp.zeros((B, HP), jnp.float32)
            c = jnp.zeros((B, HP), jnp.float32)
            # Fully unrolled time loop: only h @ W_hh is serial per step.
            for t in range(T):
                gates = xp_ref[t * B:(t + 1) * B, :] + jnp.dot(
                    h, whh, preferred_element_type=jnp.float32)  # (B, 4*HP)
                # Per-gate slices are vreg-aligned (HP % 128 == 0) -> free.
                # tanh only on the g lanes (plus tanh(c)); sigmoid on i/f/o.
                i_g = jax.nn.sigmoid(gates[:, 0 * HP:1 * HP])
                f_g = jax.nn.sigmoid(gates[:, 1 * HP:2 * HP])
                g_g = jnp.tanh(gates[:, 2 * HP:3 * HP])
                o_g = jax.nn.sigmoid(gates[:, 3 * HP:4 * HP])
                c = f_g * c + i_g * g_g
                h = o_g * jnp.tanh(c)
                if write_seq:
                    # Lane-dense (B, HP) store into the inter-layer slab.
                    seq_ref[t * B:(t + 1) * B, :] = h
            return h

        # Layer 0 consumes the raw input sequence.
        x_all = x_ref[...].reshape(T * B, D_in)
        h_last = None
        for l in range(num_layers):
            wih_ref, whh_ref, b_ref = layer_refs[3 * l:3 * l + 3]
            write_seq = (l + 1) < num_layers
            h_last = run_layer(x_all, wih_ref, whh_ref, b_ref, write_seq)
            if write_seq:
                # Next layer's input = this layer's full hidden sequence
                # (eval-mode dropout == identity).
                x_all = seq_ref[...]

        # Fused fc + numerically stable softmax epilogue.  Padded classes have
        # bias -1e30 -> exp == 0, so they do not perturb the softmax; the
        # (B, CP) output store is lane-dense and the wrapper slices to (B, C).
        logits = (
            jnp.dot(h_last, fcw_ref[...], preferred_element_type=jnp.float32)
            + fcb_ref[...]
        )
        m = jnp.max(logits, axis=1, keepdims=True)
        e = jnp.exp(logits - m)
        out_ref[...] = (e / jnp.sum(e, axis=1, keepdims=True)).astype(
            out_ref.dtype)

    return kernel


# ----------------------------------------------------------------------------
# Wrapper
# ----------------------------------------------------------------------------
@functools.partial(jax.jit, static_argnames=("num_layers",))
def lstm_forward(x, params, num_layers):
    """Full model forward.

    x: (B, T, input_size) -- PyTorch batch_first layout.
    returns: (B, num_classes) softmax probabilities.
    """
    B, T, D_in = x.shape
    H = params["whh_t_0"].shape[0]
    C = params["fc_w_t"].shape[1]
    HP = _round_up(H, 128)     # lane-padded hidden width (per gate)
    CP = _round_up(C, 128)     # lane-padded class width

    # Time-major inside the kernel so every per-timestep block is a clean
    # sublane-contiguous (B, D) slice.  (Acceptable while T*B*D_in is small;
    # at scale feed batch-first and index inside the kernel instead.)
    x_tbd = jnp.transpose(x, (1, 0, 2)).astype(jnp.float32)   # (T, B, D_in)

    # Zero-pad weights/biases to the lane-padded layout.  (One-time, tiny;
    # at production sizes pre-pad at parameter-init time instead.)
    flat_inputs = [x_tbd]
    for l in range(num_layers):
        wih = params[f"wih_t_{l}"]                    # (D_in or H, 4H)
        if l > 0:
            wih = _pad_rows(wih, HP)                  # (HP, 4H)
        wih = _pad_gate_cols(wih, H, HP)              # (., 4*HP)
        whh = _pad_gate_cols(_pad_rows(params[f"whh_t_{l}"], HP), H, HP)
        b = _pad_gate_cols(params[f"b_{l}"], H, HP)   # (1, 4*HP)
        flat_inputs += [wih, whh, b]
    fc_w = jnp.pad(params["fc_w_t"], ((0, HP - H), (0, CP - C)))
    fc_b = jnp.pad(params["fc_b"], ((0, 0), (0, CP - C)),
                   constant_values=_NEG_FILL)
    flat_inputs += [fc_w, fc_b]

    kernel = _make_fused_lstm_kernel(num_layers, T, B, HP, D_in, CP)
    out_padded = pl.pallas_call(
        kernel,
        out_shape=jax.ShapeDtypeStruct((B, CP), jnp.float32),
        scratch_shapes=[
            pltpu.VMEM((T * B, HP), jnp.float32),      # inter-layer h sequence
            pltpu.VMEM((T * B, 4 * HP), jnp.float32),  # staged input projection
        ],
        compiler_params=pltpu.CompilerParams(
            vmem_limit_bytes=32 * 1024 * 1024),
    )(*flat_inputs)
    return out_padded[:, :C]


# ----------------------------------------------------------------------------
# Pure-JAX reference (sanity check)
# ----------------------------------------------------------------------------
def lstm_forward_ref(x, params, num_layers):
    B = x.shape[0]
    seq = jnp.transpose(x, (1, 0, 2)).astype(jnp.float32)
    for l in range(num_layers):
        wih_t = params[f"wih_t_{l}"]
        whh_t = params[f"whh_t_{l}"]
        bias = params[f"b_{l}"]
        H = whh_t.shape[0]

        def step(carry, x_t):
            h, c = carry
            gates = x_t @ wih_t + h @ whh_t + bias
            i = jax.nn.sigmoid(gates[:, 0 * H:1 * H])
            f = jax.nn.sigmoid(gates[:, 1 * H:2 * H])
            g = jnp.tanh(gates[:, 2 * H:3 * H])
            o = jax.nn.sigmoid(gates[:, 3 * H:4 * H])
            c = f * c + i * g
            h = o * jnp.tanh(c)
            return (h, c), h

        init = (jnp.zeros((B, H), jnp.float32), jnp.zeros((B, H), jnp.float32))
        _, seq = jax.lax.scan(step, init, seq)
    h_last = seq[-1]
    logits = h_last @ params["fc_w_t"] + params["fc_b"]
    return jax.nn.softmax(logits, axis=1)


# ----------------------------------------------------------------------------
# Parameter construction (deterministic, PyTorch-style uniform init)
# ----------------------------------------------------------------------------
def init_params(key, num_classes, input_size, hidden_size, num_layers):
    params = {}
    bound = 1.0 / jnp.sqrt(hidden_size)
    for l in range(num_layers):
        d_in = input_size if l == 0 else hidden_size
        key, k1, k2, k3, k4 = jax.random.split(key, 5)
        w_ih = jax.random.uniform(k1, (4 * hidden_size, d_in), jnp.float32,
                                  -bound, bound)
        w_hh = jax.random.uniform(k2, (4 * hidden_size, hidden_size),
                                  jnp.float32, -bound, bound)
        b_ih = jax.random.uniform(k3, (4 * hidden_size,), jnp.float32,
                                  -bound, bound)
        b_hh = jax.random.uniform(k4, (4 * hidden_size,), jnp.float32,
                                  -bound, bound)
        params[f"wih_t_{l}"] = w_ih.T                      # (d_in, 4H)
        params[f"whh_t_{l}"] = w_hh.T                      # (H, 4H)
        params[f"b_{l}"] = (b_ih + b_hh)[None, :]          # (1, 4H)
    key, k5, k6 = jax.random.split(key, 3)
    fc_bound = 1.0 / jnp.sqrt(hidden_size)
    fc_w = jax.random.uniform(k5, (num_classes, hidden_size), jnp.float32,
                              -fc_bound, fc_bound)
    fc_b = jax.random.uniform(k6, (num_classes,), jnp.float32,
                              -fc_bound, fc_bound)
    params["fc_w_t"] = fc_w.T                              # (H, C)
    params["fc_b"] = fc_b[None, :]                         # (1, C)
    return params


# ----------------------------------------------------------------------------
if __name__ == "__main__":
    num_classes = 4
    input_size = 16
    hidden_size = 32
    num_layers = 2
    batch = 8
    seq_len = 8

    key = jax.random.PRNGKey(0)
    key, pkey, xkey = jax.random.split(key, 3)
    params = init_params(pkey, num_classes, input_size, hidden_size, num_layers)
    x = jax.random.normal(xkey, (batch, seq_len, input_size), jnp.float32)

    probs = lstm_forward(x, params, num_layers)
    probs = jax.block_until_ready(probs)

    ref = jax.block_until_ready(lstm_forward_ref(x, params, num_layers))
    assert probs.shape == (batch, num_classes)
    assert jnp.allclose(jnp.sum(probs, axis=1), 1.0, atol=1e-5)
    assert jnp.allclose(probs, ref, atol=2e-3, rtol=1e-3)

    print("KERNEL_OK")
</pallas_src>

<mosaic_0001>
module attributes {stable_mosaic.version = 11 : i64} {
  func.func @kernel(%arg0: memref<8x8x16xf32, #tpu.memory_space<vmem>>, %arg1: memref<16x512xf32, #tpu.memory_space<vmem>>, %arg2: memref<128x512xf32, #tpu.memory_space<vmem>>, %arg3: memref<1x512xf32, #tpu.memory_space<vmem>>, %arg4: memref<128x512xf32, #tpu.memory_space<vmem>>, %arg5: memref<128x512xf32, #tpu.memory_space<vmem>>, %arg6: memref<1x512xf32, #tpu.memory_space<vmem>>, %arg7: memref<128x128xf32, #tpu.memory_space<vmem>>, %arg8: memref<1x128xf32, #tpu.memory_space<vmem>>, %arg9: memref<8x128xf32, #tpu.memory_space<vmem>>, %arg10: memref<64x128xf32, #tpu.memory_space<vmem>>, %arg11: memref<64x512xf32, #tpu.memory_space<vmem>>) attributes {dimension_semantics = [], scalar_prefetch = 0 : i64, scratch_operands = 2 : i64, tpu.core_type = #tpu.core_type<tc>} {
    %c0 = arith.constant 0 : index
    %c0_0 = arith.constant 0 : index
    %c0_1 = arith.constant 0 : index
    %0 = vector.load %arg0[%c0, %c0_0, %c0_1] : memref<8x8x16xf32, #tpu.memory_space<vmem>>, vector<8x8x16xf32>
    %1 = vector.shape_cast %0 : vector<8x8x16xf32> to vector<64x16xf32>
    %c0_2 = arith.constant 0 : index
    %c0_3 = arith.constant 0 : index
    %2 = vector.load %arg1[%c0_2, %c0_3] : memref<16x512xf32, #tpu.memory_space<vmem>>, vector<16x512xf32>
    %cst = arith.constant dense<0.000000e+00> : vector<64x512xf32>
    %3 = tpu.matmul %1, %2, %cst {dimension_numbers = #tpu.dot_dimension_numbers<[1], [0], [0], [1], [0, 0, 1, 1], [], []>} : vector<64x16xf32>, vector<16x512xf32>, vector<64x512xf32> -> vector<64x512xf32>
    %c0_4 = arith.constant 0 : index
    %c0_5 = arith.constant 0 : index
    %4 = vector.load %arg3[%c0_4, %c0_5] : memref<1x512xf32, #tpu.memory_space<vmem>>, vector<1x512xf32>
    %5 = vector.broadcast %4 : vector<1x512xf32> to vector<64x512xf32>
    %6 = arith.addf %3, %5 : vector<64x512xf32>
    %c0_6 = arith.constant 0 : index
    %c0_7 = arith.constant 0 : index
    %7 = vector.load %arg11[%c0_6, %c0_7] : memref<64x512xf32, #tpu.memory_space<vmem>>, vector<64x512xf32>
    tpu.vector_store %arg11[%c0_6, %c0_7], %6 {strides = array<i32>} : memref<64x512xf32, #tpu.memory_space<vmem>>, vector<64x512xf32>,
    %c0_8 = arith.constant 0 : index
    %c0_9 = arith.constant 0 : index
    %8 = vector.load %arg2[%c0_8, %c0_9] : memref<128x512xf32, #tpu.memory_space<vmem>>, vector<128x512xf32>
    %cst_10 = arith.constant 0.000000e+00 : f32
    %9 = vector.broadcast %cst_10 : f32 to vector<8x128xf32>
    %cst_11 = arith.constant 0.000000e+00 : f32
    %10 = vector.broadcast %cst_11 : f32 to vector<8x128xf32>
    %c0_12 = arith.constant 0 : index
    %c0_13 = arith.constant 0 : index
    %11 = vector.load %arg11[%c0_12, %c0_13] : memref<64x512xf32, #tpu.memory_space<vmem>>, vector<8x512xf32>
    %cst_14 = arith.constant dense<0.000000e+00> : vector<8x512xf32>
    %12 = tpu.matmul %9, %8, %cst_14 {dimension_numbers = #tpu.dot_dimension_numbers<[1], [0], [0], [1], [0, 0, 1, 1], [], []>} : vector<8x128xf32>, vector<128x512xf32>, vector<8x512xf32> -> vector<8x512xf32>
    %13 = arith.addf %11, %12 : vector<8x512xf32>
    %14 = vector.extract_strided_slice %13 {offsets = [0, 0], sizes = [8, 128], strides = [1, 1]} : vector<8x512xf32> to vector<8x128xf32>
    %15 = arith.negf %14 : vector<8x128xf32>
    %16 = math.exp %15 : vector<8x128xf32>
    %cst_15 = arith.constant 1.000000e+00 : f32
    %17 = vector.broadcast %cst_15 : f32 to vector<8x128xf32>
    %18 = arith.addf %17, %16 : vector<8x128xf32>
    %19 = arith.divf %17, %18 : vector<8x128xf32>
    %20 = vector.extract_strided_slice %13 {offsets = [0, 128], sizes = [8, 128], strides = [1, 1]} : vector<8x512xf32> to vector<8x128xf32>
    %21 = arith.negf %20 : vector<8x128xf32>
    %22 = math.exp %21 : vector<8x128xf32>
    %cst_16 = arith.constant 1.000000e+00 : f32
    %23 = vector.broadcast %cst_16 : f32 to vector<8x128xf32>
    %24 = arith.addf %23, %22 : vector<8x128xf32>
    %25 = arith.divf %23, %24 : vector<8x128xf32>
    %26 = vector.extract_strided_slice %13 {offsets = [0, 256], sizes = [8, 128], strides = [1, 1]} : vector<8x512xf32> to vector<8x128xf32>
    %27 = math.tanh %26 : vector<8x128xf32>
    %28 = vector.extract_strided_slice %13 {offsets = [0, 384], sizes = [8, 128], strides = [1, 1]} : vector<8x512xf32> to vector<8x128xf32>
    %29 = arith.negf %28 : vector<8x128xf32>
    %30 = math.exp %29 : vector<8x128xf32>
    %cst_17 = arith.constant 1.000000e+00 : f32
    %31 = vector.broadcast %cst_17 : f32 to vector<8x128xf32>
    %32 = arith.addf %31, %30 : vector<8x128xf32>
    %33 = arith.divf %31, %32 : vector<8x128xf32>
    %34 = arith.mulf %25, %10 : vector<8x128xf32>
    %35 = arith.mulf %19, %27 : vector<8x128xf32>
    %36 = arith.addf %34, %35 : vector<8x128xf32>
    %37 = math.tanh %36 : vector<8x128xf32>
    %38 = arith.mulf %33, %37 : vector<8x128xf32>
    %c0_18 = arith.constant 0 : index
    %c0_19 = arith.constant 0 : index
    %39 = vector.load %arg10[%c0_18, %c0_19] : memref<64x128xf32, #tpu.memory_space<vmem>>, vector<8x128xf32>
    tpu.vector_store %arg10[%c0_18, %c0_19], %38 {strides = array<i32>} : memref<64x128xf32, #tpu.memory_space<vmem>>, vector<8x128xf32>,
    %c8 = arith.constant 8 : index
    %c0_20 = arith.constant 0 : index
    %40 = vector.load %arg11[%c8, %c0_20] : memref<64x512xf32, #tpu.memory_space<vmem>>, vector<8x512xf32>
    %cst_21 = arith.constant dense<0.000000e+00> : vector<8x512xf32>
    %41 = tpu.matmul %38, %8, %cst_21 {dimension_numbers = #tpu.dot_dimension_numbers<[1], [0], [0], [1], [0, 0, 1, 1], [], []>} : vector<8x128xf32>, vector<128x512xf32>, vector<8x512xf32> -> vector<8x512xf32>
    %42 = arith.addf %40, %41 : vector<8x512xf32>
    %43 = vector.extract_strided_slice %42 {offsets = [0, 0], sizes = [8, 128], strides = [1, 1]} : vector<8x512xf32> to vector<8x128xf32>
    %44 = arith.negf %43 : vector<8x128xf32>
    %45 = math.exp %44 : vector<8x128xf32>
    %cst_22 = arith.constant 1.000000e+00 : f32
    %46 = vector.broadcast %cst_22 : f32 to vector<8x128xf32>
    %47 = arith.addf %46, %45 : vector<8x128xf32>
    %48 = arith.divf %46, %47 : vector<8x128xf32>
    %49 = vector.extract_strided_slice %42 {offsets = [0, 128], sizes = [8, 128], strides = [1, 1]} : vector<8x512xf32> to vector<8x128xf32>
    %50 = arith.negf %49 : vector<8x128xf32>
    %51 = math.exp %50 : vector<8x128xf32>
    %cst_23 = arith.constant 1.000000e+00 : f32
    %52 = vector.broadcast %cst_23 : f32 to vector<8x128xf32>
    %53 = arith.addf %52, %51 : vector<8x128xf32>
    %54 = arith.divf %52, %53 : vector<8x128xf32>
    %55 = vector.extract_strided_slice %42 {offsets = [0, 256], sizes = [8, 128], strides = [1, 1]} : vector<8x512xf32> to vector<8x128xf32>
    %56 = math.tanh %55 : vector<8x128xf32>
    %57 = vector.extract_strided_slice %42 {offsets = [0, 384], sizes = [8, 128], strides = [1, 1]} : vector<8x512xf32> to vector<8x128xf32>
    %58 = arith.negf %57 : vector<8x128xf32>
    %59 = math.exp %58 : vector<8x128xf32>
    %cst_24 = arith.constant 1.000000e+00 : f32
    %60 = vector.broadcast %cst_24 : f32 to vector<8x128xf32>
    %61 = arith.addf %60, %59 : vector<8x128xf32>
    %62 = arith.divf %60, %61 : vector<8x128xf32>
    %63 = arith.mulf %54, %36 : vector<8x128xf32>
    %64 = arith.mulf %48, %56 : vector<8x128xf32>
    %65 = arith.addf %63, %64 : vector<8x128xf32>
    %66 = math.tanh %65 : vector<8x128xf32>
    %67 = arith.mulf %62, %66 : vector<8x128xf32>
    %c8_25 = arith.constant 8 : index
    %c0_26 = arith.constant 0 : index
    %68 = vector.load %arg10[%c8_25, %c0_26] : memref<64x128xf32, #tpu.memory_space<vmem>>, vector<8x128xf32>
    tpu.vector_store %arg10[%c8_25, %c0_26], %67 {strides = array<i32>} : memref<64x128xf32, #tpu.memory_space<vmem>>, vector<8x128xf32>,
    %c16 = arith.constant 16 : index
    %c0_27 = arith.constant 0 : index
    %69 = vector.load %arg11[%c16, %c0_27] : memref<64x512xf32, #tpu.memory_space<vmem>>, vector<8x512xf32>
    %cst_28 = arith.constant dense<0.000000e+00> : vector<8x512xf32>
    %70 = tpu.matmul %67, %8, %cst_28 {dimension_numbers = #tpu.dot_dimension_numbers<[1], [0], [0], [1], [0, 0, 1, 1], [], []>} : vector<8x128xf32>, vector<128x512xf32>, vector<8x512xf32> -> vector<8x512xf32>
    %71 = arith.addf %69, %70 : vector<8x512xf32>
    %72 = vector.extract_strided_slice %71 {offsets = [0, 0], sizes = [8, 128], strides = [1, 1]} : vector<8x512xf32> to vector<8x128xf32>
    %73 = arith.negf %72 : vector<8x128xf32>
    %74 = math.exp %73 : vector<8x128xf32>
    %cst_29 = arith.constant 1.000000e+00 : f32
    %75 = vector.broadcast %cst_29 : f32 to vector<8x128xf32>
    %76 = arith.addf %75, %74 : vector<8x128xf32>
    %77 = arith.divf %75, %76 : vector<8x128xf32>
    %78 = vector.extract_strided_slice %71 {offsets = [0, 128], sizes = [8, 128], strides = [1, 1]} : vector<8x512xf32> to vector<8x128xf32>
    %79 = arith.negf %78 : vector<8x128xf32>
    %80 = math.exp %79 : vector<8x128xf32>
    %cst_30 = arith.constant 1.000000e+00 : f32
    %81 = vector.broadcast %cst_30 : f32 to vector<8x128xf32>
    %82 = arith.addf %81, %80 : vector<8x128xf32>
    %83 = arith.divf %81, %82 : vector<8x128xf32>
    %84 = vector.extract_strided_slice %71 {offsets = [0, 256], sizes = [8, 128], strides = [1, 1]} : vector<8x512xf32> to vector<8x128xf32>
    %85 = math.tanh %84 : vector<8x128xf32>
    %86 = vector.extract_strided_slice %71 {offsets = [0, 384], sizes = [8, 128], strides = [1, 1]} : vector<8x512xf32> to vector<8x128xf32>
    %87 = arith.negf %86 : vector<8x128xf32>
    %88 = math.exp %87 : vector<8x128xf32>
    %cst_31 = arith.constant 1.000000e+00 : f32
    %89 = vector.broadcast %cst_31 : f32 to vector<8x128xf32>
    %90 = arith.addf %89, %88 : vector<8x128xf32>
    %91 = arith.divf %89, %90 : vector<8x128xf32>
    %92 = arith.mulf %83, %65 : vector<8x128xf32>
    %93 = arith.mulf %77, %85 : vector<8x128xf32>
    %94 = arith.addf %92, %93 : vector<8x128xf32>
    %95 = math.tanh %94 : vector<8x128xf32>
    %96 = arith.mulf %91, %95 : vector<8x128xf32>
    %c16_32 = arith.constant 16 : index
    %c0_33 = arith.constant 0 : index
    %97 = vector.load %arg10[%c16_32, %c0_33] : memref<64x128xf32, #tpu.memory_space<vmem>>, vector<8x128xf32>
    tpu.vector_store %arg10[%c16_32, %c0_33], %96 {strides = array<i32>} : memref<64x128xf32, #tpu.memory_space<vmem>>, vector<8x128xf32>,
    %c24 = arith.constant 24 : index
    %c0_34 = arith.constant 0 : index
    %98 = vector.load %arg11[%c24, %c0_34] : memref<64x512xf32, #tpu.memory_space<vmem>>, vector<8x512xf32>
    %cst_35 = arith.constant dense<0.000000e+00> : vector<8x512xf32>
    %99 = tpu.matmul %96, %8, %cst_35 {dimension_numbers = #tpu.dot_dimension_numbers<[1], [0], [0], [1], [0, 0, 1, 1], [], []>} : vector<8x128xf32>, vector<128x512xf32>, vector<8x512xf32> -> vector<8x512xf32>
    %100 = arith.addf %98, %99 : vector<8x512xf32>
    %101 = vector.extract_strided_slice %100 {offsets = [0, 0], sizes = [8, 128], strides = [1, 1]} : vector<8x512xf32> to vector<8x128xf32>
    %102 = arith.negf %101 : vector<8x128xf32>
    %103 = math.exp %102 : vector<8x128xf32>
    %cst_36 = arith.constant 1.000000e+00 : f32
    %104 = vector.broadcast %cst_36 : f32 to vector<8x128xf32>
    %105 = arith.addf %104, %103 : vector<8x128xf32>
    %106 = arith.divf %104, %105 : vector<8x128xf32>
    %107 = vector.extract_strided_slice %100 {offsets = [0, 128], sizes = [8, 128], strides = [1, 1]} : vector<8x512xf32> to vector<8x128xf32>
    %108 = arith.negf %107 : vector<8x128xf32>
    %109 = math.exp %108 : vector<8x128xf32>
    %cst_37 = arith.constant 1.000000e+00 : f32
    %110 = vector.broadcast %cst_37 : f32 to vector<8x128xf32>
    %111 = arith.addf %110, %109 : vector<8x128xf32>
    %112 = arith.divf %110, %111 : vector<8x128xf32>
    %113 = vector.extract_strided_slice %100 {offsets = [0, 256], sizes = [8, 128], strides = [1, 1]} : vector<8x512xf32> to vector<8x128xf32>
    %114 = math.tanh %113 : vector<8x128xf32>
    %115 = vector.extract_strided_slice %100 {offsets = [0, 384], sizes = [8, 128], strides = [1, 1]} : vector<8x512xf32> to vector<8x128xf32>
    %116 = arith.negf %115 : vector<8x128xf32>
    %117 = math.exp %116 : vector<8x128xf32>
    %cst_38 = arith.constant 1.000000e+00 : f32
    %118 = vector.broadcast %cst_38 : f32 to vector<8x128xf32>
    %119 = arith.addf %118, %117 : vector<8x128xf32>
    %120 = arith.divf %118, %119 : vector<8x128xf32>
    %121 = arith.mulf %112, %94 : vector<8x128xf32>
    %122 = arith.mulf %106, %114 : vector<8x128xf32>
    %123 = arith.addf %121, %122 : vector<8x128xf32>
    %124 = math.tanh %123 : vector<8x128xf32>
    %125 = arith.mulf %120, %124 : vector<8x128xf32>
    %c24_39 = arith.constant 24 : index
    %c0_40 = arith.constant 0 : index
    %126 = vector.load %arg10[%c24_39, %c0_40] : memref<64x128xf32, #tpu.memory_space<vmem>>, vector<8x128xf32>
    tpu.vector_store %arg10[%c24_39, %c0_40], %125 {strides = array<i32>} : memref<64x128xf32, #tpu.memory_space<vmem>>, vector<8x128xf32>,
    %c32 = arith.constant 32 : index
    %c0_41 = arith.constant 0 : index
    %127 = vector.load %arg11[%c32, %c0_41] : memref<64x512xf32, #tpu.memory_space<vmem>>, vector<8x512xf32>
    %cst_42 = arith.constant dense<0.000000e+00> : vector<8x512xf32>
    %128 = tpu.matmul %125, %8, %cst_42 {dimension_numbers = #tpu.dot_dimension_numbers<[1], [0], [0], [1], [0, 0, 1, 1], [], []>} : vector<8x128xf32>, vector<128x512xf32>, vector<8x512xf32> -> vector<8x512xf32>
    %129 = arith.addf %127, %128 : vector<8x512xf32>
    %130 = vector.extract_strided_slice %129 {offsets = [0, 0], sizes = [8, 128], strides = [1, 1]} : vector<8x512xf32> to vector<8x128xf32>
    %131 = arith.negf %130 : vector<8x128xf32>
    %132 = math.exp %131 : vector<8x128xf32>
    %cst_43 = arith.constant 1.000000e+00 : f32
    %133 = vector.broadcast %cst_43 : f32 to vector<8x128xf32>
    %134 = arith.addf %133, %132 : vector<8x128xf32>
    %135 = arith.divf %133, %134 : vector<8x128xf32>
    %136 = vector.extract_strided_slice %129 {offsets = [0, 128], sizes = [8, 128], strides = [1, 1]} : vector<8x512xf32> to vector<8x128xf32>
    %137 = arith.negf %136 : vector<8x128xf32>
    %138 = math.exp %137 : vector<8x128xf32>
    %cst_44 = arith.constant 1.000000e+00 : f32
    %139 = vector.broadcast %cst_44 : f32 to vector<8x128xf32>
    %140 = arith.addf %139, %138 : vector<8x128xf32>
    %141 = arith.divf %139, %140 : vector<8x128xf32>
    %142 = vector.extract_strided_slice %129 {offsets = [0, 256], sizes = [8, 128], strides = [1, 1]} : vector<8x512xf32> to vector<8x128xf32>
    %143 = math.tanh %142 : vector<8x128xf32>
    %144 = vector.extract_strided_slice %129 {offsets = [0, 384], sizes = [8, 128], strides = [1, 1]} : vector<8x512xf32> to vector<8x128xf32>
    %145 = arith.negf %144 : vector<8x128xf32>
    %146 = math.exp %145 : vector<8x128xf32>
    %cst_45 = arith.constant 1.000000e+00 : f32
    %147 = vector.broadcast %cst_45 : f32 to vector<8x128xf32>
    %148 = arith.addf %147, %146 : vector<8x128xf32>
    %149 = arith.divf %147, %148 : vector<8x128xf32>
    %150 = arith.mulf %141, %123 : vector<8x128xf32>
    %151 = arith.mulf %135, %143 : vector<8x128xf32>
    %152 = arith.addf %150, %151 : vector<8x128xf32>
    %153 = math.tanh %152 : vector<8x128xf32>
    %154 = arith.mulf %149, %153 : vector<8x128xf32>
    %c32_46 = arith.constant 32 : index
    %c0_47 = arith.constant 0 : index
    %155 = vector.load %arg10[%c32_46, %c0_47] : memref<64x128xf32, #tpu.memory_space<vmem>>, vector<8x128xf32>
    tpu.vector_store %arg10[%c32_46, %c0_47], %154 {strides = array<i32>} : memref<64x128xf32, #tpu.memory_space<vmem>>, vector<8x128xf32>,
    %c40 = arith.constant 40 : index
    %c0_48 = arith.constant 0 : index
    %156 = vector.load %arg11[%c40, %c0_48] : memref<64x512xf32, #tpu.memory_space<vmem>>, vector<8x512xf32>
    %cst_49 = arith.constant dense<0.000000e+00> : vector<8x512xf32>
    %157 = tpu.matmul %154, %8, %cst_49 {dimension_numbers = #tpu.dot_dimension_numbers<[1], [0], [0], [1], [0, 0, 1, 1], [], []>} : vector<8x128xf32>, vector<128x512xf32>, vector<8x512xf32> -> vector<8x512xf32>
    %158 = arith.addf %156, %157 : vector<8x512xf32>
    %159 = vector.extract_strided_slice %158 {offsets = [0, 0], sizes = [8, 128], strides = [1, 1]} : vector<8x512xf32> to vector<8x128xf32>
    %160 = arith.negf %159 : vector<8x128xf32>
    %161 = math.exp %160 : vector<8x128xf32>
    %cst_50 = arith.constant 1.000000e+00 : f32
    %162 = vector.broadcast %cst_50 : f32 to vector<8x128xf32>
    %163 = arith.addf %162, %161 : vector<8x128xf32>
    %164 = arith.divf %162, %163 : vector<8x128xf32>
    %165 = vector.extract_strided_slice %158 {offsets = [0, 128], sizes = [8, 128], strides = [1, 1]} : vector<8x512xf32> to vector<8x128xf32>
    %166 = arith.negf %165 : vector<8x128xf32>
    %167 = math.exp %166 : vector<8x128xf32>
    %cst_51 = arith.constant 1.000000e+00 : f32
    %168 = vector.broadcast %cst_51 : f32 to vector<8x128xf32>
    %169 = arith.addf %168, %167 : vector<8x128xf32>
    %170 = arith.divf %168, %169 : vector<8x128xf32>
    %171 = vector.extract_strided_slice %158 {offsets = [0, 256], sizes = [8, 128], strides = [1, 1]} : vector<8x512xf32> to vector<8x128xf32>
    %172 = math.tanh %171 : vector<8x128xf32>
    %173 = vector.extract_strided_slice %158 {offsets = [0, 384], sizes = [8, 128], strides = [1, 1]} : vector<8x512xf32> to vector<8x128xf32>
    %174 = arith.negf %173 : vector<8x128xf32>
    %175 = math.exp %174 : vector<8x128xf32>
    %cst_52 = arith.constant 1.000000e+00 : f32
    %176 = vector.broadcast %cst_52 : f32 to vector<8x128xf32>
    %177 = arith.addf %176, %175 : vector<8x128xf32>
    %178 = arith.divf %176, %177 : vector<8x128xf32>
    %179 = arith.mulf %170, %152 : vector<8x128xf32>
    %180 = arith.mulf %164, %172 : vector<8x128xf32>
    %181 = arith.addf %179, %180 : vector<8x128xf32>
    %182 = math.tanh %181 : vector<8x128xf32>
    %183 = arith.mulf %178, %182 : vector<8x128xf32>
    %c40_53 = arith.constant 40 : index
    %c0_54 = arith.constant 0 : index
    %184 = vector.load %arg10[%c40_53, %c0_54] : memref<64x128xf32, #tpu.memory_space<vmem>>, vector<8x128xf32>
    tpu.vector_store %arg10[%c40_53, %c0_54], %183 {strides = array<i32>} : memref<64x128xf32, #tpu.memory_space<vmem>>, vector<8x128xf32>,
    %c48 = arith.constant 48 : index
    %c0_55 = arith.constant 0 : index
    %185 = vector.load %arg11[%c48, %c0_55] : memref<64x512xf32, #tpu.memory_space<vmem>>, vector<8x512xf32>
    %cst_56 = arith.constant dense<0.000000e+00> : vector<8x512xf32>
    %186 = tpu.matmul %183, %8, %cst_56 {dimension_numbers = #tpu.dot_dimension_numbers<[1], [0], [0], [1], [0, 0, 1, 1], [], []>} : vector<8x128xf32>, vector<128x512xf32>, vector<8x512xf32> -> vector<8x512xf32>
    %187 = arith.addf %185, %186 : vector<8x512xf32>
    %188 = vector.extract_strided_slice %187 {offsets = [0, 0], sizes = [8, 128], strides = [1, 1]} : vector<8x512xf32> to vector<8x128xf32>
    %189 = arith.negf %188 : vector<8x128xf32>
    %190 = math.exp %189 : vector<8x128xf32>
    %cst_57 = arith.constant 1.000000e+00 : f32
    %191 = vector.broadcast %cst_57 : f32 to vector<8x128xf32>
    %192 = arith.addf %191, %190 : vector<8x128xf32>
    %193 = arith.divf %191, %192 : vector<8x128xf32>
    %194 = vector.extract_strided_slice %187 {offsets = [0, 128], sizes = [8, 128], strides = [1, 1]} : vector<8x512xf32> to vector<8x128xf32>
    %195 = arith.negf %194 : vector<8x128xf32>
    %196 = math.exp %195 : vector<8x128xf32>
    %cst_58 = arith.constant 1.000000e+00 : f32
    %197 = vector.broadcast %cst_58 : f32 to vector<8x128xf32>
    %198 = arith.addf %197, %196 : vector<8x128xf32>
    %199 = arith.divf %197, %198 : vector<8x128xf32>
    %200 = vector.extract_strided_slice %187 {offsets = [0, 256], sizes = [8, 128], strides = [1, 1]} : vector<8x512xf32> to vector<8x128xf32>
    %201 = math.tanh %200 : vector<8x128xf32>
    %202 = vector.extract_strided_slice %187 {offsets = [0, 384], sizes = [8, 128], strides = [1, 1]} : vector<8x512xf32> to vector<8x128xf32>
    %203 = arith.negf %202 : vector<8x128xf32>
    %204 = math.exp %203 : vector<8x128xf32>
    %cst_59 = arith.constant 1.000000e+00 : f32
    %205 = vector.broadcast %cst_59 : f32 to vector<8x128xf32>
    %206 = arith.addf %205, %204 : vector<8x128xf32>
    %207 = arith.divf %205, %206 : vector<8x128xf32>
    %208 = arith.mulf %199, %181 : vector<8x128xf32>
    %209 = arith.mulf %193, %201 : vector<8x128xf32>
    %210 = arith.addf %208, %209 : vector<8x128xf32>
    %211 = math.tanh %210 : vector<8x128xf32>
    %212 = arith.mulf %207, %211 : vector<8x128xf32>
    %c48_60 = arith.constant 48 : index
    %c0_61 = arith.constant 0 : index
    %213 = vector.load %arg10[%c48_60, %c0_61] : memref<64x128xf32, #tpu.memory_space<vmem>>, vector<8x128xf32>
    tpu.vector_store %arg10[%c48_60, %c0_61], %212 {strides = array<i32>} : memref<64x128xf32, #tpu.memory_space<vmem>>, vector<8x128xf32>,
    %c56 = arith.constant 56 : index
    %c0_62 = arith.constant 0 : index
    %214 = vector.load %arg11[%c56, %c0_62] : memref<64x512xf32, #tpu.memory_space<vmem>>, vector<8x512xf32>
    %cst_63 = arith.constant dense<0.000000e+00> : vector<8x512xf32>
    %215 = tpu.matmul %212, %8, %cst_63 {dimension_numbers = #tpu.dot_dimension_numbers<[1], [0], [0], [1], [0, 0, 1, 1], [], []>} : vector<8x128xf32>, vector<128x512xf32>, vector<8x512xf32> -> vector<8x512xf32>
    %216 = arith.addf %214, %215 : vector<8x512xf32>
    %217 = vector.extract_strided_slice %216 {offsets = [0, 0], sizes = [8, 128], strides = [1, 1]} : vector<8x512xf32> to vector<8x128xf32>
    %218 = arith.negf %217 : vector<8x128xf32>
    %219 = math.exp %218 : vector<8x128xf32>
    %cst_64 = arith.constant 1.000000e+00 : f32
    %220 = vector.broadcast %cst_64 : f32 to vector<8x128xf32>
    %221 = arith.addf %220, %219 : vector<8x128xf32>
    %222 = arith.divf %220, %221 : vector<8x128xf32>
    %223 = vector.extract_strided_slice %216 {offsets = [0, 128], sizes = [8, 128], strides = [1, 1]} : vector<8x512xf32> to vector<8x128xf32>
    %224 = arith.negf %223 : vector<8x128xf32>
    %225 = math.exp %224 : vector<8x128xf32>
    %cst_65 = arith.constant 1.000000e+00 : f32
    %226 = vector.broadcast %cst_65 : f32 to vector<8x128xf32>
    %227 = arith.addf %226, %225 : vector<8x128xf32>
    %228 = arith.divf %226, %227 : vector<8x128xf32>
    %229 = vector.extract_strided_slice %216 {offsets = [0, 256], sizes = [8, 128], strides = [1, 1]} : vector<8x512xf32> to vector<8x128xf32>
    %230 = math.tanh %229 : vector<8x128xf32>
    %231 = vector.extract_strided_slice %216 {offsets = [0, 384], sizes = [8, 128], strides = [1, 1]} : vector<8x512xf32> to vector<8x128xf32>
    %232 = arith.negf %231 : vector<8x128xf32>
    %233 = math.exp %232 : vector<8x128xf32>
    %cst_66 = arith.constant 1.000000e+00 : f32
    %234 = vector.broadcast %cst_66 : f32 to vector<8x128xf32>
    %235 = arith.addf %234, %233 : vector<8x128xf32>
    %236 = arith.divf %234, %235 : vector<8x128xf32>
    %237 = arith.mulf %228, %210 : vector<8x128xf32>
    %238 = arith.mulf %222, %230 : vector<8x128xf32>
    %239 = arith.addf %237, %238 : vector<8x128xf32>
    %240 = math.tanh %239 : vector<8x128xf32>
    %241 = arith.mulf %236, %240 : vector<8x128xf32>
    %c56_67 = arith.constant 56 : index
    %c0_68 = arith.constant 0 : index
    %242 = vector.load %arg10[%c56_67, %c0_68] : memref<64x128xf32, #tpu.memory_space<vmem>>, vector<8x128xf32>
    tpu.vector_store %arg10[%c56_67, %c0_68], %241 {strides = array<i32>} : memref<64x128xf32, #tpu.memory_space<vmem>>, vector<8x128xf32>,
    %c0_69 = arith.constant 0 : index
    %c0_70 = arith.constant 0 : index
    %243 = vector.load %arg10[%c0_69, %c0_70] : memref<64x128xf32, #tpu.memory_space<vmem>>, vector<64x128xf32>
    %c0_71 = arith.constant 0 : index
    %c0_72 = arith.constant 0 : index
    %244 = vector.load %arg4[%c0_71, %c0_72] : memref<128x512xf32, #tpu.memory_space<vmem>>, vector<128x512xf32>
    %cst_73 = arith.constant dense<0.000000e+00> : vector<64x512xf32>
    %245 = tpu.matmul %243, %244, %cst_73 {dimension_numbers = #tpu.dot_dimension_numbers<[1], [0], [0], [1], [0, 0, 1, 1], [], []>} : vector<64x128xf32>, vector<128x512xf32>, vector<64x512xf32> -> vector<64x512xf32>
    %c0_74 = arith.constant 0 : index
    %c0_75 = arith.constant 0 : index
    %246 = vector.load %arg6[%c0_74, %c0_75] : memref<1x512xf32, #tpu.memory_space<vmem>>, vector<1x512xf32>
    %247 = vector.broadcast %246 : vector<1x512xf32> to vector<64x512xf32>
    %248 = arith.addf %245, %247 : vector<64x512xf32>
    %c0_76 = arith.constant 0 : index
    %c0_77 = arith.constant 0 : index
    %249 = vector.load %arg11[%c0_76, %c0_77] : memref<64x512xf32, #tpu.memory_space<vmem>>, vector<64x512xf32>
    tpu.vector_store %arg11[%c0_76, %c0_77], %248 {strides = array<i32>} : memref<64x512xf32, #tpu.memory_space<vmem>>, vector<64x512xf32>,
    %c0_78 = arith.constant 0 : index
    %c0_79 = arith.constant 0 : index
    %250 = vector.load %arg5[%c0_78, %c0_79] : memref<128x512xf32, #tpu.memory_space<vmem>>, vector<128x512xf32>
    %cst_80 = arith.constant 0.000000e+00 : f32
    %251 = vector.broadcast %cst_80 : f32 to vector<8x128xf32>
    %cst_81 = arith.constant 0.000000e+00 : f32
    %252 = vector.broadcast %cst_81 : f32 to vector<8x128xf32>
    %c0_82 = arith.constant 0 : index
    %c0_83 = arith.constant 0 : index
    %253 = vector.load %arg11[%c0_82, %c0_83] : memref<64x512xf32, #tpu.memory_space<vmem>>, vector<8x512xf32>
    %cst_84 = arith.constant dense<0.000000e+00> : vector<8x512xf32>
    %254 = tpu.matmul %251, %250, %cst_84 {dimension_numbers = #tpu.dot_dimension_numbers<[1], [0], [0], [1], [0, 0, 1, 1], [], []>} : vector<8x128xf32>, vector<128x512xf32>, vector<8x512xf32> -> vector<8x512xf32>
    %255 = arith.addf %253, %254 : vector<8x512xf32>
    %256 = vector.extract_strided_slice %255 {offsets = [0, 0], sizes = [8, 128], strides = [1, 1]} : vector<8x512xf32> to vector<8x128xf32>
    %257 = arith.negf %256 : vector<8x128xf32>
    %258 = math.exp %257 : vector<8x128xf32>
    %cst_85 = arith.constant 1.000000e+00 : f32
    %259 = vector.broadcast %cst_85 : f32 to vector<8x128xf32>
    %260 = arith.addf %259, %258 : vector<8x128xf32>
    %261 = arith.divf %259, %260 : vector<8x128xf32>
    %262 = vector.extract_strided_slice %255 {offsets = [0, 128], sizes = [8, 128], strides = [1, 1]} : vector<8x512xf32> to vector<8x128xf32>
    %263 = arith.negf %262 : vector<8x128xf32>
    %264 = math.exp %263 : vector<8x128xf32>
    %cst_86 = arith.constant 1.000000e+00 : f32
    %265 = vector.broadcast %cst_86 : f32 to vector<8x128xf32>
    %266 = arith.addf %265, %264 : vector<8x128xf32>
    %267 = arith.divf %265, %266 : vector<8x128xf32>
    %268 = vector.extract_strided_slice %255 {offsets = [0, 256], sizes = [8, 128], strides = [1, 1]} : vector<8x512xf32> to vector<8x128xf32>
    %269 = math.tanh %268 : vector<8x128xf32>
    %270 = vector.extract_strided_slice %255 {offsets = [0, 384], sizes = [8, 128], strides = [1, 1]} : vector<8x512xf32> to vector<8x128xf32>
    %271 = arith.negf %270 : vector<8x128xf32>
    %272 = math.exp %271 : vector<8x128xf32>
    %cst_87 = arith.constant 1.000000e+00 : f32
    %273 = vector.broadcast %cst_87 : f32 to vector<8x128xf32>
    %274 = arith.addf %273, %272 : vector<8x128xf32>
    %275 = arith.divf %273, %274 : vector<8x128xf32>
    %276 = arith.mulf %267, %252 : vector<8x128xf32>
    %277 = arith.mulf %261, %269 : vector<8x128xf32>
    %278 = arith.addf %276, %277 : vector<8x128xf32>
    %279 = math.tanh %278 : vector<8x128xf32>
    %280 = arith.mulf %275, %279 : vector<8x128xf32>
    %c8_88 = arith.constant 8 : index
    %c0_89 = arith.constant 0 : index
    %281 = vector.load %arg11[%c8_88, %c0_89] : memref<64x512xf32, #tpu.memory_space<vmem>>, vector<8x512xf32>
    %cst_90 = arith.constant dense<0.000000e+00> : vector<8x512xf32>
    %282 = tpu.matmul %280, %250, %cst_90 {dimension_numbers = #tpu.dot_dimension_numbers<[1], [0], [0], [1], [0, 0, 1, 1], [], []>} : vector<8x128xf32>, vector<128x512xf32>, vector<8x512xf32> -> vector<8x512xf32>
    %283 = arith.addf %281, %282 : vector<8x512xf32>
    %284 = vector.extract_strided_slice %283 {offsets = [0, 0], sizes = [8, 128], strides = [1, 1]} : vector<8x512xf32> to vector<8x128xf32>
    %285 = arith.negf %284 : vector<8x128xf32>
    %286 = math.exp %285 : vector<8x128xf32>
    %cst_91 = arith.constant 1.000000e+00 : f32
    %287 = vector.broadcast %cst_91 : f32 to vector<8x128xf32>
    %288 = arith.addf %287, %286 : vector<8x128xf32>
    %289 = arith.divf %287, %288 : vector<8x128xf32>
    %290 = vector.extract_strided_slice %283 {offsets = [0, 128], sizes = [8, 128], strides = [1, 1]} : vector<8x512xf32> to vector<8x128xf32>
    %291 = arith.negf %290 : vector<8x128xf32>
    %292 = math.exp %291 : vector<8x128xf32>
    %cst_92 = arith.constant 1.000000e+00 : f32
    %293 = vector.broadcast %cst_92 : f32 to vector<8x128xf32>
    %294 = arith.addf %293, %292 : vector<8x128xf32>
    %295 = arith.divf %293, %294 : vector<8x128xf32>
    %296 = vector.extract_strided_slice %283 {offsets = [0, 256], sizes = [8, 128], strides = [1, 1]} : vector<8x512xf32> to vector<8x128xf32>
    %297 = math.tanh %296 : vector<8x128xf32>
    %298 = vector.extract_strided_slice %283 {offsets = [0, 384], sizes = [8, 128], strides = [1, 1]} : vector<8x512xf32> to vector<8x128xf32>
    %299 = arith.negf %298 : vector<8x128xf32>
    %300 = math.exp %299 : vector<8x128xf32>
    %cst_93 = arith.constant 1.000000e+00 : f32
    %301 = vector.broadcast %cst_93 : f32 to vector<8x128xf32>
    %302 = arith.addf %301, %300 : vector<8x128xf32>
    %303 = arith.divf %301, %302 : vector<8x128xf32>
    %304 = arith.mulf %295, %278 : vector<8x128xf32>
    %305 = arith.mulf %289, %297 : vector<8x128xf32>
    %306 = arith.addf %304, %305 : vector<8x128xf32>
    %307 = math.tanh %306 : vector<8x128xf32>
    %308 = arith.mulf %303, %307 : vector<8x128xf32>
    %c16_94 = arith.constant 16 : index
    %c0_95 = arith.constant 0 : index
    %309 = vector.load %arg11[%c16_94, %c0_95] : memref<64x512xf32, #tpu.memory_space<vmem>>, vector<8x512xf32>
    %cst_96 = arith.constant dense<0.000000e+00> : vector<8x512xf32>
    %310 = tpu.matmul %308, %250, %cst_96 {dimension_numbers = #tpu.dot_dimension_numbers<[1], [0], [0], [1], [0, 0, 1, 1], [], []>} : vector<8x128xf32>, vector<128x512xf32>, vector<8x512xf32> -> vector<8x512xf32>
    %311 = arith.addf %309, %310 : vector<8x512xf32>
    %312 = vector.extract_strided_slice %311 {offsets = [0, 0], sizes = [8, 128], strides = [1, 1]} : vector<8x512xf32> to vector<8x128xf32>
    %313 = arith.negf %312 : vector<8x128xf32>
    %314 = math.exp %313 : vector<8x128xf32>
    %cst_97 = arith.constant 1.000000e+00 : f32
    %315 = vector.broadcast %cst_97 : f32 to vector<8x128xf32>
    %316 = arith.addf %315, %314 : vector<8x128xf32>
    %317 = arith.divf %315, %316 : vector<8x128xf32>
    %318 = vector.extract_strided_slice %311 {offsets = [0, 128], sizes = [8, 128], strides = [1, 1]} : vector<8x512xf32> to vector<8x128xf32>
    %319 = arith.negf %318 : vector<8x128xf32>
    %320 = math.exp %319 : vector<8x128xf32>
    %cst_98 = arith.constant 1.000000e+00 : f32
    %321 = vector.broadcast %cst_98 : f32 to vector<8x128xf32>
    %322 = arith.addf %321, %320 : vector<8x128xf32>
    %323 = arith.divf %321, %322 : vector<8x128xf32>
    %324 = vector.extract_strided_slice %311 {offsets = [0, 256], sizes = [8, 128], strides = [1, 1]} : vector<8x512xf32> to vector<8x128xf32>
    %325 = math.tanh %324 : vector<8x128xf32>
    %326 = vector.extract_strided_slice %311 {offsets = [0, 384], sizes = [8, 128], strides = [1, 1]} : vector<8x512xf32> to vector<8x128xf32>
    %327 = arith.negf %326 : vector<8x128xf32>
    %328 = math.exp %327 : vector<8x128xf32>
    %cst_99 = arith.constant 1.000000e+00 : f32
    %329 = vector.broadcast %cst_99 : f32 to vector<8x128xf32>
    %330 = arith.addf %329, %328 : vector<8x128xf32>
    %331 = arith.divf %329, %330 : vector<8x128xf32>
    %332 = arith.mulf %323, %306 : vector<8x128xf32>
    %333 = arith.mulf %317, %325 : vector<8x128xf32>
    %334 = arith.addf %332, %333 : vector<8x128xf32>
    %335 = math.tanh %334 : vector<8x128xf32>
    %336 = arith.mulf %331, %335 : vector<8x128xf32>
    %c24_100 = arith.constant 24 : index
    %c0_101 = arith.constant 0 : index
    %337 = vector.load %arg11[%c24_100, %c0_101] : memref<64x512xf32, #tpu.memory_space<vmem>>, vector<8x512xf32>
    %cst_102 = arith.constant dense<0.000000e+00> : vector<8x512xf32>
    %338 = tpu.matmul %336, %250, %cst_102 {dimension_numbers = #tpu.dot_dimension_numbers<[1], [0], [0], [1], [0, 0, 1, 1], [], []>} : vector<8x128xf32>, vector<128x512xf32>, vector<8x512xf32> -> vector<8x512xf32>
    %339 = arith.addf %337, %338 : vector<8x512xf32>
    %340 = vector.extract_strided_slice %339 {offsets = [0, 0], sizes = [8, 128], strides = [1, 1]} : vector<8x512xf32> to vector<8x128xf32>
    %341 = arith.negf %340 : vector<8x128xf32>
    %342 = math.exp %341 : vector<8x128xf32>
    %cst_103 = arith.constant 1.000000e+00 : f32
    %343 = vector.broadcast %cst_103 : f32 to vector<8x128xf32>
    %344 = arith.addf %343, %342 : vector<8x128xf32>
    %345 = arith.divf %343, %344 : vector<8x128xf32>
    %346 = vector.extract_strided_slice %339 {offsets = [0, 128], sizes = [8, 128], strides = [1, 1]} : vector<8x512xf32> to vector<8x128xf32>
    %347 = arith.negf %346 : vector<8x128xf32>
    %348 = math.exp %347 : vector<8x128xf32>
    %cst_104 = arith.constant 1.000000e+00 : f32
    %349 = vector.broadcast %cst_104 : f32 to vector<8x128xf32>
    %350 = arith.addf %349, %348 : vector<8x128xf32>
    %351 = arith.divf %349, %350 : vector<8x128xf32>
    %352 = vector.extract_strided_slice %339 {offsets = [0, 256], sizes = [8, 128], strides = [1, 1]} : vector<8x512xf32> to vector<8x128xf32>
    %353 = math.tanh %352 : vector<8x128xf32>
    %354 = vector.extract_strided_slice %339 {offsets = [0, 384], sizes = [8, 128], strides = [1, 1]} : vector<8x512xf32> to vector<8x128xf32>
    %355 = arith.negf %354 : vector<8x128xf32>
    %356 = math.exp %355 : vector<8x128xf32>
    %cst_105 = arith.constant 1.000000e+00 : f32
    %357 = vector.broadcast %cst_105 : f32 to vector<8x128xf32>
    %358 = arith.addf %357, %356 : vector<8x128xf32>
    %359 = arith.divf %357, %358 : vector<8x128xf32>
    %360 = arith.mulf %351, %334 : vector<8x128xf32>
    %361 = arith.mulf %345, %353 : vector<8x128xf32>
    %362 = arith.addf %360, %361 : vector<8x128xf32>
    %363 = math.tanh %362 : vector<8x128xf32>
    %364 = arith.mulf %359, %363 : vector<8x128xf32>
    %c32_106 = arith.constant 32 : index
    %c0_107 = arith.constant 0 : index
    %365 = vector.load %arg11[%c32_106, %c0_107] : memref<64x512xf32, #tpu.memory_space<vmem>>, vector<8x512xf32>
    %cst_108 = arith.constant dense<0.000000e+00> : vector<8x512xf32>
    %366 = tpu.matmul %364, %250, %cst_108 {dimension_numbers = #tpu.dot_dimension_numbers<[1], [0], [0], [1], [0, 0, 1, 1], [], []>} : vector<8x128xf32>, vector<128x512xf32>, vector<8x512xf32> -> vector<8x512xf32>
    %367 = arith.addf %365, %366 : vector<8x512xf32>
    %368 = vector.extract_strided_slice %367 {offsets = [0, 0], sizes = [8, 128], strides = [1, 1]} : vector<8x512xf32> to vector<8x128xf32>
    %369 = arith.negf %368 : vector<8x128xf32>
    %370 = math.exp %369 : vector<8x128xf32>
    %cst_109 = arith.constant 1.000000e+00 : f32
    %371 = vector.broadcast %cst_109 : f32 to vector<8x128xf32>
    %372 = arith.addf %371, %370 : vector<8x128xf32>
    %373 = arith.divf %371, %372 : vector<8x128xf32>
    %374 = vector.extract_strided_slice %367 {offsets = [0, 128], sizes = [8, 128], strides = [1, 1]} : vector<8x512xf32> to vector<8x128xf32>
    %375 = arith.negf %374 : vector<8x128xf32>
    %376 = math.exp %375 : vector<8x128xf32>
    %cst_110 = arith.constant 1.000000e+00 : f32
    %377 = vector.broadcast %cst_110 : f32 to vector<8x128xf32>
    %378 = arith.addf %377, %376 : vector<8x128xf32>
    %379 = arith.divf %377, %378 : vector<8x128xf32>
    %380 = vector.extract_strided_slice %367 {offsets = [0, 256], sizes = [8, 128], strides = [1, 1]} : vector<8x512xf32> to vector<8x128xf32>
    %381 = math.tanh %380 : vector<8x128xf32>
    %382 = vector.extract_strided_slice %367 {offsets = [0, 384], sizes = [8, 128], strides = [1, 1]} : vector<8x512xf32> to vector<8x128xf32>
    %383 = arith.negf %382 : vector<8x128xf32>
    %384 = math.exp %383 : vector<8x128xf32>
    %cst_111 = arith.constant 1.000000e+00 : f32
    %385 = vector.broadcast %cst_111 : f32 to vector<8x128xf32>
    %386 = arith.addf %385, %384 : vector<8x128xf32>
    %387 = arith.divf %385, %386 : vector<8x128xf32>
    %388 = arith.mulf %379, %362 : vector<8x128xf32>
    %389 = arith.mulf %373, %381 : vector<8x128xf32>
    %390 = arith.addf %388, %389 : vector<8x128xf32>
    %391 = math.tanh %390 : vector<8x128xf32>
    %392 = arith.mulf %387, %391 : vector<8x128xf32>
    %c40_112 = arith.constant 40 : index
    %c0_113 = arith.constant 0 : index
    %393 = vector.load %arg11[%c40_112, %c0_113] : memref<64x512xf32, #tpu.memory_space<vmem>>, vector<8x512xf32>
    %cst_114 = arith.constant dense<0.000000e+00> : vector<8x512xf32>
    %394 = tpu.matmul %392, %250, %cst_114 {dimension_numbers = #tpu.dot_dimension_numbers<[1], [0], [0], [1], [0, 0, 1, 1], [], []>} : vector<8x128xf32>, vector<128x512xf32>, vector<8x512xf32> -> vector<8x512xf32>
    %395 = arith.addf %393, %394 : vector<8x512xf32>
    %396 = vector.extract_strided_slice %395 {offsets = [0, 0], sizes = [8, 128], strides = [1, 1]} : vector<8x512xf32> to vector<8x128xf32>
    %397 = arith.negf %396 : vector<8x128xf32>
    %398 = math.exp %397 : vector<8x128xf32>
    %cst_115 = arith.constant 1.000000e+00 : f32
    %399 = vector.broadcast %cst_115 : f32 to vector<8x128xf32>
    %400 = arith.addf %399, %398 : vector<8x128xf32>
    %401 = arith.divf %399, %400 : vector<8x128xf32>
    %402 = vector.extract_strided_slice %395 {offsets = [0, 128], sizes = [8, 128], strides = [1, 1]} : vector<8x512xf32> to vector<8x128xf32>
    %403 = arith.negf %402 : vector<8x128xf32>
    %404 = math.exp %403 : vector<8x128xf32>
    %cst_116 = arith.constant 1.000000e+00 : f32
    %405 = vector.broadcast %cst_116 : f32 to vector<8x128xf32>
    %406 = arith.addf %405, %404 : vector<8x128xf32>
    %407 = arith.divf %405, %406 : vector<8x128xf32>
    %408 = vector.extract_strided_slice %395 {offsets = [0, 256], sizes = [8, 128], strides = [1, 1]} : vector<8x512xf32> to vector<8x128xf32>
    %409 = math.tanh %408 : vector<8x128xf32>
    %410 = vector.extract_strided_slice %395 {offsets = [0, 384], sizes = [8, 128], strides = [1, 1]} : vector<8x512xf32> to vector<8x128xf32>
    %411 = arith.negf %410 : vector<8x128xf32>
    %412 = math.exp %411 : vector<8x128xf32>
    %cst_117 = arith.constant 1.000000e+00 : f32
    %413 = vector.broadcast %cst_117 : f32 to vector<8x128xf32>
    %414 = arith.addf %413, %412 : vector<8x128xf32>
    %415 = arith.divf %413, %414 : vector<8x128xf32>
    %416 = arith.mulf %407, %390 : vector<8x128xf32>
    %417 = arith.mulf %401, %409 : vector<8x128xf32>
    %418 = arith.addf %416, %417 : vector<8x128xf32>
    %419 = math.tanh %418 : vector<8x128xf32>
    %420 = arith.mulf %415, %419 : vector<8x128xf32>
    %c48_118 = arith.constant 48 : index
    %c0_119 = arith.constant 0 : index
    %421 = vector.load %arg11[%c48_118, %c0_119] : memref<64x512xf32, #tpu.memory_space<vmem>>, vector<8x512xf32>
    %cst_120 = arith.constant dense<0.000000e+00> : vector<8x512xf32>
    %422 = tpu.matmul %420, %250, %cst_120 {dimension_numbers = #tpu.dot_dimension_numbers<[1], [0], [0], [1], [0, 0, 1, 1], [], []>} : vector<8x128xf32>, vector<128x512xf32>, vector<8x512xf32> -> vector<8x512xf32>
    %423 = arith.addf %421, %422 : vector<8x512xf32>
    %424 = vector.extract_strided_slice %423 {offsets = [0, 0], sizes = [8, 128], strides = [1, 1]} : vector<8x512xf32> to vector<8x128xf32>
    %425 = arith.negf %424 : vector<8x128xf32>
    %426 = math.exp %425 : vector<8x128xf32>
    %cst_121 = arith.constant 1.000000e+00 : f32
    %427 = vector.broadcast %cst_121 : f32 to vector<8x128xf32>
    %428 = arith.addf %427, %426 : vector<8x128xf32>
    %429 = arith.divf %427, %428 : vector<8x128xf32>
    %430 = vector.extract_strided_slice %423 {offsets = [0, 128], sizes = [8, 128], strides = [1, 1]} : vector<8x512xf32> to vector<8x128xf32>
    %431 = arith.negf %430 : vector<8x128xf32>
    %432 = math.exp %431 : vector<8x128xf32>
    %cst_122 = arith.constant 1.000000e+00 : f32
    %433 = vector.broadcast %cst_122 : f32 to vector<8x128xf32>
    %434 = arith.addf %433, %432 : vector<8x128xf32>
    %435 = arith.divf %433, %434 : vector<8x128xf32>
    %436 = vector.extract_strided_slice %423 {offsets = [0, 256], sizes = [8, 128], strides = [1, 1]} : vector<8x512xf32> to vector<8x128xf32>
    %437 = math.tanh %436 : vector<8x128xf32>
    %438 = vector.extract_strided_slice %423 {offsets = [0, 384], sizes = [8, 128], strides = [1, 1]} : vector<8x512xf32> to vector<8x128xf32>
    %439 = arith.negf %438 : vector<8x128xf32>
    %440 = math.exp %439 : vector<8x128xf32>
    %cst_123 = arith.constant 1.000000e+00 : f32
    %441 = vector.broadcast %cst_123 : f32 to vector<8x128xf32>
    %442 = arith.addf %441, %440 : vector<8x128xf32>
    %443 = arith.divf %441, %442 : vector<8x128xf32>
    %444 = arith.mulf %435, %418 : vector<8x128xf32>
    %445 = arith.mulf %429, %437 : vector<8x128xf32>
    %446 = arith.addf %444, %445 : vector<8x128xf32>
    %447 = math.tanh %446 : vector<8x128xf32>
    %448 = arith.mulf %443, %447 : vector<8x128xf32>
    %c56_124 = arith.constant 56 : index
    %c0_125 = arith.constant 0 : index
    %449 = vector.load %arg11[%c56_124, %c0_125] : memref<64x512xf32, #tpu.memory_space<vmem>>, vector<8x512xf32>
    %cst_126 = arith.constant dense<0.000000e+00> : vector<8x512xf32>
    %450 = tpu.matmul %448, %250, %cst_126 {dimension_numbers = #tpu.dot_dimension_numbers<[1], [0], [0], [1], [0, 0, 1, 1], [], []>} : vector<8x128xf32>, vector<128x512xf32>, vector<8x512xf32> -> vector<8x512xf32>
    %451 = arith.addf %449, %450 : vector<8x512xf32>
    %452 = vector.extract_strided_slice %451 {offsets = [0, 0], sizes = [8, 128], strides = [1, 1]} : vector<8x512xf32> to vector<8x128xf32>
    %453 = arith.negf %452 : vector<8x128xf32>
    %454 = math.exp %453 : vector<8x128xf32>
    %cst_127 = arith.constant 1.000000e+00 : f32
    %455 = vector.broadcast %cst_127 : f32 to vector<8x128xf32>
    %456 = arith.addf %455, %454 : vector<8x128xf32>
    %457 = arith.divf %455, %456 : vector<8x128xf32>
    %458 = vector.extract_strided_slice %451 {offsets = [0, 128], sizes = [8, 128], strides = [1, 1]} : vector<8x512xf32> to vector<8x128xf32>
    %459 = arith.negf %458 : vector<8x128xf32>
    %460 = math.exp %459 : vector<8x128xf32>
    %cst_128 = arith.constant 1.000000e+00 : f32
    %461 = vector.broadcast %cst_128 : f32 to vector<8x128xf32>
    %462 = arith.addf %461, %460 : vector<8x128xf32>
    %463 = arith.divf %461, %462 : vector<8x128xf32>
    %464 = vector.extract_strided_slice %451 {offsets = [0, 256], sizes = [8, 128], strides = [1, 1]} : vector<8x512xf32> to vector<8x128xf32>
    %465 = math.tanh %464 : vector<8x128xf32>
    %466 = vector.extract_strided_slice %451 {offsets = [0, 384], sizes = [8, 128], strides = [1, 1]} : vector<8x512xf32> to vector<8x128xf32>
    %467 = arith.negf %466 : vector<8x128xf32>
    %468 = math.exp %467 : vector<8x128xf32>
    %cst_129 = arith.constant 1.000000e+00 : f32
    %469 = vector.broadcast %cst_129 : f32 to vector<8x128xf32>
    %470 = arith.addf %469, %468 : vector<8x128xf32>
    %471 = arith.divf %469, %470 : vector<8x128xf32>
    %472 = arith.mulf %463, %446 : vector<8x128xf32>
    %473 = arith.mulf %457, %465 : vector<8x128xf32>
    %474 = arith.addf %472, %473 : vector<8x128xf32>
    %475 = math.tanh %474 : vector<8x128xf32>
    %476 = arith.mulf %471, %475 : vector<8x128xf32>
    %c0_130 = arith.constant 0 : index
    %c0_131 = arith.constant 0 : index
    %477 = vector.load %arg7[%c0_130, %c0_131] : memref<128x128xf32, #tpu.memory_space<vmem>>, vector<128x128xf32>
    %cst_132 = arith.constant dense<0.000000e+00> : vector<8x128xf32>
    %478 = tpu.matmul %476, %477, %cst_132 {dimension_numbers = #tpu.dot_dimension_numbers<[1], [0], [0], [1], [0, 0, 1, 1], [], []>} : vector<8x128xf32>, vector<128x128xf32>, vector<8x128xf32> -> vector<8x128xf32>
    %c0_133 = arith.constant 0 : index
    %c0_134 = arith.constant 0 : index
    %479 = vector.load %arg8[%c0_133, %c0_134] : memref<1x128xf32, #tpu.memory_space<vmem>>, vector<1x128xf32>
    %480 = vector.broadcast %479 : vector<1x128xf32> to vector<8x128xf32>
    %481 = arith.addf %478, %480 : vector<8x128xf32>
    %cst_135 = arith.constant dense<0xFF800000> : vector<8xf32>
    %482 = vector.multi_reduction <maximumf>, %481, %cst_135 [1] : vector<8x128xf32> to vector<8xf32>
    %483 = vector.shape_cast %482 : vector<8xf32> to vector<8x1xf32>
    %484 = vector.broadcast %483 : vector<8x1xf32> to vector<8x128xf32>
    %485 = arith.subf %481, %484 : vector<8x128xf32>
    %486 = math.exp %485 : vector<8x128xf32>
    %cst_136 = arith.constant dense<0.000000e+00> : vector<8xf32>
    %487 = vector.multi_reduction <add>, %486, %cst_136 [1] : vector<8x128xf32> to vector<8xf32>
    %488 = vector.shape_cast %487 : vector<8xf32> to vector<8x1xf32>
    %489 = vector.broadcast %488 : vector<8x1xf32> to vector<8x128xf32>
    %490 = arith.divf %486, %489 : vector<8x128xf32>
    %c0_137 = arith.constant 0 : index
    %c0_138 = arith.constant 0 : index
    %491 = vector.load %arg9[%c0_137, %c0_138] : memref<8x128xf32, #tpu.memory_space<vmem>>, vector<8x128xf32>
    tpu.vector_store %arg9[%c0_137, %c0_138], %490 {strides = array<i32>} : memref<8x128xf32, #tpu.memory_space<vmem>>, vector<8x128xf32>,
    return
  }
}

</mosaic_0001>

<bundles_post_ra>
// kernel: lstm_forward.1
= control target key start
LH: loop header
LB: loop body
LE: loop exit
PB: predicated region body
PF: predicated region fallthrough
CT: control target
= control target key end

     0   :  { %v5360_v3 = vmov 0.0   ;;  %vm70_vm0 = vcmask 130048   ;;  %vm5362_vm1 = vmmov 0   ;;  %s7022_s1 = inlined_call_operand.vmem [shape: f32[16,512], index: 1, kind: input, shape index: {}]   ;;  %s7023_s0 = inlined_call_operand.vmem [shape: f32[8,8,16], index: 0, kind: input, shape index: {}]   ;;  %s7024_s2 = inlined_call_operand.vmem [shape: f32[128,512], index: 2, kind: input, shape index: {}]   ;;  %s7025_s3 = inlined_call_operand.vmem [shape: f32[1,512], index: 3, kind: input, shape index: {}]   ;;  %s7026_s4 = inlined_call_operand.vmem [shape: f32[128,512], index: 4, kind: input, shape index: {}]   ;;  %s7027_s5 = inlined_call_operand.vmem [shape: f32[128,512], index: 5, kind: input, shape index: {}]   ;;  %s7028_s6 = inlined_call_operand.vmem [shape: f32[1,512], index: 6, kind: input, shape index: {}]   ;;  %s7029_s7 = inlined_call_operand.vmem [shape: f32[128,128], index: 7, kind: input, shape index: {}]   ;;  %s7030_s8 = inlined_call_operand.vmem [shape: f32[1,128], index: 8, kind: input, shape index: {}]   ;;  %s7031_s9 = inlined_call_operand.vmem [shape: f32[8,128], index: 9, kind: output, shape index: {}]  }
   0x1   :  { %v41_v0 = vld [vmem:[%s7022_s1 + $0x8] sm:$0xff]  ;;  %v43_v2 = vld [vmem:[%s7022_s1 + $0x18] sm:$0xff]  ;;  %159 = vmatprep.mubr.f32.mxu0 %v5360_v3  ;;  %272 = vmatprep.mubr.f32.mxu1 %v5360_v3  ;;  %v40_v6 = vld [vmem:[%s7022_s1] sm:$0xff] }
   0x2   :  { %v45_v1 = vld [vmem:[%s7022_s1 + $0x28] sm:$0xff]  ;;  %v47_v5 = vld [vmem:[%s7022_s1 + $0x38] sm:$0xff]  ;;  %v44_v7 = vld [vmem:[%s7022_s1 + $0x20] sm:$0xff] }
   0x3   :  { %v3849_v4 = vpack.c.bf16 %v45_v1, %v41_v0  ;;  %v3853_v8 = vpack.c.bf16 %v47_v5, %v43_v2  ;;  %v3851_v9 = vpack.c.bf16 %v44_v7, %v40_v6  ;;  %v42_v10 = vld [vmem:[%s7022_s1 + $0x10] sm:$0xff]  ;;  %v32_v12 = vld [vmem:[%s7023_s0] sm:$0xff]  ;;  %v354_v14 = vld [vmem:[%s7024_s2 + $0x8] sm:$0xff] }
   0x4   :  { %v46_v11 = vld [vmem:[%s7022_s1 + $0x30] sm:$0xff]  ;;  %v358_v15 = vld [vmem:[%s7024_s2 + $0x28] sm:$0xff]  ;;  %v356_v16 = vld [vmem:[%s7024_s2 + $0x18] sm:$0xff] }
   0x5   :  { %3850 = vmatprep.subr.bf16.mxu0 %v3849_v4  ;;  %v3855_v13 = vpack.c.bf16 %v46_v11, %v42_v10  ;;  %3854 = vmatprep.subr.bf16.mxu1 %v3853_v8  ;;  %v5451_v17 = vpack.c.bf16 %v358_v15, %v354_v14  ;;  %v360_v18 = vld [vmem:[%s7024_s2 + $0x38] sm:$0xff]  ;;  %v353_v19 = vld [vmem:[%s7024_s2] sm:$0xff]  ;;  %v355_v23 = vld [vmem:[%s7024_s2 + $0x10] sm:$0xff] }
   0x6   :  { %3852 = vmatpush1.bf16.msra.mxu0 %v3851_v9  ;;  %v357_v20 = vld [vmem:[%s7024_s2 + $0x20] sm:$0xff]  ;;  %v5462_v21 = vpack.c.bf16 %v360_v18, %v356_v16  ;;  %v359_v24 = vld [vmem:[%s7024_s2 + $0x30] sm:$0xff]  ;;  %v362_v26 = vld [vmem:[%s7024_s2 + $0x48] sm:$0xff] }
   0x7   :  { %3856 = vmatpush1.bf16.msra.mxu1 %v3855_v13  ;;  %v5464_v22 = vpack.c.bf16 %v357_v20, %v353_v19  ;;  %3858 = vmatprep.subr.bf16.mxu0 %v5451_v17  ;;  %v5473_v25 = vpack.c.bf16 %v359_v24, %v355_v23  ;;  %v366_v27 = vld [vmem:[%s7024_s2 + $0x68] sm:$0xff]  ;;  %v364_v28 = vld [vmem:[%s7024_s2 + $0x58] sm:$0xff]  ;;  %v361_v31 = vld [vmem:[%s7024_s2 + $0x40] sm:$0xff] }
   0x8   :  { %3890 = vmatprep.subr.bf16.mxu1 %v5462_v21  ;;  %v5486_v29 = vpack.c.bf16 %v366_v27, %v362_v26  ;;  %v368_v30 = vld [vmem:[%s7024_s2 + $0x78] sm:$0xff]  ;;  %v365_v32 = vld [vmem:[%s7024_s2 + $0x60] sm:$0xff]  ;;  %v33_v33 = vld [vmem:[%s7023_s0 + $0x8] sm:$0xff] }
   0x9   :  { %3732 = vmatmul.mubr.msk.f32.vlgmr.msra.gmra.mrb[0].mxu0 %vm70_vm0, %v32_v12  ;;  %v5502_v34 = vpack.c.bf16 %v368_v30, %v364_v28  ;;  %v5504_v35 = vpack.c.bf16 %v365_v32, %v361_v31  ;;  %v363_v36 = vld [vmem:[%s7024_s2 + $0x50] sm:$0xff]  ;;  %v370_v39 = vld [vmem:[%s7024_s2 + $0x88] sm:$0xff]  ;;  %v372_v41 = vld [vmem:[%s7024_s2 + $0x98] sm:$0xff] }
   0xa   :  { %3740 = vmatmul.mubr.msk.f32.vlgmr.msra.gmra.mrb[0].mxu1 %vm70_vm0, %v32_v12  ;;  %3860 = vmatpush1.bf16.msra.mxu0 %v5464_v22  ;;  %v367_v37 = vld [vmem:[%s7024_s2 + $0x70] sm:$0xff]  ;;  %v374_v40 = vld [vmem:[%s7024_s2 + $0xa8] sm:$0xff]  ;;  %v376_v43 = vld [vmem:[%s7024_s2 + $0xb8] sm:$0xff] }
   0xb   :  { %3892 = vmatpush1.bf16.msra.mxu1 %v5473_v25  ;;  %165 = vmatprep.mubr.f32.mxu0 %v5360_v3  ;;  %v5514_v38 = vpack.c.bf16 %v367_v37, %v363_v36  ;;  %v5527_v42 = vpack.c.bf16 %v374_v40, %v370_v39  ;;  %v369_v44 = vld [vmem:[%s7024_s2 + $0x80] sm:$0xff]  ;;  %v34_v46 = vld [vmem:[%s7023_s0 + $0x10] sm:$0xff]  ;;  %v5543_v47 = vpack.c.bf16 %v376_v43, %v372_v41  ;;  %v378_v51 = vld [vmem:[%s7024_s2 + $0xc8] sm:$0xff] }
   0xc   :  { %278 = vmatprep.mubr.f32.mxu1 %v5360_v3  ;;  %3862 = vmatprep.subr.bf16.mxu0 %v5486_v29  ;;  %v373_v45 = vld [vmem:[%s7024_s2 + $0xa0] sm:$0xff]  ;;  %v371_v48 = vld [vmem:[%s7024_s2 + $0x90] sm:$0xff]  ;;  %v382_v52 = vld [vmem:[%s7024_s2 + $0xe8] sm:$0xff] }
   0xd   :  { %3733 = vmatmul.mubr.msk.f32.gmra.mrb[2].mxu0 %vm70_vm0, %v33_v33  ;;  %3894 = vmatprep.subr.bf16.mxu1 %v5502_v34  ;;  %v375_v49 = vld [vmem:[%s7024_s2 + $0xb0] sm:$0xff]  ;;  %v5553_v50 = vpack.c.bf16 %v373_v45, %v369_v44  ;;  %v380_v53 = vld [vmem:[%s7024_s2 + $0xd8] sm:$0xff]  ;;  %v377_v56 = vld [vmem:[%s7024_s2 + $0xc0] sm:$0xff]  ;;  %v5579_v58 = vpack.c.bf16 %v382_v52, %v378_v51 }
   0xe   :  { %3741 = vmatmul.mubr.msk.f32.gmra.mrb[2].mxu1 %vm70_vm0, %v33_v33  ;;  %3864 = vmatpush1.bf16.msra.mxu0 %v5504_v35  ;;  %v5566_v54 = vpack.c.bf16 %v375_v49, %v371_v48  ;;  %v384_v55 = vld [vmem:[%s7024_s2 + $0xf8] sm:$0xff]  ;;  %v381_v57 = vld [vmem:[%s7024_s2 + $0xe0] sm:$0xff]  ;;  %v379_v59 = vld [vmem:[%s7024_s2 + $0xd0] sm:$0xff] }
   0xf   :  { %3896 = vmatpush1.bf16.msra.mxu1 %v5514_v38  ;;  %171 = vmatprep.mubr.f32.mxu0 %v5360_v3  ;;  %v383_v60 = vld [vmem:[%s7024_s2 + $0xf0] sm:$0xff]  ;;  %v5589_v61 = vpack.c.bf16 %v384_v55, %v380_v53  ;;  %v386_v62 = vld [vmem:[%s7024_s2 + $0x108] sm:$0xff]  ;;  %v35_v0 = vld [vmem:[%s7023_s0 + $0x18] sm:$0xff]  ;;  %v5602_v1 = vpack.c.bf16 %v381_v57, %v377_v56 }
  0x10   :  { %284 = vmatprep.mubr.f32.mxu1 %v5360_v3  ;;  %3866 = vmatprep.subr.bf16.mxu0 %v5527_v42  ;;  %v390_v63 = vld [vmem:[%s7024_s2 + $0x128] sm:$0xff]  ;;  %v388_v2 = vld [vmem:[%s7024_s2 + $0x118] sm:$0xff]  ;;  %v5612_v5 = vpack.c.bf16 %v383_v60, %v379_v59  ;;  %v385_v6 = vld [vmem:[%s7024_s2 + $0x100] sm:$0xff] }
  0x11   :  { %3734 = vmatmul.mubr.msk.f32.gmra.mrb[4].mxu0 %vm70_vm0, %v34_v46  ;;  %3898 = vmatprep.subr.bf16.mxu1 %v5543_v47  ;;  %v392_v4 = vld [vmem:[%s7024_s2 + $0x138] sm:$0xff]  ;;  %v389_v7 = vld [vmem:[%s7024_s2 + $0x120] sm:$0xff]  ;;  %v5622_v8 = vpack.c.bf16 %v390_v63, %v386_v62  ;;  %v387_v9 = vld [vmem:[%s7024_s2 + $0x110] sm:$0xff] }
  0x12   :  { %3742 = vmatmul.mubr.msk.f32.gmra.mrb[4].mxu1 %vm70_vm0, %v34_v46  ;;  %3868 = vmatpush1.bf16.msra.mxu0 %v5553_v50  ;;  %v391_v10 = vld [vmem:[%s7024_s2 + $0x130] sm:$0xff]  ;;  %v5632_v11 = vpack.c.bf16 %v392_v4, %v388_v2  ;;  %v394_v12 = vld [vmem:[%s7024_s2 + $0x148] sm:$0xff]  ;;  %v36_v14 = vld [vmem:[%s7023_s0 + $0x20] sm:$0xff]  ;;  %v5645_v15 = vpack.c.bf16 %v389_v7, %v385_v6  ;;  %v50_v7 = vlaneseq }
  0x13   :  { %3900 = vmatpush1.bf16.msra.mxu1 %v5566_v54  ;;  %177 = vmatprep.mubr.f32.mxu0 %v5360_v3  ;;  %v398_v13 = vld [vmem:[%s7024_s2 + $0x168] sm:$0xff]  ;;  %v396_v16 = vld [vmem:[%s7024_s2 + $0x158] sm:$0xff]  ;;  %v5655_v19 = vpack.c.bf16 %v391_v10, %v387_v9  ;;  %v393_v20 = vld [vmem:[%s7024_s2 + $0x140] sm:$0xff] }
  0x14   :  { %290 = vmatprep.mubr.f32.mxu1 %v5360_v3  ;;  %3870 = vmatprep.subr.bf16.mxu0 %v5579_v58  ;;  %v400_v18 = vld [vmem:[%s7024_s2 + $0x178] sm:$0xff]  ;;  %v397_v23 = vld [vmem:[%s7024_s2 + $0x160] sm:$0xff]  ;;  %v5665_v24 = vpack.c.bf16 %v398_v13, %v394_v12  ;;  %v395_v26 = vld [vmem:[%s7024_s2 + $0x150] sm:$0xff]  ;;  %v5821_v9 = vshrl.u32 %v50_v7, 7 }
  0x15   :  { %3735 = vmatmul.mubr.msk.f32.gmra.mrb[6].mxu0 %vm70_vm0, %v35_v0  ;;  %3902 = vmatprep.subr.bf16.mxu1 %v5589_v61  ;;  %v399_v27 = vld [vmem:[%s7024_s2 + $0x170] sm:$0xff]  ;;  %v5675_v28 = vpack.c.bf16 %v400_v18, %v396_v16  ;;  %v402_v30 = vld [vmem:[%s7024_s2 + $0x188] sm:$0xff]  ;;  %v5688_v33 = vpack.c.bf16 %v397_v23, %v393_v20  ;;  %v404_v36 = vld [vmem:[%s7024_s2 + $0x198] sm:$0xff] }
  0x16   :  { %3743 = vmatmul.mubr.msk.f32.gmra.mrb[6].mxu1 %vm70_vm0, %v35_v0  ;;  %3872 = vmatpush1.bf16.msra.mxu0 %v5602_v1  ;;  %v406_v31 = vld [vmem:[%s7024_s2 + $0x1a8] sm:$0xff]  ;;  %v408_v37 = vld [vmem:[%s7024_s2 + $0x1b8] sm:$0xff]  ;;  %v5698_v39 = vpack.c.bf16 %v399_v27, %v395_v26  ;;  %v401_v40 = vld [vmem:[%s7024_s2 + $0x180] sm:$0xff]  ;;  %v52_v10 = vsub.s32 0, %v5821_v9  ;;  %v56_v13 = vsub.s32 1, %v5821_v9  ;;  %v64_v20 = vsub.s32 3, %v5821_v9 }
  0x17   :  { %3904 = vmatpush1.bf16.msra.mxu1 %v5612_v5  ;;  %183 = vmatprep.mubr.f32.mxu0 %v5360_v3  ;;  %v37_v32 = vld [vmem:[%s7023_s0 + $0x28] sm:$0xff]  ;;  %v405_v41 = vld [vmem:[%s7024_s2 + $0x1a0] sm:$0xff]  ;;  %v5708_v43 = vpack.c.bf16 %v406_v31, %v402_v30  ;;  %v403_v44 = vld [vmem:[%s7024_s2 + $0x190] sm:$0xff]  ;;  %v5718_v46 = vpack.c.bf16 %v408_v37, %v404_v36 }
  0x18   :  { %296 = vmatprep.mubr.f32.mxu1 %v5360_v3  ;;  %3874 = vmatprep.subr.bf16.mxu0 %v5622_v8  ;;  %v407_v45 = vld [vmem:[%s7024_s2 + $0x1b0] sm:$0xff]  ;;  %v410_v48 = vld [vmem:[%s7024_s2 + $0x1c8] sm:$0xff]  ;;  %v5731_v52 = vpack.c.bf16 %v405_v41, %v401_v40  ;;  %v412_v53 = vld [vmem:[%s7024_s2 + $0x1d8] sm:$0xff]  ;;  %v60_v40 = vsub.s32 2, %v5821_v9 }
  0x19   :  { %3736 = vmatmul.mubr.msk.f32.gmra.mrb[8].mxu0 %vm70_vm0, %v36_v14  ;;  %3906 = vmatprep.subr.bf16.mxu1 %v5632_v11  ;;  %v414_v49 = vld [vmem:[%s7024_s2 + $0x1e8] sm:$0xff]  ;;  %v38_v51 = vld [vmem:[%s7023_s0 + $0x30] sm:$0xff]  ;;  %v416_v55 = vld [vmem:[%s7024_s2 + $0x1f8] sm:$0xff]  ;;  %v5741_v56 = vpack.c.bf16 %v407_v45, %v403_v44 }
  0x1a   :  { %3744 = vmatmul.mubr.msk.f32.gmra.mrb[8].mxu1 %vm70_vm0, %v36_v14  ;;  %3876 = vmatpush1.bf16.msra.mxu0 %v5645_v15  ;;  %v409_v57 = vld [vmem:[%s7024_s2 + $0x1c0] sm:$0xff]  ;;  %v5751_v60 = vpack.c.bf16 %v414_v49, %v410_v48  ;;  %v411_v62 = vld [vmem:[%s7024_s2 + $0x1d0] sm:$0xff]  ;;  %v5761_v0 = vpack.c.bf16 %v416_v55, %v412_v53  ;;  %v39_v2 = vld [vmem:[%s7023_s0 + $0x38] sm:$0xff] }
  0x1b   :  { %3908 = vmatpush1.bf16.msra.mxu1 %v5655_v19  ;;  %189 = vmatprep.mubr.f32.mxu0 %v5360_v3  ;;  %v413_v59 = vld [vmem:[%s7024_s2 + $0x1e0] sm:$0xff]  ;;  %v415_v63 = vld [vmem:[%s7024_s2 + $0x1f0] sm:$0xff] }
  0x1c   :  { %302 = vmatprep.mubr.f32.mxu1 %v5360_v3  ;;  %3878 = vmatprep.subr.bf16.mxu0 %v5665_v24  ;;  %v5768_v4 = vpack.c.bf16 %v413_v59, %v409_v57  ;;  %v5772_v6 = vpack.c.bf16 %v415_v63, %v411_v62  ;;  %v48_v12 = vld [vmem:[%s7025_s3] sm:$0xf] }
  0x1d   :  { %3737 = vmatmul.mubr.msk.f32.gmra.mrb[10].mxu0 %vm70_vm0, %v37_v32  ;;  %3910 = vmatprep.subr.bf16.mxu1 %v5675_v28  ;;  %v5830_v14 = vrot.slane %v48_v12, %v52_v10  ;;  %v5834_v16 = vrot.slane %v48_v12, %v56_v13  ;;  %v5841_v37 = vrot.slane %v48_v12, %v64_v20 }
  0x1e   :  { %3745 = vmatmul.mubr.msk.f32.gmra.mrb[10].mxu1 %vm70_vm0, %v37_v32  ;;  %3880 = vmatpush1.bf16.msra.mxu0 %v5688_v33  ;;  %v5847_v44 = vrot.slane %v48_v12, %v60_v40 }
  0x1f   :  { %3912 = vmatpush1.bf16.msra.mxu1 %v5698_v39  ;;  %195 = vmatprep.mubr.f32.mxu0 %v5360_v3 }
  0x20   :  { %308 = vmatprep.mubr.f32.mxu1 %v5360_v3  ;;  %3882 = vmatprep.subr.bf16.mxu0 %v5708_v43 }
  0x21   :  { %3738 = vmatmul.mubr.msk.f32.gmra.mrb[12].mxu0 %vm70_vm0, %v38_v51  ;;  %3914 = vmatprep.subr.bf16.mxu1 %v5718_v46 }
  0x22   :  { %3746 = vmatmul.mubr.msk.f32.gmra.mrb[12].mxu1 %vm70_vm0, %v38_v51  ;;  %3884 = vmatpush1.bf16.msra.mxu0 %v5731_v52 }
  0x23   :  { %3916 = vmatpush1.bf16.msra.mxu1 %v5741_v56  ;;  %201 = vmatprep.mubr.f32.mxu0 %v5360_v3 }
  0x24   :  { %314 = vmatprep.mubr.f32.mxu1 %v5360_v3  ;;  %3886 = vmatprep.subr.bf16.mxu0 %v5751_v60 }
  0x25   :  { %3739 = vmatmul.mubr.msk.f32.gmra.mrb[14].mxu0 %vm70_vm0, %v39_v2  ;;  %3918 = vmatprep.subr.bf16.mxu1 %v5761_v0 }
  0x26   :  { %3747 = vmatmul.mubr.msk.f32.gmra.mrb[14].mxu1 %vm70_vm0, %v39_v2  ;;  %3888 = vmatpush1.bf16.msra.mxu0 %v5768_v4 }
  0x27   :  { %3920 = vmatpush1.bf16.msra.mxu1 %v5772_v6  ;;  %485 = vmatprep.mubr.f32.mxu0 %v5360_v3 }
  0x28   :  { %556 = vmatprep.mubr.f32.mxu1 %v5360_v3  ;;  %3922 = vmatprep.subr.bf16.mxu0 %v5451_v17 }
  0x29   :  { %486 = vmatmul.mubr.f32.vlgmr.msra.gmra.mrb[0].mxu0 %v5360_v3  ;;  %3954 = vmatprep.subr.bf16.mxu1 %v5462_v21 }
  0x2a   :  { %557 = vmatmul.mubr.f32.vlgmr.msra.gmra.mrb[0].mxu1 %v5360_v3  ;;  %3924 = vmatpush1.bf16.msra.mxu0 %v5464_v22 }
  0x2b   :  { %3956 = vmatpush1.bf16.msra.mxu1 %v5473_v25  ;;  %3926 = vmatprep.subr.bf16.mxu0 %v5486_v29 }
  0x2c   :  { %3958 = vmatprep.subr.bf16.mxu1 %v5502_v34  ;;  %660 = vmatprep.mubr.f32.mxu0 %v5360_v3 }
  0x2d   :  { %731 = vmatprep.mubr.f32.mxu1 %v5360_v3 }
  0x2e   :  { %3928 = vmatpush1.bf16.msra.mxu0 %v5504_v35 }
  0x2f   :  { %3960 = vmatpush1.bf16.msra.mxu1 %v5514_v38  ;;  %3930 = vmatprep.subr.bf16.mxu0 %v5527_v42 }
  0x30   :  { %3962 = vmatprep.subr.bf16.mxu1 %v5543_v47 }
  0x32   :  { %3932 = vmatpush1.bf16.msra.mxu0 %v5553_v50 }
  0x33   :  { %3964 = vmatpush1.bf16.msra.mxu1 %v5566_v54  ;;  %3934 = vmatprep.subr.bf16.mxu0 %v5579_v58 }
  0x34   :  { %3966 = vmatprep.subr.bf16.mxu1 %v5589_v61 }
  0x36   :  { %3936 = vmatpush1.bf16.msra.mxu0 %v5602_v1 }
  0x37   :  { %3968 = vmatpush1.bf16.msra.mxu1 %v5612_v5  ;;  %3938 = vmatprep.subr.bf16.mxu0 %v5622_v8 }
  0x38   :  { %3970 = vmatprep.subr.bf16.mxu1 %v5632_v11 }
  0x3a   :  { %3940 = vmatpush1.bf16.msra.mxu0 %v5645_v15 }
  0x3b   :  { %3972 = vmatpush1.bf16.msra.mxu1 %v5655_v19  ;;  %3942 = vmatprep.subr.bf16.mxu0 %v5665_v24 }
  0x3c   :  { %3974 = vmatprep.subr.bf16.mxu1 %v5675_v28 }
  0x3e   :  { %3944 = vmatpush1.bf16.msra.mxu0 %v5688_v33 }
  0x3f   :  { %3976 = vmatpush1.bf16.msra.mxu1 %v5698_v39  ;;  %3946 = vmatprep.subr.bf16.mxu0 %v5708_v43 }
  0x40   :  { %3978 = vmatprep.subr.bf16.mxu1 %v5718_v46 }
  0x42   :  { %3948 = vmatpush1.bf16.msra.mxu0 %v5731_v52 }
  0x43   :  { %3980 = vmatpush1.bf16.msra.mxu1 %v5741_v56  ;;  %3950 = vmatprep.subr.bf16.mxu0 %v5751_v60 }
  0x44   :  { %3982 = vmatprep.subr.bf16.mxu1 %v5761_v0 }
  0x46   :  { %3952 = vmatpush1.bf16.msra.mxu0 %v5768_v4 }
  0x47   :  { %3984 = vmatpush1.bf16.msra.mxu1 %v5772_v6  ;;  %3986 = vmatprep.subr.bf16.mxu0 %v5451_v17 }
  0x48   :  { %4018 = vmatprep.subr.bf16.mxu1 %v5462_v21 }
  0xfc   :  { %v487_v18 = vpop.f32.mrb[0].mxu0 }
  0xfd   :  { %v4969_v23 = vadd.f32 %v487_v18, %v5830_v14  ;;  %v558_v26 = vpop.f32.mrb[0].mxu1  ;;  %v489_v27 = vpop.f32.mrb[1].mxu0 }
  0xfe   :  { %v4970_v30 = vadd.f32 %v489_v27, %v5834_v16  ;;  %v560_v31 = vpop.f32.mrb[1].mxu1  ;;  %v4985_v48 = vadd.f32 %v558_v26, %v5847_v44 }
  0xff   :  { %v3748_v32 = vmul.f32 -1.442695, %v4969_v23  ;;  %v4986_v41 = vadd.f32 %v560_v31, %v5841_v37 }
 0x100   :  { %v3749_v36 = vmul.f32 -1.442695, %v4970_v30 }
 0x101   :  { %5100 = vpow2.f32 %v3748_v32  ;;  %v3750_v45 = vmul.f32 -1.442695, %v4986_v41 }
 0x102   :  { %5102 = vpow2.f32 %v3749_v36 }
 0x103   :  { %5104 = vpow2.f32 %v3750_v45 }
 0x104   :  { %5106 = vtanh.f32 %v4985_v48 }
 0x10b   :  { %v5101_v49 = vpop.eup %5100 }
 0x10c   :  { %v5103_v51 = vpop.eup %5102  ;;  %v570_v53 = vadd.f32 1.0, %v5101_v49 }
 0x10d   :  { %v576_v55 = vadd.f32 1.0, %v5103_v51  ;;  %v5105_v57 = vpop.eup %5104 }
 0x10e   :  { %5108 = vrcp.f32 %v570_v53  ;;  %v5107_v59 = vpop.eup %5106  ;;  %v583_v7 = vadd.f32 1.0, %v5105_v57 }
 0x10f   :  { %5110 = vrcp.f32 %v576_v55 }
 0x110   :  { %5112 = vrcp.f32 %v583_v7 }
 0x118   :  { %v5109_v62 = vpop.eup %5108 }
 0x119   :  { %v5111_v63 = vpop.eup %5110  ;;  %v587_v2 = vmul.f32 %v5109_v62, %v5107_v59 }
 0x11a   :  { %v586_v18 = vmul.f32 0.0, %v5111_v63  ;;  %v5113_v23 = vpop.eup %5112 }
 0x11c   :  { %v5850_v12 = vadd.f32 %v587_v2, %v586_v18 }
 0x11e   :  { %5114 = vtanh.f32 %v5850_v12 }
 0x128   :  { %v5115_v26 = vpop.eup %5114 }
 0x129   :  { %v5853_v27 = vmul.f32 %v5115_v26, %v5113_v23 }
 0x12b   :  { %661 = vmatmul.mubr.f32.vlgmr.msra.gmra.mrb[2].mxu0 %v5853_v27  ;;  %732 = vmatmul.mubr.f32.vlgmr.msra.gmra.mrb[2].mxu1 %v5853_v27 }
 0x12c   :  { %3988 = vmatpush1.bf16.msra.mxu0 %v5464_v22  ;;  %4020 = vmatpush1.bf16.msra.mxu1 %v5473_v25 }
 0x12d   :  { %3990 = vmatprep.subr.bf16.mxu0 %v5486_v29  ;;  %4022 = vmatprep.subr.bf16.mxu1 %v5502_v34 }
 0x12e   :  { %835 = vmatprep.mubr.f32.mxu0 %v5360_v3  ;;  %906 = vmatprep.mubr.f32.mxu1 %v5360_v3 }
 0x130   :  { %3992 = vmatpush1.bf16.msra.mxu0 %v5504_v35  ;;  %4024 = vmatpush1.bf16.msra.mxu1 %v5514_v38 }
 0x131   :  { %3994 = vmatprep.subr.bf16.mxu0 %v5527_v42  ;;  %4026 = vmatprep.subr.bf16.mxu1 %v5543_v47 }
 0x134   :  { %3996 = vmatpush1.bf16.msra.mxu0 %v5553_v50  ;;  %4028 = vmatpush1.bf16.msra.mxu1 %v5566_v54 }
 0x135   :  { %3998 = vmatprep.subr.bf16.mxu0 %v5579_v58  ;;  %4030 = vmatprep.subr.bf16.mxu1 %v5589_v61 }
 0x138   :  { %4000 = vmatpush1.bf16.msra.mxu0 %v5602_v1  ;;  %4032 = vmatpush1.bf16.msra.mxu1 %v5612_v5 }
 0x139   :  { %4002 = vmatprep.subr.bf16.mxu0 %v5622_v8  ;;  %4034 = vmatprep.subr.bf16.mxu1 %v5632_v11 }
 0x13c   :  { %4004 = vmatpush1.bf16.msra.mxu0 %v5645_v15  ;;  %4036 = vmatpush1.bf16.msra.mxu1 %v5655_v19 }
 0x13d   :  { %4006 = vmatprep.subr.bf16.mxu0 %v5665_v24  ;;  %4038 = vmatprep.subr.bf16.mxu1 %v5675_v28 }
 0x140   :  { %4008 = vmatpush1.bf16.msra.mxu0 %v5688_v33  ;;  %4040 = vmatpush1.bf16.msra.mxu1 %v5698_v39 }
 0x141   :  { %4010 = vmatprep.subr.bf16.mxu0 %v5708_v43  ;;  %4042 = vmatprep.subr.bf16.mxu1 %v5718_v46 }
 0x144   :  { %4012 = vmatpush1.bf16.msra.mxu0 %v5731_v52  ;;  %4044 = vmatpush1.bf16.msra.mxu1 %v5741_v56 }
 0x145   :  { %4014 = vmatprep.subr.bf16.mxu0 %v5751_v60  ;;  %4046 = vmatprep.subr.bf16.mxu1 %v5761_v0 }
 0x148   :  { %4016 = vmatpush1.bf16.msra.mxu0 %v5768_v4  ;;  %4048 = vmatpush1.bf16.msra.mxu1 %v5772_v6 }
 0x149   :  { %4050 = vmatprep.subr.bf16.mxu0 %v5451_v17  ;;  %4082 = vmatprep.subr.bf16.mxu1 %v5462_v21 }
 0x1fe   :  { %v662_v30 = vpop.f32.mrb[2].mxu0  ;;  %v733_v31 = vpop.f32.mrb[2].mxu1 }
 0x1ff   :  { %v4971_v32 = vadd.f32 %v662_v30, %v5830_v14  ;;  %v664_v36 = vpop.f32.mrb[3].mxu0  ;;  %v735_v41 = vpop.f32.mrb[3].mxu1  ;;  %v4987_v55 = vadd.f32 %v733_v31, %v5847_v44 }
 0x200   :  { %v4972_v45 = vadd.f32 %v664_v36, %v5834_v16  ;;  %v4988_v51 = vadd.f32 %v735_v41, %v5841_v37 }
 0x201   :  { %v3751_v48 = vmul.f32 -1.442695, %v4971_v32 }
 0x202   :  { %v3752_v49 = vmul.f32 -1.442695, %v4972_v45  ;;  %v3753_v53 = vmul.f32 -1.442695, %v4988_v51 }
 0x203   :  { %5116 = vpow2.f32 %v3751_v48 }
 0x204   :  { %5118 = vpow2.f32 %v3752_v49 }
 0x205   :  { %5120 = vpow2.f32 %v3753_v53 }
 0x206   :  { %5122 = vtanh.f32 %v4987_v55 }
 0x20d   :  { %v5117_v57 = vpop.eup %5116 }
 0x20e   :  { %v5119_v59 = vpop.eup %5118  ;;  %v745_v62 = vadd.f32 1.0, %v5117_v57 }
 0x20f   :  { %v751_v63 = vadd.f32 1.0, %v5119_v59  ;;  %v5121_v2 = vpop.eup %5120 }
 0x210   :  { %5124 = vrcp.f32 %v745_v62  ;;  %v5123_v7 = vpop.eup %5122  ;;  %v758_v30 = vadd.f32 1.0, %v5121_v2 }
 0x211   :  { %5126 = vrcp.f32 %v751_v63 }
 0x212   :  { %5128 = vrcp.f32 %v758_v30 }
 0x21a   :  { %v5125_v18 = vpop.eup %5124 }
 0x21b   :  { %v5127_v23 = vpop.eup %5126  ;;  %v762_v26 = vmul.f32 %v5125_v18, %v5123_v7 }
 0x21c   :  { %v761_v32 = vmul.f32 %v5127_v23, %v5850_v12  ;;  %v5129_v31 = vpop.eup %5128 }
 0x21e   :  { %v5896_v36 = vadd.f32 %v762_v26, %v761_v32 }
 0x220   :  { %5130 = vtanh.f32 %v5896_v36 }
 0x22a   :  { %v5131_v41 = vpop.eup %5130 }
 0x22b   :  { %v5899_v45 = vmul.f32 %v5131_v41, %v5129_v31 }
 0x22d   :  { %836 = vmatmul.mubr.f32.vlgmr.msra.gmra.mrb[4].mxu0 %v5899_v45  ;;  %907 = vmatmul.mubr.f32.vlgmr.msra.gmra.mrb[4].mxu1 %v5899_v45 }
 0x22e   :  { %4052 = vmatpush1.bf16.msra.mxu0 %v5464_v22  ;;  %4084 = vmatpush1.bf16.msra.mxu1 %v5473_v25 }
 0x22f   :  { %4054 = vmatprep.subr.bf16.mxu0 %v5486_v29  ;;  %4086 = vmatprep.subr.bf16.mxu1 %v5502_v34 }
 0x230   :  { %1010 = vmatprep.mubr.f32.mxu0 %v5360_v3  ;;  %1081 = vmatprep.mubr.f32.mxu1 %v5360_v3 }
 0x232   :  { %4056 = vmatpush1.bf16.msra.mxu0 %v5504_v35  ;;  %4088 = vmatpush1.bf16.msra.mxu1 %v5514_v38 }
 0x233   :  { %4058 = vmatprep.subr.bf16.mxu0 %v5527_v42  ;;  %4090 = vmatprep.subr.bf16.mxu1 %v5543_v47 }
 0x236   :  { %4060 = vmatpush1.bf16.msra.mxu0 %v5553_v50  ;;  %4092 = vmatpush1.bf16.msra.mxu1 %v5566_v54 }
 0x237   :  { %4062 = vmatprep.subr.bf16.mxu0 %v5579_v58  ;;  %4094 = vmatprep.subr.bf16.mxu1 %v5589_v61 }
 0x23a   :  { %4064 = vmatpush1.bf16.msra.mxu0 %v5602_v1  ;;  %4096 = vmatpush1.bf16.msra.mxu1 %v5612_v5 }
 0x23b   :  { %4066 = vmatprep.subr.bf16.mxu0 %v5622_v8  ;;  %4098 = vmatprep.subr.bf16.mxu1 %v5632_v11 }
 0x23e   :  { %4068 = vmatpush1.bf16.msra.mxu0 %v5645_v15  ;;  %4100 = vmatpush1.bf16.msra.mxu1 %v5655_v19 }
 0x23f   :  { %4070 = vmatprep.subr.bf16.mxu0 %v5665_v24  ;;  %4102 = vmatprep.subr.bf16.mxu1 %v5675_v28 }
 0x242   :  { %4072 = vmatpush1.bf16.msra.mxu0 %v5688_v33  ;;  %4104 = vmatpush1.bf16.msra.mxu1 %v5698_v39 }
 0x243   :  { %4074 = vmatprep.subr.bf16.mxu0 %v5708_v43  ;;  %4106 = vmatprep.subr.bf16.mxu1 %v5718_v46 }
 0x246   :  { %4076 = vmatpush1.bf16.msra.mxu0 %v5731_v52  ;;  %4108 = vmatpush1.bf16.msra.mxu1 %v5741_v56 }
 0x247   :  { %4078 = vmatprep.subr.bf16.mxu0 %v5751_v60  ;;  %4110 = vmatprep.subr.bf16.mxu1 %v5761_v0 }
 0x24a   :  { %4080 = vmatpush1.bf16.msra.mxu0 %v5768_v4  ;;  %4112 = vmatpush1.bf16.msra.mxu1 %v5772_v6 }
 0x24b   :  { %4114 = vmatprep.subr.bf16.mxu0 %v5451_v17  ;;  %4146 = vmatprep.subr.bf16.mxu1 %v5462_v21 }
 0x300   :  { %v837_v12 = vpop.f32.mrb[4].mxu0  ;;  %v908_v48 = vpop.f32.mrb[4].mxu1 }
 0x301   :  { %v4973_v49 = vadd.f32 %v837_v12, %v5830_v14  ;;  %v839_v51 = vpop.f32.mrb[5].mxu0  ;;  %v910_v53 = vpop.f32.mrb[5].mxu1  ;;  %v4989_v2 = vadd.f32 %v908_v48, %v5847_v44 }
 0x302   :  { %v4974_v55 = vadd.f32 %v839_v51, %v5834_v16  ;;  %v4990_v62 = vadd.f32 %v910_v53, %v5841_v37 }
 0x303   :  { %v3754_v57 = vmul.f32 -1.442695, %v4973_v49 }
 0x304   :  { %v3755_v59 = vmul.f32 -1.442695, %v4974_v55  ;;  %v3756_v63 = vmul.f32 -1.442695, %v4990_v62 }
 0x305   :  { %5132 = vpow2.f32 %v3754_v57 }
 0x306   :  { %5134 = vpow2.f32 %v3755_v59 }
 0x307   :  { %5136 = vpow2.f32 %v3756_v63 }
 0x308   :  { %5138 = vtanh.f32 %v4989_v2 }
 0x30f   :  { %v5133_v7 = vpop.eup %5132 }
 0x310   :  { %v5135_v18 = vpop.eup %5134  ;;  %v920_v23 = vadd.f32 1.0, %v5133_v7 }
 0x311   :  { %v926_v26 = vadd.f32 1.0, %v5135_v18  ;;  %v5137_v30 = vpop.eup %5136 }
 0x312   :  { %5140 = vrcp.f32 %v920_v23  ;;  %v5139_v32 = vpop.eup %5138  ;;  %v933_v49 = vadd.f32 1.0, %v5137_v30 }
 0x313   :  { %5142 = vrcp.f32 %v926_v26 }
 0x314   :  { %5144 = vrcp.f32 %v933_v49 }
 0x31c   :  { %v5141_v31 = vpop.eup %5140 }
 0x31d   :  { %v5143_v41 = vpop.eup %5142  ;;  %v937_v12 = vmul.f32 %v5141_v31, %v5139_v32 }
 0x31e   :  { %v936_v51 = vmul.f32 %v5143_v41, %v5896_v36  ;;  %v5145_v48 = vpop.eup %5144 }
 0x320   :  { %v5942_v53 = vadd.f32 %v937_v12, %v936_v51 }
 0x322   :  { %5146 = vtanh.f32 %v5942_v53 }
 0x32c   :  { %v5147_v55 = vpop.eup %5146 }
 0x32d   :  { %v5945_v57 = vmul.f32 %v5147_v55, %v5145_v48 }
 0x32f   :  { %1011 = vmatmul.mubr.f32.vlgmr.msra.gmra.mrb[6].mxu0 %v5945_v57  ;;  %1082 = vmatmul.mubr.f32.vlgmr.msra.gmra.mrb[6].mxu1 %v5945_v57 }
 0x330   :  { %4116 = vmatpush1.bf16.msra.mxu0 %v5464_v22  ;;  %4148 = vmatpush1.bf16.msra.mxu1 %v5473_v25 }
 0x331   :  { %4118 = vmatprep.subr.bf16.mxu0 %v5486_v29  ;;  %4150 = vmatprep.subr.bf16.mxu1 %v5502_v34 }
 0x332   :  { %1185 = vmatprep.mubr.f32.mxu0 %v5360_v3  ;;  %1256 = vmatprep.mubr.f32.mxu1 %v5360_v3 }
 0x334   :  { %4120 = vmatpush1.bf16.msra.mxu0 %v5504_v35  ;;  %4152 = vmatpush1.bf16.msra.mxu1 %v5514_v38 }
 0x335   :  { %4122 = vmatprep.subr.bf16.mxu0 %v5527_v42  ;;  %4154 = vmatprep.subr.bf16.mxu1 %v5543_v47 }
 0x338   :  { %4124 = vmatpush1.bf16.msra.mxu0 %v5553_v50  ;;  %4156 = vmatpush1.bf16.msra.mxu1 %v5566_v54 }
 0x339   :  { %4126 = vmatprep.subr.bf16.mxu0 %v5579_v58  ;;  %4158 = vmatprep.subr.bf16.mxu1 %v5589_v61 }
 0x33c   :  { %4128 = vmatpush1.bf16.msra.mxu0 %v5602_v1  ;;  %4160 = vmatpush1.bf16.msra.mxu1 %v5612_v5 }
 0x33d   :  { %4130 = vmatprep.subr.bf16.mxu0 %v5622_v8  ;;  %4162 = vmatprep.subr.bf16.mxu1 %v5632_v11 }
 0x340   :  { %4132 = vmatpush1.bf16.msra.mxu0 %v5645_v15  ;;  %4164 = vmatpush1.bf16.msra.mxu1 %v5655_v19 }
 0x341   :  { %4134 = vmatprep.subr.bf16.mxu0 %v5665_v24  ;;  %4166 = vmatprep.subr.bf16.mxu1 %v5675_v28 }
 0x344   :  { %4136 = vmatpush1.bf16.msra.mxu0 %v5688_v33  ;;  %4168 = vmatpush1.bf16.msra.mxu1 %v5698_v39 }
 0x345   :  { %4138 = vmatprep.subr.bf16.mxu0 %v5708_v43  ;;  %4170 = vmatprep.subr.bf16.mxu1 %v5718_v46 }
 0x348   :  { %4140 = vmatpush1.bf16.msra.mxu0 %v5731_v52  ;;  %4172 = vmatpush1.bf16.msra.mxu1 %v5741_v56 }
 0x349   :  { %4142 = vmatprep.subr.bf16.mxu0 %v5751_v60  ;;  %4174 = vmatprep.subr.bf16.mxu1 %v5761_v0 }
 0x34c   :  { %4144 = vmatpush1.bf16.msra.mxu0 %v5768_v4  ;;  %4176 = vmatpush1.bf16.msra.mxu1 %v5772_v6 }
 0x34d   :  { %4178 = vmatprep.subr.bf16.mxu0 %v5451_v17  ;;  %4210 = vmatprep.subr.bf16.mxu1 %v5462_v21 }
 0x402   :  { %v1012_v36 = vpop.f32.mrb[6].mxu0  ;;  %v1083_v59 = vpop.f32.mrb[6].mxu1 }
 0x403   :  { %v4975_v62 = vadd.f32 %v1012_v36, %v5830_v14  ;;  %v1014_v63 = vpop.f32.mrb[7].mxu0  ;;  %v1085_v2 = vpop.f32.mrb[7].mxu1  ;;  %v4991_v32 = vadd.f32 %v1083_v59, %v5847_v44 }
 0x404   :  { %v4976_v7 = vadd.f32 %v1014_v63, %v5834_v16  ;;  %v4992_v26 = vadd.f32 %v1085_v2, %v5841_v37 }
 0x405   :  { %v3757_v18 = vmul.f32 -1.442695, %v4975_v62 }
 0x406   :  { %v3758_v23 = vmul.f32 -1.442695, %v4976_v7  ;;  %v3759_v30 = vmul.f32 -1.442695, %v4992_v26 }
 0x407   :  { %5148 = vpow2.f32 %v3757_v18 }
 0x408   :  { %5150 = vpow2.f32 %v3758_v23 }
 0x409   :  { %5152 = vpow2.f32 %v3759_v30 }
 0x40a   :  { %5154 = vtanh.f32 %v4991_v32 }
 0x411   :  { %v5149_v31 = vpop.eup %5148 }
 0x412   :  { %v5151_v41 = vpop.eup %5150  ;;  %v1095_v12 = vadd.f32 1.0, %v5149_v31 }
 0x413   :  { %v1101_v49 = vadd.f32 1.0, %v5151_v41  ;;  %v5153_v51 = vpop.eup %5152 }
 0x414   :  { %5156 = vrcp.f32 %v1095_v12  ;;  %v5155_v48 = vpop.eup %5154  ;;  %v1108_v63 = vadd.f32 1.0, %v5153_v51 }
 0x415   :  { %5158 = vrcp.f32 %v1101_v49 }
 0x416   :  { %5160 = vrcp.f32 %v1108_v63 }
 0x41e   :  { %v5157_v55 = vpop.eup %5156 }
 0x41f   :  { %v5159_v36 = vpop.eup %5158  ;;  %v1112_v62 = vmul.f32 %v5157_v55, %v5155_v48 }
 0x420   :  { %v1111_v7 = vmul.f32 %v5159_v36, %v5942_v53  ;;  %v5161_v59 = vpop.eup %5160 }
 0x422   :  { %v5988_v2 = vadd.f32 %v1112_v62, %v1111_v7 }
 0x424   :  { %5162 = vtanh.f32 %v5988_v2 }
 0x42e   :  { %v5163_v18 = vpop.eup %5162 }
 0x42f   :  { %v5991_v23 = vmul.f32 %v5163_v18, %v5161_v59 }
 0x431   :  { %1186 = vmatmul.mubr.f32.vlgmr.msra.gmra.mrb[8].mxu0 %v5991_v23  ;;  %1257 = vmatmul.mubr.f32.vlgmr.msra.gmra.mrb[8].mxu1 %v5991_v23 }
 0x432   :  { %4180 = vmatpush1.bf16.msra.mxu0 %v5464_v22  ;;  %4212 = vmatpush1.bf16.msra.mxu1 %v5473_v25 }
 0x433   :  { %4182 = vmatprep.subr.bf16.mxu0 %v5486_v29  ;;  %4214 = vmatprep.subr.bf16.mxu1 %v5502_v34 }
 0x434   :  { %1360 = vmatprep.mubr.f32.mxu0 %v5360_v3  ;;  %1431 = vmatprep.mubr.f32.mxu1 %v5360_v3 }
 0x436   :  { %4184 = vmatpush1.bf16.msra.mxu0 %v5504_v35  ;;  %4216 = vmatpush1.bf16.msra.mxu1 %v5514_v38 }
 0x437   :  { %4186 = vmatprep.subr.bf16.mxu0 %v5527_v42  ;;  %4218 = vmatprep.subr.bf16.mxu1 %v5543_v47 }
 0x43a   :  { %4188 = vmatpush1.bf16.msra.mxu0 %v5553_v50  ;;  %4220 = vmatpush1.bf16.msra.mxu1 %v5566_v54 }
 0x43b   :  { %4190 = vmatprep.subr.bf16.mxu0 %v5579_v58  ;;  %4222 = vmatprep.subr.bf16.mxu1 %v5589_v61 }
 0x43e   :  { %4192 = vmatpush1.bf16.msra.mxu0 %v5602_v1  ;;  %4224 = vmatpush1.bf16.msra.mxu1 %v5612_v5 }
 0x43f   :  { %4194 = vmatprep.subr.bf16.mxu0 %v5622_v8  ;;  %4226 = vmatprep.subr.bf16.mxu1 %v5632_v11 }
 0x442   :  { %4196 = vmatpush1.bf16.msra.mxu0 %v5645_v15  ;;  %4228 = vmatpush1.bf16.msra.mxu1 %v5655_v19 }
 0x443   :  { %4198 = vmatprep.subr.bf16.mxu0 %v5665_v24  ;;  %4230 = vmatprep.subr.bf16.mxu1 %v5675_v28 }
 0x446   :  { %4200 = vmatpush1.bf16.msra.mxu0 %v5688_v33  ;;  %4232 = vmatpush1.bf16.msra.mxu1 %v5698_v39 }
 0x447   :  { %4202 = vmatprep.subr.bf16.mxu0 %v5708_v43  ;;  %4234 = vmatprep.subr.bf16.mxu1 %v5718_v46 }
 0x44a   :  { %4204 = vmatpush1.bf16.msra.mxu0 %v5731_v52  ;;  %4236 = vmatpush1.bf16.msra.mxu1 %v5741_v56 }
 0x44b   :  { %4206 = vmatprep.subr.bf16.mxu0 %v5751_v60  ;;  %4238 = vmatprep.subr.bf16.mxu1 %v5761_v0 }
 0x44e   :  { %4208 = vmatpush1.bf16.msra.mxu0 %v5768_v4  ;;  %4240 = vmatpush1.bf16.msra.mxu1 %v5772_v6 }
 0x44f   :  { %4242 = vmatprep.subr.bf16.mxu0 %v5451_v17  ;;  %4274 = vmatprep.subr.bf16.mxu1 %v5462_v21 }
 0x504   :  { %v1187_v53 = vpop.f32.mrb[8].mxu0  ;;  %v1258_v26 = vpop.f32.mrb[8].mxu1 }
 0x505   :  { %v4977_v30 = vadd.f32 %v1187_v53, %v5830_v14  ;;  %v1189_v32 = vpop.f32.mrb[9].mxu0  ;;  %v1260_v31 = vpop.f32.mrb[9].mxu1  ;;  %v4993_v55 = vadd.f32 %v1258_v26, %v5847_v44 }
 0x506   :  { %v4978_v41 = vadd.f32 %v1189_v32, %v5834_v16  ;;  %v4994_v51 = vadd.f32 %v1260_v31, %v5841_v37 }
 0x507   :  { %v3760_v12 = vmul.f32 -1.442695, %v4977_v30 }
 0x508   :  { %v3761_v49 = vmul.f32 -1.442695, %v4978_v41  ;;  %v3762_v48 = vmul.f32 -1.442695, %v4994_v51 }
 0x509   :  { %5164 = vpow2.f32 %v3760_v12 }
 0x50a   :  { %5166 = vpow2.f32 %v3761_v49 }
 0x50b   :  { %5168 = vpow2.f32 %v3762_v48 }
 0x50c   :  { %5170 = vtanh.f32 %v4993_v55 }
 0x513   :  { %v5165_v36 = vpop.eup %5164 }
 0x514   :  { %v5167_v62 = vpop.eup %5166  ;;  %v1270_v63 = vadd.f32 1.0, %v5165_v36 }
 0x515   :  { %v1276_v7 = vadd.f32 1.0, %v5167_v62  ;;  %v5169_v59 = vpop.eup %5168 }
 0x516   :  { %5172 = vrcp.f32 %v1270_v63  ;;  %v5171_v18 = vpop.eup %5170  ;;  %v1283_v41 = vadd.f32 1.0, %v5169_v59 }
 0x517   :  { %5174 = vrcp.f32 %v1276_v7 }
 0x518   :  { %5176 = vrcp.f32 %v1283_v41 }
 0x520   :  { %v5173_v53 = vpop.eup %5172 }
 0x521   :  { %v5175_v30 = vpop.eup %5174  ;;  %v1287_v32 = vmul.f32 %v5173_v53, %v5171_v18 }
 0x522   :  { %v1286_v12 = vmul.f32 %v5175_v30, %v5988_v2  ;;  %v5177_v26 = vpop.eup %5176 }
 0x524   :  { %v6034_v31 = vadd.f32 %v1287_v32, %v1286_v12 }
 0x526   :  { %5178 = vtanh.f32 %v6034_v31 }
 0x530   :  { %v5179_v49 = vpop.eup %5178 }
 0x531   :  { %v6037_v51 = vmul.f32 %v5179_v49, %v5177_v26 }
 0x533   :  { %1361 = vmatmul.mubr.f32.vlgmr.msra.gmra.mrb[10].mxu0 %v6037_v51  ;;  %1432 = vmatmul.mubr.f32.vlgmr.msra.gmra.mrb[10].mxu1 %v6037_v51 }
 0x534   :  { %4244 = vmatpush1.bf16.msra.mxu0 %v5464_v22  ;;  %4276 = vmatpush1.bf16.msra.mxu1 %v5473_v25 }
 0x535   :  { %4246 = vmatprep.subr.bf16.mxu0 %v5486_v29  ;;  %4278 = vmatprep.subr.bf16.mxu1 %v5502_v34 }
 0x536   :  { %1535 = vmatprep.mubr.f32.mxu0 %v5360_v3  ;;  %1606 = vmatprep.mubr.f32.mxu1 %v5360_v3 }
 0x538   :  { %4248 = vmatpush1.bf16.msra.mxu0 %v5504_v35  ;;  %4280 = vmatpush1.bf16.msra.mxu1 %v5514_v38 }
 0x539   :  { %4250 = vmatprep.subr.bf16.mxu0 %v5527_v42  ;;  %4282 = vmatprep.subr.bf16.mxu1 %v5543_v47 }
 0x53c   :  { %4252 = vmatpush1.bf16.msra.mxu0 %v5553_v50  ;;  %4284 = vmatpush1.bf16.msra.mxu1 %v5566_v54 }
 0x53d   :  { %4254 = vmatprep.subr.bf16.mxu0 %v5579_v58  ;;  %4286 = vmatprep.subr.bf16.mxu1 %v5589_v61 }
 0x540   :  { %4256 = vmatpush1.bf16.msra.mxu0 %v5602_v1  ;;  %4288 = vmatpush1.bf16.msra.mxu1 %v5612_v5 }
 0x541   :  { %4258 = vmatprep.subr.bf16.mxu0 %v5622_v8  ;;  %4290 = vmatprep.subr.bf16.mxu1 %v5632_v11 }
 0x544   :  { %4260 = vmatpush1.bf16.msra.mxu0 %v5645_v15  ;;  %4292 = vmatpush1.bf16.msra.mxu1 %v5655_v19 }
 0x545   :  { %4262 = vmatprep.subr.bf16.mxu0 %v5665_v24  ;;  %4294 = vmatprep.subr.bf16.mxu1 %v5675_v28 }
 0x548   :  { %4264 = vmatpush1.bf16.msra.mxu0 %v5688_v33  ;;  %4296 = vmatpush1.bf16.msra.mxu1 %v5698_v39 }
 0x549   :  { %4266 = vmatprep.subr.bf16.mxu0 %v5708_v43  ;;  %4298 = vmatprep.subr.bf16.mxu1 %v5718_v46 }
 0x54c   :  { %4268 = vmatpush1.bf16.msra.mxu0 %v5731_v52  ;;  %4300 = vmatpush1.bf16.msra.mxu1 %v5741_v56 }
 0x54d   :  { %4270 = vmatprep.subr.bf16.mxu0 %v5751_v60  ;;  %4302 = vmatprep.subr.bf16.mxu1 %v5761_v0 }
 0x550   :  { %4272 = vmatpush1.bf16.msra.mxu0 %v5768_v4  ;;  %4304 = vmatpush1.bf16.msra.mxu1 %v5772_v6 }
 0x551   :  { %4306 = vmatprep.subr.bf16.mxu0 %v5451_v17  ;;  %4338 = vmatprep.subr.bf16.mxu1 %v5462_v21 }
 0x606   :  { %v1362_v2 = vpop.f32.mrb[10].mxu0  ;;  %v1433_v48 = vpop.f32.mrb[10].mxu1 }
 0x607   :  { %v4979_v55 = vadd.f32 %v1362_v2, %v5830_v14  ;;  %v1364_v36 = vpop.f32.mrb[11].mxu0  ;;  %v1435_v62 = vpop.f32.mrb[11].mxu1  ;;  %v4995_v30 = vadd.f32 %v1433_v48, %v5847_v44 }
 0x608   :  { %v4980_v63 = vadd.f32 %v1364_v36, %v5834_v16  ;;  %v4996_v18 = vadd.f32 %v1435_v62, %v5841_v37 }
 0x609   :  { %v3763_v7 = vmul.f32 -1.442695, %v4979_v55 }
 0x60a   :  { %v3764_v59 = vmul.f32 -1.442695, %v4980_v63  ;;  %v3765_v53 = vmul.f32 -1.442695, %v4996_v18  ;;  %v1827_v18 = vld [vmem:[%s7026_s4 + $0x10] sm:$0xff] }
 0x60b   :  { %5180 = vpow2.f32 %v3763_v7 }
 0x60c   :  { %5182 = vpow2.f32 %v3764_v59 }
 0x60d   :  { %5184 = vpow2.f32 %v3765_v53  ;;  %v1831_v53 = vld [vmem:[%s7026_s4 + $0x30] sm:$0xff] }
 0x60e   :  { %5186 = vtanh.f32 %v4995_v30  ;;  %v1834_v30 = vld [vmem:[%s7026_s4 + $0x48] sm:$0xff] }
 0x615   :  { %v5181_v17 = vpop.eup %5180 }
 0x616   :  { %v5183_v32 = vpop.eup %5182  ;;  %v1445_v21 = vadd.f32 1.0, %v5181_v17  ;;  %v1838_v17 = vld [vmem:[%s7026_s4 + $0x68] sm:$0xff] }
 0x617   :  { %v1451_v41 = vadd.f32 1.0, %v5183_v32  ;;  %v5185_v12 = vpop.eup %5184  ;;  %v1836_v32 = vld [vmem:[%s7026_s4 + $0x58] sm:$0xff] }
 0x618   :  { %5188 = vrcp.f32 %v1445_v21  ;;  %v5187_v26 = vpop.eup %5186  ;;  %v1458_v36 = vadd.f32 1.0, %v5185_v12  ;;  %v1840_v21 = vld [vmem:[%s7026_s4 + $0x78] sm:$0xff] }
 0x619   :  { %5190 = vrcp.f32 %v1451_v41 }
 0x61a   :  { %5192 = vrcp.f32 %v1458_v36 }
 0x622   :  { %v5189_v49 = vpop.eup %5188 }
 0x623   :  { %v5191_v2 = vpop.eup %5190  ;;  %v1462_v55 = vmul.f32 %v5189_v49, %v5187_v26  ;;  %v4403_v49 = vpack.c.bf16 %v1831_v53, %v1827_v18  ;;  %v1857_v18 = vld [vmem:[%s7026_s4 + $0x100] sm:$0xff] }
 0x624   :  { %v1461_v63 = vmul.f32 %v5191_v2, %v6034_v31  ;;  %v5193_v48 = vpop.eup %5192  ;;  %v1829_v31 = vld [vmem:[%s7026_s4 + $0x20] sm:$0xff] }
 0x625   :  { %v1833_v2 = vld [vmem:[%s7026_s4 + $0x40] sm:$0xff] }
 0x626   :  { %v6080_v62 = vadd.f32 %v1462_v55, %v1461_v63  ;;  %v1837_v55 = vld [vmem:[%s7026_s4 + $0x60] sm:$0xff]  ;;  %v4373_v63 = vpack.c.bf16 %v1838_v17, %v1834_v30 }
 0x627   :  { %v1861_v53 = vld [vmem:[%s7026_s4 + $0x120] sm:$0xff] }
 0x628   :  { %5194 = vtanh.f32 %v6080_v62 }
 0x632   :  { %v5195_v7 = vpop.eup %5194 }
 0x633   :  { %v6083_v59 = vmul.f32 %v5195_v7, %v5193_v48  ;;  %v1835_v48 = vld [vmem:[%s7026_s4 + $0x50] sm:$0xff] }
 0x634   :  { %v1839_v7 = vld [vmem:[%s7026_s4 + $0x70] sm:$0xff] }
 0x635   :  { %1536 = vmatmul.mubr.f32.vlgmr.msra.gmra.mrb[12].mxu0 %v6083_v59  ;;  %1607 = vmatmul.mubr.f32.vlgmr.msra.gmra.mrb[12].mxu1 %v6083_v59 }
 0x636   :  { %4308 = vmatpush1.bf16.msra.mxu0 %v5464_v22  ;;  %4340 = vmatpush1.bf16.msra.mxu1 %v5473_v25  ;;  %v1826_v22 = vld [vmem:[%s7026_s4 + $0x8] sm:$0xff] }
 0x637   :  { %4310 = vmatprep.subr.bf16.mxu0 %v5486_v29  ;;  %4342 = vmatprep.subr.bf16.mxu1 %v5502_v34  ;;  %v1830_v25 = vld [vmem:[%s7026_s4 + $0x28] sm:$0xff]  ;;  %v1828_v29 = vld [vmem:[%s7026_s4 + $0x18] sm:$0xff] }
 0x638   :  { %1710 = vmatprep.mubr.f32.mxu0 %v5360_v3  ;;  %1781 = vmatprep.mubr.f32.mxu1 %v5360_v3  ;;  %v4369_v34 = vpack.c.bf16 %v1830_v25, %v1826_v22  ;;  %v1842_v22 = vld [vmem:[%s7026_s4 + $0x88] sm:$0xff] }
 0x639   :  { %v1846_v25 = vld [vmem:[%s7026_s4 + $0xa8] sm:$0xff] }
 0x63a   :  { %4312 = vmatpush1.bf16.msra.mxu0 %v5504_v35  ;;  %4344 = vmatpush1.bf16.msra.mxu1 %v5514_v38  ;;  %v1832_v35 = vld [vmem:[%s7026_s4 + $0x38] sm:$0xff] }
 0x63b   :  { %4314 = vmatprep.subr.bf16.mxu0 %v5527_v42  ;;  %4346 = vmatprep.subr.bf16.mxu1 %v5543_v47  ;;  %v4401_v38 = vpack.c.bf16 %v1832_v35, %v1828_v29  ;;  %v1844_v29 = vld [vmem:[%s7026_s4 + $0x98] sm:$0xff]  ;;  %v4375_v35 = vpack.c.bf16 %v1837_v55, %v1833_v2  ;;  %v4387_v2 = vpack.c.bf16 %v1861_v53, %v1857_v18  ;;  %v2171_v18 = vld [vmem:[%s7027_s5 + $0x10] sm:$0xff] }
 0x63c   :  { %v2175_v53 = vld [vmem:[%s7027_s5 + $0x30] sm:$0xff] }
 0x63e   :  { %4316 = vmatpush1.bf16.msra.mxu0 %v5553_v50  ;;  %4348 = vmatpush1.bf16.msra.mxu1 %v5566_v54 }
 0x63f   :  { %4318 = vmatprep.subr.bf16.mxu0 %v5579_v58  ;;  %4350 = vmatprep.subr.bf16.mxu1 %v5589_v61 }
 0x642   :  { %4320 = vmatpush1.bf16.msra.mxu0 %v5602_v1  ;;  %4352 = vmatpush1.bf16.msra.mxu1 %v5612_v5 }
 0x643   :  { %4322 = vmatprep.subr.bf16.mxu0 %v5622_v8  ;;  %4354 = vmatprep.subr.bf16.mxu1 %v5632_v11 }
 0x646   :  { %4324 = vmatpush1.bf16.msra.mxu0 %v5645_v15  ;;  %4356 = vmatpush1.bf16.msra.mxu1 %v5655_v19 }
 0x647   :  { %4326 = vmatprep.subr.bf16.mxu0 %v5665_v24  ;;  %4358 = vmatprep.subr.bf16.mxu1 %v5675_v28 }
 0x64a   :  { %4328 = vmatpush1.bf16.msra.mxu0 %v5688_v33  ;;  %4360 = vmatpush1.bf16.msra.mxu1 %v5698_v39 }
 0x64b   :  { %4330 = vmatprep.subr.bf16.mxu0 %v5708_v43  ;;  %4362 = vmatprep.subr.bf16.mxu1 %v5718_v46 }
 0x64e   :  { %4332 = vmatpush1.bf16.msra.mxu0 %v5731_v52  ;;  %4364 = vmatpush1.bf16.msra.mxu1 %v5741_v56 }
 0x64f   :  { %4334 = vmatprep.subr.bf16.mxu0 %v5751_v60  ;;  %4366 = vmatprep.subr.bf16.mxu1 %v5761_v0 }
 0x652   :  { %4336 = vmatpush1.bf16.msra.mxu0 %v5768_v4  ;;  %4368 = vmatpush1.bf16.msra.mxu1 %v5772_v6  ;;  %v1825_v6 = vld [vmem:[%s7026_s4] sm:$0xff] }
 0x653   :  { %4370 = vmatprep.subr.bf16.mxu0 %v4369_v34  ;;  %4402 = vmatprep.subr.bf16.mxu1 %v4401_v38  ;;  %v4371_v26 = vpack.c.bf16 %v1829_v31, %v1825_v6  ;;  %v1848_v34 = vld [vmem:[%s7026_s4 + $0xb8] sm:$0xff]  ;;  %v4407_v38 = vpack.c.bf16 %v1839_v7, %v1835_v48 }
 0x708   :  { %v1537_v42 = vpop.f32.mrb[12].mxu0  ;;  %v1608_v47 = vpop.f32.mrb[12].mxu1 }
 0x709   :  { %v4981_v50 = vadd.f32 %v1537_v42, %v5830_v14  ;;  %v1539_v54 = vpop.f32.mrb[13].mxu0  ;;  %v1610_v58 = vpop.f32.mrb[13].mxu1  ;;  %v4997_v15 = vadd.f32 %v1608_v47, %v5847_v44  ;;  %v1841_v42 = vld [vmem:[%s7026_s4 + $0x80] sm:$0xff] }
 0x70a   :  { %v4982_v61 = vadd.f32 %v1539_v54, %v5834_v16  ;;  %v4998_v8 = vadd.f32 %v1610_v58, %v5841_v37  ;;  %v1845_v47 = vld [vmem:[%s7026_s4 + $0xa0] sm:$0xff]  ;;  %v4409_v54 = vpack.c.bf16 %v1848_v34, %v1844_v29  ;;  %v1843_v58 = vld [vmem:[%s7026_s4 + $0x90] sm:$0xff]  ;;  %v1874_v29 = vld [vmem:[%s7026_s4 + $0x188] sm:$0xff] }
 0x70b   :  { %v3766_v1 = vmul.f32 -1.442695, %v4981_v50  ;;  %v4377_v50 = vpack.c.bf16 %v1846_v25, %v1842_v22  ;;  %v1867_v22 = vld [vmem:[%s7026_s4 + $0x150] sm:$0xff]  ;;  %v1878_v34 = vld [vmem:[%s7026_s4 + $0x1a8] sm:$0xff] }
 0x70c   :  { %v3767_v5 = vmul.f32 -1.442695, %v4982_v61  ;;  %v3768_v11 = vmul.f32 -1.442695, %v4998_v8  ;;  %v1847_v61 = vld [vmem:[%s7026_s4 + $0xb0] sm:$0xff]  ;;  %v1852_v8 = vld [vmem:[%s7026_s4 + $0xd8] sm:$0xff] }
 0x70d   :  { %5196 = vpow2.f32 %v3766_v1  ;;  %v1850_v1 = vld [vmem:[%s7026_s4 + $0xc8] sm:$0xff]  ;;  %v1871_v25 = vld [vmem:[%s7026_s4 + $0x170] sm:$0xff] }
 0x70e   :  { %5198 = vpow2.f32 %v3767_v5  ;;  %v1854_v5 = vld [vmem:[%s7026_s4 + $0xe8] sm:$0xff] }
 0x70f   :  { %5200 = vpow2.f32 %v3768_v11  ;;  %v1856_v11 = vld [vmem:[%s7026_s4 + $0xf8] sm:$0xff] }
 0x710   :  { %5202 = vtanh.f32 %v4997_v15  ;;  %v4379_v15 = vpack.c.bf16 %v1845_v47, %v1841_v42  ;;  %v4423_v47 = vpack.c.bf16 %v1871_v25, %v1867_v22  ;;  %v2190_v22 = vld [vmem:[%s7027_s5 + $0xa8] sm:$0xff]  ;;  %v2188_v25 = vld [vmem:[%s7027_s5 + $0x98] sm:$0xff] }
 0x717   :  { %v5197_v19 = vpop.eup %5196 }
 0x718   :  { %v5199_v24 = vpop.eup %5198  ;;  %v1620_v28 = vadd.f32 1.0, %v5197_v19  ;;  %v4411_v19 = vpack.c.bf16 %v1847_v61, %v1843_v58  ;;  %v4393_v58 = vpack.c.bf16 %v1878_v34, %v1874_v29  ;;  %v2192_v34 = vld [vmem:[%s7027_s5 + $0xb8] sm:$0xff] }
 0x719   :  { %v1626_v33 = vadd.f32 1.0, %v5199_v24  ;;  %v5201_v39 = vpop.eup %5200  ;;  %v1849_v24 = vld [vmem:[%s7026_s4 + $0xc0] sm:$0xff] }
 0x71a   :  { %5204 = vrcp.f32 %v1620_v28  ;;  %v5203_v43 = vpop.eup %5202  ;;  %v1633_v60 = vadd.f32 1.0, %v5201_v39  ;;  %v1853_v28 = vld [vmem:[%s7026_s4 + $0xe0] sm:$0xff]  ;;  %v4413_v39 = vpack.c.bf16 %v1856_v11, %v1852_v8  ;;  %v1882_v8 = vld [vmem:[%s7026_s4 + $0x1c8] sm:$0xff] }
 0x71b   :  { %5206 = vrcp.f32 %v1626_v33  ;;  %v4381_v33 = vpack.c.bf16 %v1854_v5, %v1850_v1  ;;  %v4383_v6 = vpack.c.bf16 %v1853_v28, %v1849_v24  ;;  %v1875_v1 = vld [vmem:[%s7026_s4 + $0x190] sm:$0xff]  ;;  %v1886_v11 = vld [vmem:[%s7026_s4 + $0x1e8] sm:$0xff] }
 0x71c   :  { %5208 = vrcp.f32 %v1633_v60  ;;  %v1860_v60 = vld [vmem:[%s7026_s4 + $0x118] sm:$0xff]  ;;  %v1879_v5 = vld [vmem:[%s7026_s4 + $0x1b0] sm:$0xff] }
 0x71d   :  { %v4427_v28 = vpack.c.bf16 %v1879_v5, %v1875_v1  ;;  %v2198_v1 = vld [vmem:[%s7027_s5 + $0xe8] sm:$0xff]  ;;  %v2196_v5 = vld [vmem:[%s7027_s5 + $0xd8] sm:$0xff] }
 0x724   :  { %v5205_v46 = vpop.eup %5204 }
 0x725   :  { %v5207_v52 = vpop.eup %5206  ;;  %v1637_v56 = vmul.f32 %v5205_v46, %v5203_v43  ;;  %v1851_v43 = vld [vmem:[%s7026_s4 + $0xd0] sm:$0xff] }
 0x726   :  { %v1636_v0 = vmul.f32 %v5207_v52, %v6080_v62  ;;  %v5209_v41 = vpop.eup %5208  ;;  %v4405_v62 = vpack.c.bf16 %v1840_v21, %v1836_v32  ;;  %v1855_v46 = vld [vmem:[%s7026_s4 + $0xf0] sm:$0xff]  ;;  %v1858_v52 = vld [vmem:[%s7026_s4 + $0x108] sm:$0xff] }
 0x727   :  { %v4415_v31 = vpack.c.bf16 %v1855_v46, %v1851_v43  ;;  %v1859_v32 = vld [vmem:[%s7026_s4 + $0x110] sm:$0xff]  ;;  %v1885_v46 = vld [vmem:[%s7026_s4 + $0x1e0] sm:$0xff] }
 0x728   :  { %v6136_v4 = vadd.f32 %v1637_v56, %v1636_v0  ;;  %v1862_v56 = vld [vmem:[%s7026_s4 + $0x128] sm:$0xff]  ;;  %v1864_v0 = vld [vmem:[%s7026_s4 + $0x138] sm:$0xff]  ;;  %v1863_v21 = vld [vmem:[%s7026_s4 + $0x130] sm:$0xff] }
 0x729   :  { %v4385_v30 = vpack.c.bf16 %v1862_v56, %v1858_v52  ;;  %v4417_v17 = vpack.c.bf16 %v1864_v0, %v1860_v60  ;;  %v4419_v55 = vpack.c.bf16 %v1863_v21, %v1859_v32  ;;  %v1883_v52 = vld [vmem:[%s7026_s4 + $0x1d0] sm:$0xff]  ;;  %v2182_v32 = vld [vmem:[%s7027_s5 + $0x68] sm:$0xff]  ;;  %v2180_v21 = vld [vmem:[%s7027_s5 + $0x58] sm:$0xff] }
 0x72a   :  { %5210 = vtanh.f32 %v6136_v4  ;;  %v1887_v56 = vld [vmem:[%s7026_s4 + $0x1f0] sm:$0xff] }
 0x72b   :  { %v4431_v0 = vpack.c.bf16 %v1887_v56, %v1883_v52  ;;  %v2206_v52 = vld [vmem:[%s7027_s5 + $0x128] sm:$0xff]  ;;  %v2204_v56 = vld [vmem:[%s7027_s5 + $0x118] sm:$0xff] }
 0x734   :  { %v5211_v12 = vpop.eup %5210 }
 0x735   :  { %v6169_v36 = vmul.f32 %v5211_v12, %v5209_v41  ;;  %v1866_v41 = vld [vmem:[%s7026_s4 + $0x148] sm:$0xff] }
 0x736   :  { %v1870_v12 = vld [vmem:[%s7026_s4 + $0x168] sm:$0xff] }
 0x737   :  { %1711 = vmatmul.mubr.f32.vlgmr.msra.gmra.mrb[14].mxu0 %v6169_v36  ;;  %1782 = vmatmul.mubr.f32.vlgmr.msra.gmra.mrb[14].mxu1 %v6169_v36  ;;  %v4389_v48 = vpack.c.bf16 %v1870_v12, %v1866_v41  ;;  %v2184_v12 = vld [vmem:[%s7027_s5 + $0x78] sm:$0xff] }
 0x738   :  { %4372 = vmatpush1.bf16.msra.mxu0 %v4371_v26  ;;  %4404 = vmatpush1.bf16.msra.mxu1 %v4403_v49  ;;  %v1868_v26 = vld [vmem:[%s7026_s4 + $0x158] sm:$0xff] }
 0x739   :  { %4374 = vmatprep.subr.bf16.mxu0 %v4373_v63  ;;  %4406 = vmatprep.subr.bf16.mxu1 %v4405_v62  ;;  %v1872_v49 = vld [vmem:[%s7026_s4 + $0x178] sm:$0xff]  ;;  %v1865_v63 = vld [vmem:[%s7026_s4 + $0x140] sm:$0xff] }
 0x73a   :  { %1975 = vmatprep.mubr.f32.mxu0 %v5360_v3  ;;  %2088 = vmatprep.mubr.f32.mxu1 %v5360_v3  ;;  %v1869_v62 = vld [vmem:[%s7026_s4 + $0x160] sm:$0xff]  ;;  %v4421_v7 = vpack.c.bf16 %v1872_v49, %v1868_v26 }
 0x73b   :  { %v4391_v42 = vpack.c.bf16 %v1869_v62, %v1865_v63  ;;  %v2177_v26 = vld [vmem:[%s7027_s5 + $0x40] sm:$0xff]  ;;  %v2179_v63 = vld [vmem:[%s7027_s5 + $0x50] sm:$0xff] }
 0x73c   :  { %4376 = vmatpush1.bf16.msra.mxu0 %v4375_v35  ;;  %4408 = vmatpush1.bf16.msra.mxu1 %v4407_v38  ;;  %v1876_v35 = vld [vmem:[%s7026_s4 + $0x198] sm:$0xff]  ;;  %v2181_v49 = vld [vmem:[%s7027_s5 + $0x60] sm:$0xff]  ;;  %v2183_v62 = vld [vmem:[%s7027_s5 + $0x70] sm:$0xff] }
 0x73d   :  { %4378 = vmatprep.subr.bf16.mxu0 %v4377_v50  ;;  %4410 = vmatprep.subr.bf16.mxu1 %v4409_v54  ;;  %v1880_v38 = vld [vmem:[%s7026_s4 + $0x1b8] sm:$0xff]  ;;  %v1873_v50 = vld [vmem:[%s7026_s4 + $0x180] sm:$0xff] }
 0x73e   :  { %v1877_v54 = vld [vmem:[%s7026_s4 + $0x1a0] sm:$0xff]  ;;  %v4425_v61 = vpack.c.bf16 %v1880_v38, %v1876_v35 }
 0x73f   :  { %v4395_v24 = vpack.c.bf16 %v1877_v54, %v1873_v50  ;;  %v2185_v35 = vld [vmem:[%s7027_s5 + $0x80] sm:$0xff]  ;;  %v2187_v50 = vld [vmem:[%s7027_s5 + $0x90] sm:$0xff] }
 0x740   :  { %4380 = vmatpush1.bf16.msra.mxu0 %v4379_v15  ;;  %4412 = vmatpush1.bf16.msra.mxu1 %v4411_v19  ;;  %v1884_v15 = vld [vmem:[%s7026_s4 + $0x1d8] sm:$0xff]  ;;  %v2189_v38 = vld [vmem:[%s7027_s5 + $0xa0] sm:$0xff]  ;;  %v2191_v54 = vld [vmem:[%s7027_s5 + $0xb0] sm:$0xff] }
 0x741   :  { %4382 = vmatprep.subr.bf16.mxu0 %v4381_v33  ;;  %4414 = vmatprep.subr.bf16.mxu1 %v4413_v39  ;;  %v1888_v19 = vld [vmem:[%s7026_s4 + $0x1f8] sm:$0xff]  ;;  %v1881_v33 = vld [vmem:[%s7026_s4 + $0x1c0] sm:$0xff]  ;;  %v4397_v39 = vpack.c.bf16 %v1886_v11, %v1882_v8 }
 0x742   :  { %v4429_v43 = vpack.c.bf16 %v1888_v19, %v1884_v15  ;;  %v4399_v60 = vpack.c.bf16 %v1885_v46, %v1881_v33  ;;  %v2200_v11 = vld [vmem:[%s7027_s5 + $0xf8] sm:$0xff]  ;;  %v2193_v15 = vld [vmem:[%s7027_s5 + $0xc0] sm:$0xff]  ;;  %v2195_v33 = vld [vmem:[%s7027_s5 + $0xd0] sm:$0xff] }
 0x743   :  { %v2197_v19 = vld [vmem:[%s7027_s5 + $0xe0] sm:$0xff] }
 0x744   :  { %4384 = vmatpush1.bf16.msra.mxu0 %v4383_v6  ;;  %4416 = vmatpush1.bf16.msra.mxu1 %v4415_v31 }
 0x745   :  { %4386 = vmatprep.subr.bf16.mxu0 %v4385_v30  ;;  %4418 = vmatprep.subr.bf16.mxu1 %v4417_v17  ;;  %v6384_v30 = vpack.c.bf16 %v2175_v53, %v2171_v18  ;;  %v2178_v17 = vld [vmem:[%s7027_s5 + $0x48] sm:$0xff] }
 0x746   :  { %v6398_v41 = vpack.c.bf16 %v2182_v32, %v2178_v17  ;;  %v2210_v18 = vld [vmem:[%s7027_s5 + $0x148] sm:$0xff] }
 0x747   :  { %v2214_v53 = vld [vmem:[%s7027_s5 + $0x168] sm:$0xff] }
 0x748   :  { %4388 = vmatpush1.bf16.msra.mxu0 %v4387_v2  ;;  %4420 = vmatpush1.bf16.msra.mxu1 %v4419_v55  ;;  %v6409_v2 = vpack.c.bf16 %v2184_v12, %v2180_v21  ;;  %v6411_v55 = vpack.c.bf16 %v2181_v49, %v2177_v26  ;;  %v6537_v32 = vpack.c.bf16 %v2214_v53, %v2210_v18  ;;  %v2212_v21 = vld [vmem:[%s7027_s5 + $0x158] sm:$0xff]  ;;  %v2209_v26 = vld [vmem:[%s7027_s5 + $0x140] sm:$0xff]  ;;  %v2227_v18 = vld [vmem:[%s7027_s5 + $0x1d0] sm:$0xff] }
 0x749   :  { %4390 = vmatprep.subr.bf16.mxu0 %v4389_v48  ;;  %4422 = vmatprep.subr.bf16.mxu1 %v4421_v7  ;;  %v6420_v48 = vpack.c.bf16 %v2183_v62, %v2179_v63  ;;  %v2186_v7 = vld [vmem:[%s7027_s5 + $0x88] sm:$0xff]  ;;  %v2216_v12 = vld [vmem:[%s7027_s5 + $0x178] sm:$0xff]  ;;  %v2213_v63 = vld [vmem:[%s7027_s5 + $0x160] sm:$0xff] }
 0x74a   :  { %v6434_v29 = vpack.c.bf16 %v2190_v22, %v2186_v7  ;;  %v6548_v49 = vpack.c.bf16 %v2216_v12, %v2212_v21  ;;  %v2211_v62 = vld [vmem:[%s7027_s5 + $0x150] sm:$0xff]  ;;  %v6560_v22 = vpack.c.bf16 %v2213_v63, %v2209_v26 }
 0x74b   :  { %v2215_v7 = vld [vmem:[%s7027_s5 + $0x170] sm:$0xff] }
 0x74c   :  { %4392 = vmatpush1.bf16.msra.mxu0 %v4391_v42  ;;  %4424 = vmatpush1.bf16.msra.mxu1 %v4423_v47  ;;  %v6445_v42 = vpack.c.bf16 %v2192_v34, %v2188_v25  ;;  %v6447_v47 = vpack.c.bf16 %v2189_v38, %v2185_v35  ;;  %v2218_v25 = vld [vmem:[%s7027_s5 + $0x188] sm:$0xff]  ;;  %v2220_v35 = vld [vmem:[%s7027_s5 + $0x198] sm:$0xff]  ;;  %v6573_v38 = vpack.c.bf16 %v2215_v7, %v2211_v62  ;;  %v2231_v53 = vld [vmem:[%s7027_s5 + $0x1f0] sm:$0xff] }
 0x74d   :  { %4394 = vmatprep.subr.bf16.mxu0 %v4393_v58  ;;  %4426 = vmatprep.subr.bf16.mxu1 %v4425_v61  ;;  %v6456_v58 = vpack.c.bf16 %v2191_v54, %v2187_v50  ;;  %v2194_v61 = vld [vmem:[%s7027_s5 + $0xc8] sm:$0xff]  ;;  %v2224_v54 = vld [vmem:[%s7027_s5 + $0x1b8] sm:$0xff]  ;;  %v6636_v21 = vpack.c.bf16 %v2231_v53, %v2227_v18 }
 0x74e   :  { %v6470_v8 = vpack.c.bf16 %v2198_v1, %v2194_v61  ;;  %v2222_v34 = vld [vmem:[%s7027_s5 + $0x1a8] sm:$0xff]  ;;  %v2217_v61 = vld [vmem:[%s7027_s5 + $0x180] sm:$0xff] }
 0x74f   :  { %v6575_v50 = vpack.c.bf16 %v2222_v34, %v2218_v25  ;;  %v2221_v1 = vld [vmem:[%s7027_s5 + $0x1a0] sm:$0xff] }
 0x750   :  { %4396 = vmatpush1.bf16.msra.mxu0 %v4395_v24  ;;  %4428 = vmatpush1.bf16.msra.mxu1 %v4427_v28  ;;  %v6481_v24 = vpack.c.bf16 %v2200_v11, %v2196_v5  ;;  %v6483_v28 = vpack.c.bf16 %v2197_v19, %v2193_v15  ;;  %v6587_v5 = vpack.c.bf16 %v2224_v54, %v2220_v35  ;;  %v2219_v11 = vld [vmem:[%s7027_s5 + $0x190] sm:$0xff] }
 0x751   :  { %4398 = vmatprep.subr.bf16.mxu0 %v4397_v39  ;;  %4430 = vmatprep.subr.bf16.mxu1 %v4429_v43  ;;  %v2199_v39 = vld [vmem:[%s7027_s5 + $0xf0] sm:$0xff]  ;;  %v2202_v43 = vld [vmem:[%s7027_s5 + $0x108] sm:$0xff]  ;;  %v6596_v19 = vpack.c.bf16 %v2221_v1, %v2217_v61 }
 0x752   :  { %v6495_v46 = vpack.c.bf16 %v2199_v39, %v2195_v33  ;;  %v2223_v15 = vld [vmem:[%s7027_s5 + $0x1b0] sm:$0xff]  ;;  %v2226_v39 = vld [vmem:[%s7027_s5 + $0x1c8] sm:$0xff] }
 0x753   :  { %v6600_v33 = vpack.c.bf16 %v2223_v15, %v2219_v11 }
 0x754   :  { %4400 = vmatpush1.bf16.msra.mxu0 %v4399_v60  ;;  %4432 = vmatpush1.bf16.msra.mxu1 %v4431_v0  ;;  %v2208_v60 = vld [vmem:[%s7027_s5 + $0x138] sm:$0xff]  ;;  %v6508_v0 = vpack.c.bf16 %v2206_v52, %v2202_v43  ;;  %v2230_v43 = vld [vmem:[%s7027_s5 + $0x1e8] sm:$0xff] }
 0x755   :  { %v2228_v52 = vld [vmem:[%s7027_s5 + $0x1d8] sm:$0xff] }
 0x757   :  { %1976 = vmatmul.mubr.f32.vlgmr.msra.gmra.mrb[16].mxu0 %v5853_v27  ;;  %2089 = vmatmul.mubr.f32.vlgmr.msra.gmra.mrb[16].mxu1 %v5853_v27  ;;  %v2170_v27 = vld [vmem:[%s7027_s5 + $0x8] sm:$0xff] }
 0x758   :  { %1981 = vmatprep.mubr.f32.mxu0 %v5360_v3  ;;  %2094 = vmatprep.mubr.f32.mxu1 %v5360_v3 }
 0x75b   :  { %1982 = vmatmul.mubr.f32.gmra.mrb[18].mxu0 %v5899_v45  ;;  %2095 = vmatmul.mubr.f32.gmra.mrb[18].mxu1 %v5899_v45  ;;  %v2174_v45 = vld [vmem:[%s7027_s5 + $0x28] sm:$0xff] }
 0x75c   :  { %1987 = vmatprep.mubr.f32.mxu0 %v5360_v3  ;;  %2100 = vmatprep.mubr.f32.mxu1 %v5360_v3 }
 0x75f   :  { %1988 = vmatmul.mubr.f32.gmra.mrb[20].mxu0 %v5945_v57  ;;  %2101 = vmatmul.mubr.f32.gmra.mrb[20].mxu1 %v5945_v57  ;;  %v2172_v57 = vld [vmem:[%s7027_s5 + $0x18] sm:$0xff] }
 0x760   :  { %1993 = vmatprep.mubr.f32.mxu0 %v5360_v3  ;;  %2106 = vmatprep.mubr.f32.mxu1 %v5360_v3 }
 0x763   :  { %1994 = vmatmul.mubr.f32.gmra.mrb[22].mxu0 %v5991_v23  ;;  %2107 = vmatmul.mubr.f32.gmra.mrb[22].mxu1 %v5991_v23  ;;  %v6362_v23 = vpack.c.bf16 %v2174_v45, %v2170_v27  ;;  %v6510_v27 = vpack.c.bf16 %v2208_v60, %v2204_v56  ;;  %v2201_v45 = vld [vmem:[%s7027_s5 + $0x100] sm:$0xff]  ;;  %v6614_v56 = vpack.c.bf16 %v2230_v43, %v2226_v39  ;;  %v2232_v60 = vld [vmem:[%s7027_s5 + $0x1f8] sm:$0xff] }
 0x764   :  { %1999 = vmatprep.mubr.f32.mxu0 %v5360_v3  ;;  %2112 = vmatprep.mubr.f32.mxu1 %v5360_v3 }
 0x765   :  { %4434 = vmatprep.subr.bf16.mxu0 %v6362_v23 }
 0x767   :  { %2000 = vmatmul.mubr.f32.gmra.mrb[24].mxu0 %v6037_v51  ;;  %2113 = vmatmul.mubr.f32.gmra.mrb[24].mxu1 %v6037_v51  ;;  %v2176_v51 = vld [vmem:[%s7027_s5 + $0x38] sm:$0xff] }
 0x768   :  { %2005 = vmatprep.mubr.f32.mxu0 %v5360_v3  ;;  %2118 = vmatprep.mubr.f32.mxu1 %v5360_v3  ;;  %v6373_v6 = vpack.c.bf16 %v2176_v51, %v2172_v57  ;;  %v2205_v57 = vld [vmem:[%s7027_s5 + $0x120] sm:$0xff]  ;;  %v2203_v51 = vld [vmem:[%s7027_s5 + $0x110] sm:$0xff] }
 0x76a   :  { %4466 = vmatprep.subr.bf16.mxu1 %v6373_v6 }
 0x76b   :  { %2006 = vmatmul.mubr.f32.gmra.mrb[26].mxu0 %v6083_v59  ;;  %2119 = vmatmul.mubr.f32.gmra.mrb[26].mxu1 %v6083_v59  ;;  %v2169_v59 = vld [vmem:[%s7027_s5] sm:$0xff] }
 0x76c   :  { %2011 = vmatprep.mubr.f32.mxu0 %v5360_v3  ;;  %2124 = vmatprep.mubr.f32.mxu1 %v5360_v3 }
 0x76d   :  { %4468 = vmatpush1.bf16.msra.mxu1 %v6384_v30 }
 0x76e   :  { %4470 = vmatprep.subr.bf16.mxu1 %v6409_v2 }
 0x76f   :  { %2012 = vmatmul.mubr.f32.gmra.mrb[28].mxu0 %v6169_v36  ;;  %2125 = vmatmul.mubr.f32.gmra.mrb[28].mxu1 %v6169_v36  ;;  %v2173_v36 = vld [vmem:[%s7027_s5 + $0x20] sm:$0xff] }
 0x770   :  { %2017 = vmatprep.mubr.f32.mxu0 %v5360_v3  ;;  %2130 = vmatprep.mubr.f32.mxu1 %v5360_v3  ;;  %v6375_v31 = vpack.c.bf16 %v2173_v36, %v2169_v59  ;;  %v6522_v59 = vpack.c.bf16 %v2205_v57, %v2201_v45  ;;  %v2207_v36 = vld [vmem:[%s7027_s5 + $0x130] sm:$0xff]  ;;  %v2225_v45 = vld [vmem:[%s7027_s5 + $0x1c0] sm:$0xff] }
 0x771   :  { %4472 = vmatpush1.bf16.msra.mxu1 %v6420_v48  ;;  %v6535_v17 = vpack.c.bf16 %v2207_v36, %v2203_v51  ;;  %v2229_v57 = vld [vmem:[%s7027_s5 + $0x1e0] sm:$0xff]  ;;  %v6625_v51 = vpack.c.bf16 %v2232_v60, %v2228_v52 }
 0x772   :  { %4436 = vmatpush1.bf16.msra.mxu0 %v6375_v31  ;;  %4474 = vmatprep.subr.bf16.mxu1 %v6445_v42  ;;  %v6627_v36 = vpack.c.bf16 %v2229_v57, %v2225_v45 }
 0x773   :  { %4438 = vmatprep.subr.bf16.mxu0 %v6398_v41 }
 0x775   :  { %4476 = vmatpush1.bf16.msra.mxu1 %v6456_v58 }
 0x776   :  { %4440 = vmatpush1.bf16.msra.mxu0 %v6411_v55  ;;  %4478 = vmatprep.subr.bf16.mxu1 %v6481_v24 }
 0x777   :  { %4442 = vmatprep.subr.bf16.mxu0 %v6434_v29 }
 0x779   :  { %4480 = vmatpush1.bf16.msra.mxu1 %v6495_v46 }
 0x77a   :  { %4444 = vmatpush1.bf16.msra.mxu0 %v6447_v47  ;;  %4482 = vmatprep.subr.bf16.mxu1 %v6510_v27 }
 0x77b   :  { %4446 = vmatprep.subr.bf16.mxu0 %v6470_v8 }
 0x77d   :  { %4484 = vmatpush1.bf16.msra.mxu1 %v6535_v17 }
 0x77e   :  { %4448 = vmatpush1.bf16.msra.mxu0 %v6483_v28  ;;  %4486 = vmatprep.subr.bf16.mxu1 %v6548_v49 }
 0x77f   :  { %4450 = vmatprep.subr.bf16.mxu0 %v6508_v0 }
 0x781   :  { %4488 = vmatpush1.bf16.msra.mxu1 %v6573_v38 }
 0x782   :  { %4452 = vmatpush1.bf16.msra.mxu0 %v6522_v59  ;;  %4490 = vmatprep.subr.bf16.mxu1 %v6587_v5 }
 0x783   :  { %4454 = vmatprep.subr.bf16.mxu0 %v6537_v32 }
 0x785   :  { %4492 = vmatpush1.bf16.msra.mxu1 %v6600_v33 }
 0x786   :  { %4456 = vmatpush1.bf16.msra.mxu0 %v6560_v22  ;;  %4494 = vmatprep.subr.bf16.mxu1 %v6625_v51 }
 0x787   :  { %4458 = vmatprep.subr.bf16.mxu0 %v6575_v50 }
 0x789   :  { %4496 = vmatpush1.bf16.msra.mxu1 %v6636_v21 }
 0x78a   :  { %4460 = vmatpush1.bf16.msra.mxu0 %v6596_v19  ;;  %4530 = vmatprep.subr.bf16.mxu1 %v6373_v6 }
 0x78b   :  { %4462 = vmatprep.subr.bf16.mxu0 %v6614_v56 }
 0x78e   :  { %4464 = vmatpush1.bf16.msra.mxu0 %v6627_v36 }
 0x78f   :  { %4498 = vmatprep.subr.bf16.mxu0 %v6362_v23 }
 0x80a   :  { %v1712_v12 = vpop.f32.mrb[14].mxu0  ;;  %v1783_v26 = vpop.f32.mrb[14].mxu1 }
 0x80b   :  { %v4983_v63 = vadd.f32 %v1712_v12, %v5830_v14  ;;  %v1714_v62 = vpop.f32.mrb[15].mxu0  ;;  %v1785_v7 = vpop.f32.mrb[15].mxu1  ;;  %v4999_v1 = vadd.f32 %v1783_v26, %v5847_v44 }
 0x80c   :  { %v4984_v25 = vadd.f32 %v1714_v62, %v5834_v16  ;;  %v5000_v54 = vadd.f32 %v1785_v7, %v5841_v37 }
 0x80d   :  { %v3769_v34 = vmul.f32 -1.442695, %v4983_v63 }
 0x80e   :  { %v3770_v35 = vmul.f32 -1.442695, %v4984_v25  ;;  %v3771_v61 = vmul.f32 -1.442695, %v5000_v54 }
 0x80f   :  { %5212 = vpow2.f32 %v3769_v34 }
 0x810   :  { %5214 = vpow2.f32 %v3770_v35 }
 0x811   :  { %5216 = vpow2.f32 %v3771_v61 }
 0x812   :  { %5218 = vtanh.f32 %v4999_v1 }
 0x819   :  { %v5213_v11 = vpop.eup %5212 }
 0x81a   :  { %v5215_v15 = vpop.eup %5214  ;;  %v1795_v39 = vadd.f32 1.0, %v5213_v11 }
 0x81b   :  { %v1801_v43 = vadd.f32 1.0, %v5215_v15  ;;  %v5217_v14 = vpop.eup %5216 }
 0x81c   :  { %5220 = vrcp.f32 %v1795_v39  ;;  %v5219_v52 = vpop.eup %5218  ;;  %v1808_v57 = vadd.f32 1.0, %v5217_v14 }
 0x81d   :  { %5222 = vrcp.f32 %v1801_v43 }
 0x81e   :  { %5224 = vrcp.f32 %v1808_v57 }
 0x826   :  { %v5221_v16 = vpop.eup %5220 }
 0x827   :  { %v5223_v60 = vpop.eup %5222  ;;  %v1812_v45 = vmul.f32 %v5221_v16, %v5219_v52 }
 0x828   :  { %v1811_v18 = vmul.f32 %v5223_v60, %v6136_v4  ;;  %v5225_v44 = vpop.eup %5224  ;;  %v1889_v4 = vld [vmem:[%s7028_s6] sm:$0xf] }
 0x829   :  { %v6691_v26 = vrot.slane %v1889_v4, %v52_v10  ;;  %v6695_v63 = vrot.slane %v1889_v4, %v56_v13  ;;  %v6701_v11 = vrot.slane %v1889_v4, %v64_v20  ;;  %v6706_v13 = vrot.slane %v1889_v4, %v60_v40 }
 0x82a   :  { %v1813_v37 = vadd.f32 %v1812_v45, %v1811_v18 }
 0x82c   :  { %5226 = vtanh.f32 %v1813_v37 }
 0x836   :  { %v5227_v53 = vpop.eup %5226 }
 0x837   :  { %v1815_v12 = vmul.f32 %v5227_v53, %v5225_v44 }
 0x839   :  { %2018 = vmatmul.mubr.f32.gmra.mrb[30].mxu0 %v1815_v12  ;;  %2131 = vmatmul.mubr.f32.gmra.mrb[30].mxu1 %v1815_v12 }
 0x83a   :  { %2301 = vmatprep.mubr.f32.mxu0 %v5360_v3  ;;  %2372 = vmatprep.mubr.f32.mxu1 %v5360_v3 }
 0x83d   :  { %2302 = vmatmul.mubr.f32.vlgmr.msra.gmra.mrb[16].mxu0 %v5360_v3  ;;  %2373 = vmatmul.mubr.f32.vlgmr.msra.gmra.mrb[16].mxu1 %v5360_v3 }
 0x83e   :  { %4500 = vmatpush1.bf16.msra.mxu0 %v6375_v31  ;;  %4532 = vmatpush1.bf16.msra.mxu1 %v6384_v30 }
 0x83f   :  { %4502 = vmatprep.subr.bf16.mxu0 %v6398_v41  ;;  %4534 = vmatprep.subr.bf16.mxu1 %v6409_v2 }
 0x840   :  { %2475 = vmatprep.mubr.f32.mxu0 %v5360_v3  ;;  %2546 = vmatprep.mubr.f32.mxu1 %v5360_v3 }
 0x842   :  { %4504 = vmatpush1.bf16.msra.mxu0 %v6411_v55  ;;  %4536 = vmatpush1.bf16.msra.mxu1 %v6420_v48 }
 0x843   :  { %4506 = vmatprep.subr.bf16.mxu0 %v6434_v29  ;;  %4538 = vmatprep.subr.bf16.mxu1 %v6445_v42 }
 0x846   :  { %4508 = vmatpush1.bf16.msra.mxu0 %v6447_v47  ;;  %4540 = vmatpush1.bf16.msra.mxu1 %v6456_v58 }
 0x847   :  { %4510 = vmatprep.subr.bf16.mxu0 %v6470_v8  ;;  %4542 = vmatprep.subr.bf16.mxu1 %v6481_v24 }
 0x84a   :  { %4512 = vmatpush1.bf16.msra.mxu0 %v6483_v28  ;;  %4544 = vmatpush1.bf16.msra.mxu1 %v6495_v46 }
 0x84b   :  { %4514 = vmatprep.subr.bf16.mxu0 %v6508_v0  ;;  %4546 = vmatprep.subr.bf16.mxu1 %v6510_v27 }
 0x84e   :  { %4516 = vmatpush1.bf16.msra.mxu0 %v6522_v59  ;;  %4548 = vmatpush1.bf16.msra.mxu1 %v6535_v17 }
 0x84f   :  { %4518 = vmatprep.subr.bf16.mxu0 %v6537_v32  ;;  %4550 = vmatprep.subr.bf16.mxu1 %v6548_v49 }
 0x852   :  { %4520 = vmatpush1.bf16.msra.mxu0 %v6560_v22  ;;  %4552 = vmatpush1.bf16.msra.mxu1 %v6573_v38 }
 0x853   :  { %4522 = vmatprep.subr.bf16.mxu0 %v6575_v50  ;;  %4554 = vmatprep.subr.bf16.mxu1 %v6587_v5 }
 0x856   :  { %4524 = vmatpush1.bf16.msra.mxu0 %v6596_v19  ;;  %4556 = vmatpush1.bf16.msra.mxu1 %v6600_v33 }
 0x857   :  { %4526 = vmatprep.subr.bf16.mxu0 %v6614_v56  ;;  %4558 = vmatprep.subr.bf16.mxu1 %v6625_v51 }
 0x85a   :  { %4528 = vmatpush1.bf16.msra.mxu0 %v6627_v36  ;;  %4560 = vmatpush1.bf16.msra.mxu1 %v6636_v21 }
 0x85b   :  { %4562 = vmatprep.subr.bf16.mxu0 %v6362_v23  ;;  %4594 = vmatprep.subr.bf16.mxu1 %v6373_v6 }
 0x910   :  { %v2303_v62 = vpop.f32.mrb[16].mxu0  ;;  %v2374_v7 = vpop.f32.mrb[16].mxu1 }
 0x911   :  { %v5001_v25 = vadd.f32 %v2303_v62, %v6691_v26  ;;  %v2305_v34 = vpop.f32.mrb[17].mxu0  ;;  %v2376_v35 = vpop.f32.mrb[17].mxu1  ;;  %v5017_v39 = vadd.f32 %v2374_v7, %v6706_v13 }
 0x912   :  { %v5002_v54 = vadd.f32 %v2305_v34, %v6695_v63  ;;  %v5018_v10 = vadd.f32 %v2376_v35, %v6701_v11 }
 0x913   :  { %v3772_v61 = vmul.f32 -1.442695, %v5001_v25 }
 0x914   :  { %v3773_v1 = vmul.f32 -1.442695, %v5002_v54  ;;  %v3774_v15 = vmul.f32 -1.442695, %v5018_v10 }
 0x915   :  { %5228 = vpow2.f32 %v3772_v61 }
 0x916   :  { %5230 = vpow2.f32 %v3773_v1 }
 0x917   :  { %5232 = vpow2.f32 %v3774_v15 }
 0x918   :  { %5234 = vtanh.f32 %v5017_v39 }
 0x91f   :  { %v5229_v43 = vpop.eup %5228 }
 0x920   :  { %v5231_v14 = vpop.eup %5230  ;;  %v2386_v52 = vadd.f32 1.0, %v5229_v43 }
 0x921   :  { %v2392_v16 = vadd.f32 1.0, %v5231_v14  ;;  %v5233_v20 = vpop.eup %5232 }
 0x922   :  { %5236 = vrcp.f32 %v2386_v52  ;;  %v5235_v60 = vpop.eup %5234  ;;  %v2399_v37 = vadd.f32 1.0, %v5233_v20 }
 0x923   :  { %5238 = vrcp.f32 %v2392_v16 }
 0x924   :  { %5240 = vrcp.f32 %v2399_v37 }
 0x92c   :  { %v5237_v45 = vpop.eup %5236 }
 0x92d   :  { %v5239_v57 = vpop.eup %5238  ;;  %v2403_v18 = vmul.f32 %v5237_v45, %v5235_v60 }
 0x92e   :  { %v2402_v9 = vmul.f32 0.0, %v5239_v57  ;;  %v5241_v44 = vpop.eup %5240 }
 0x930   :  { %v6709_v40 = vadd.f32 %v2403_v18, %v2402_v9 }
 0x932   :  { %5242 = vtanh.f32 %v6709_v40 }
 0x93c   :  { %v5243_v53 = vpop.eup %5242 }
 0x93d   :  { %v2406_v12 = vmul.f32 %v5243_v53, %v5241_v44 }
 0x93f   :  { %2476 = vmatmul.mubr.f32.vlgmr.msra.gmra.mrb[18].mxu0 %v2406_v12  ;;  %2547 = vmatmul.mubr.f32.vlgmr.msra.gmra.mrb[18].mxu1 %v2406_v12 }
 0x940   :  { %4564 = vmatpush1.bf16.msra.mxu0 %v6375_v31  ;;  %4596 = vmatpush1.bf16.msra.mxu1 %v6384_v30 }
 0x941   :  { %4566 = vmatprep.subr.bf16.mxu0 %v6398_v41  ;;  %4598 = vmatprep.subr.bf16.mxu1 %v6409_v2 }
 0x942   :  { %2649 = vmatprep.mubr.f32.mxu0 %v5360_v3  ;;  %2720 = vmatprep.mubr.f32.mxu1 %v5360_v3 }
 0x944   :  { %4568 = vmatpush1.bf16.msra.mxu0 %v6411_v55  ;;  %4600 = vmatpush1.bf16.msra.mxu1 %v6420_v48 }
 0x945   :  { %4570 = vmatprep.subr.bf16.mxu0 %v6434_v29  ;;  %4602 = vmatprep.subr.bf16.mxu1 %v6445_v42 }
 0x948   :  { %4572 = vmatpush1.bf16.msra.mxu0 %v6447_v47  ;;  %4604 = vmatpush1.bf16.msra.mxu1 %v6456_v58 }
 0x949   :  { %4574 = vmatprep.subr.bf16.mxu0 %v6470_v8  ;;  %4606 = vmatprep.subr.bf16.mxu1 %v6481_v24 }
 0x94c   :  { %4576 = vmatpush1.bf16.msra.mxu0 %v6483_v28  ;;  %4608 = vmatpush1.bf16.msra.mxu1 %v6495_v46 }
 0x94d   :  { %4578 = vmatprep.subr.bf16.mxu0 %v6508_v0  ;;  %4610 = vmatprep.subr.bf16.mxu1 %v6510_v27 }
 0x950   :  { %4580 = vmatpush1.bf16.msra.mxu0 %v6522_v59  ;;  %4612 = vmatpush1.bf16.msra.mxu1 %v6535_v17 }
 0x951   :  { %4582 = vmatprep.subr.bf16.mxu0 %v6537_v32  ;;  %4614 = vmatprep.subr.bf16.mxu1 %v6548_v49 }
 0x954   :  { %4584 = vmatpush1.bf16.msra.mxu0 %v6560_v22  ;;  %4616 = vmatpush1.bf16.msra.mxu1 %v6573_v38 }
 0x955   :  { %4586 = vmatprep.subr.bf16.mxu0 %v6575_v50  ;;  %4618 = vmatprep.subr.bf16.mxu1 %v6587_v5 }
 0x958   :  { %4588 = vmatpush1.bf16.msra.mxu0 %v6596_v19  ;;  %4620 = vmatpush1.bf16.msra.mxu1 %v6600_v33 }
 0x959   :  { %4590 = vmatprep.subr.bf16.mxu0 %v6614_v56  ;;  %4622 = vmatprep.subr.bf16.mxu1 %v6625_v51 }
 0x95c   :  { %4592 = vmatpush1.bf16.msra.mxu0 %v6627_v36  ;;  %4624 = vmatpush1.bf16.msra.mxu1 %v6636_v21 }
 0x95d   :  { %4626 = vmatprep.subr.bf16.mxu0 %v6362_v23  ;;  %4658 = vmatprep.subr.bf16.mxu1 %v6373_v6 }
 0xa12   :  { %v2477_v4 = vpop.f32.mrb[18].mxu0  ;;  %v2548_v62 = vpop.f32.mrb[18].mxu1 }
 0xa13   :  { %v5003_v7 = vadd.f32 %v2477_v4, %v6691_v26  ;;  %v2479_v25 = vpop.f32.mrb[19].mxu0  ;;  %v2550_v34 = vpop.f32.mrb[19].mxu1  ;;  %v5019_v15 = vadd.f32 %v2548_v62, %v6706_v13 }
 0xa14   :  { %v5004_v35 = vadd.f32 %v2479_v25, %v6695_v63  ;;  %v5020_v1 = vadd.f32 %v2550_v34, %v6701_v11 }
 0xa15   :  { %v3775_v54 = vmul.f32 -1.442695, %v5003_v7 }
 0xa16   :  { %v3776_v61 = vmul.f32 -1.442695, %v5004_v35  ;;  %v3777_v10 = vmul.f32 -1.442695, %v5020_v1 }
 0xa17   :  { %5244 = vpow2.f32 %v3775_v54 }
 0xa18   :  { %5246 = vpow2.f32 %v3776_v61 }
 0xa19   :  { %5248 = vpow2.f32 %v3777_v10 }
 0xa1a   :  { %5250 = vtanh.f32 %v5019_v15 }
 0xa21   :  { %v5245_v39 = vpop.eup %5244 }
 0xa22   :  { %v5247_v43 = vpop.eup %5246  ;;  %v2560_v14 = vadd.f32 1.0, %v5245_v39 }
 0xa23   :  { %v2566_v52 = vadd.f32 1.0, %v5247_v43  ;;  %v5249_v16 = vpop.eup %5248 }
 0xa24   :  { %5252 = vrcp.f32 %v2560_v14  ;;  %v5251_v20 = vpop.eup %5250  ;;  %v2573_v18 = vadd.f32 1.0, %v5249_v16 }
 0xa25   :  { %5254 = vrcp.f32 %v2566_v52 }
 0xa26   :  { %5256 = vrcp.f32 %v2573_v18 }
 0xa2e   :  { %v5253_v60 = vpop.eup %5252 }
 0xa2f   :  { %v5255_v45 = vpop.eup %5254  ;;  %v2577_v57 = vmul.f32 %v5253_v60, %v5251_v20 }
 0xa30   :  { %v2576_v37 = vmul.f32 %v5255_v45, %v6709_v40  ;;  %v5257_v44 = vpop.eup %5256 }
 0xa32   :  { %v6751_v9 = vadd.f32 %v2577_v57, %v2576_v37 }
 0xa34   :  { %5258 = vtanh.f32 %v6751_v9 }
 0xa3e   :  { %v5259_v53 = vpop.eup %5258 }
 0xa3f   :  { %v2580_v12 = vmul.f32 %v5259_v53, %v5257_v44 }
 0xa41   :  { %2650 = vmatmul.mubr.f32.vlgmr.msra.gmra.mrb[20].mxu0 %v2580_v12  ;;  %2721 = vmatmul.mubr.f32.vlgmr.msra.gmra.mrb[20].mxu1 %v2580_v12 }
 0xa42   :  { %4628 = vmatpush1.bf16.msra.mxu0 %v6375_v31  ;;  %4660 = vmatpush1.bf16.msra.mxu1 %v6384_v30 }
 0xa43   :  { %4630 = vmatprep.subr.bf16.mxu0 %v6398_v41  ;;  %4662 = vmatprep.subr.bf16.mxu1 %v6409_v2 }
 0xa44   :  { %2823 = vmatprep.mubr.f32.mxu0 %v5360_v3  ;;  %2894 = vmatprep.mubr.f32.mxu1 %v5360_v3 }
 0xa46   :  { %4632 = vmatpush1.bf16.msra.mxu0 %v6411_v55  ;;  %4664 = vmatpush1.bf16.msra.mxu1 %v6420_v48 }
 0xa47   :  { %4634 = vmatprep.subr.bf16.mxu0 %v6434_v29  ;;  %4666 = vmatprep.subr.bf16.mxu1 %v6445_v42 }
 0xa4a   :  { %4636 = vmatpush1.bf16.msra.mxu0 %v6447_v47  ;;  %4668 = vmatpush1.bf16.msra.mxu1 %v6456_v58 }
 0xa4b   :  { %4638 = vmatprep.subr.bf16.mxu0 %v6470_v8  ;;  %4670 = vmatprep.subr.bf16.mxu1 %v6481_v24 }
 0xa4e   :  { %4640 = vmatpush1.bf16.msra.mxu0 %v6483_v28  ;;  %4672 = vmatpush1.bf16.msra.mxu1 %v6495_v46 }
 0xa4f   :  { %4642 = vmatprep.subr.bf16.mxu0 %v6508_v0  ;;  %4674 = vmatprep.subr.bf16.mxu1 %v6510_v27 }
 0xa52   :  { %4644 = vmatpush1.bf16.msra.mxu0 %v6522_v59  ;;  %4676 = vmatpush1.bf16.msra.mxu1 %v6535_v17 }
 0xa53   :  { %4646 = vmatprep.subr.bf16.mxu0 %v6537_v32  ;;  %4678 = vmatprep.subr.bf16.mxu1 %v6548_v49 }
 0xa56   :  { %4648 = vmatpush1.bf16.msra.mxu0 %v6560_v22  ;;  %4680 = vmatpush1.bf16.msra.mxu1 %v6573_v38 }
 0xa57   :  { %4650 = vmatprep.subr.bf16.mxu0 %v6575_v50  ;;  %4682 = vmatprep.subr.bf16.mxu1 %v6587_v5 }
 0xa5a   :  { %4652 = vmatpush1.bf16.msra.mxu0 %v6596_v19  ;;  %4684 = vmatpush1.bf16.msra.mxu1 %v6600_v33 }
 0xa5b   :  { %4654 = vmatprep.subr.bf16.mxu0 %v6614_v56  ;;  %4686 = vmatprep.subr.bf16.mxu1 %v6625_v51 }
 0xa5e   :  { %4656 = vmatpush1.bf16.msra.mxu0 %v6627_v36  ;;  %4688 = vmatpush1.bf16.msra.mxu1 %v6636_v21 }
 0xa5f   :  { %4690 = vmatprep.subr.bf16.mxu0 %v6362_v23  ;;  %4722 = vmatprep.subr.bf16.mxu1 %v6373_v6 }
 0xb14   :  { %v2651_v40 = vpop.f32.mrb[20].mxu0  ;;  %v2722_v4 = vpop.f32.mrb[20].mxu1 }
 0xb15   :  { %v5005_v62 = vadd.f32 %v2651_v40, %v6691_v26  ;;  %v2653_v7 = vpop.f32.mrb[21].mxu0  ;;  %v2724_v25 = vpop.f32.mrb[21].mxu1  ;;  %v5021_v10 = vadd.f32 %v2722_v4, %v6706_v13 }
 0xb16   :  { %v5006_v34 = vadd.f32 %v2653_v7, %v6695_v63  ;;  %v5022_v61 = vadd.f32 %v2724_v25, %v6701_v11 }
 0xb17   :  { %v3778_v35 = vmul.f32 -1.442695, %v5005_v62 }
 0xb18   :  { %v3779_v54 = vmul.f32 -1.442695, %v5006_v34  ;;  %v3780_v1 = vmul.f32 -1.442695, %v5022_v61 }
 0xb19   :  { %5260 = vpow2.f32 %v3778_v35 }
 0xb1a   :  { %5262 = vpow2.f32 %v3779_v54 }
 0xb1b   :  { %5264 = vpow2.f32 %v3780_v1 }
 0xb1c   :  { %5266 = vtanh.f32 %v5021_v10 }
 0xb23   :  { %v5261_v15 = vpop.eup %5260 }
 0xb24   :  { %v5263_v39 = vpop.eup %5262  ;;  %v2734_v43 = vadd.f32 1.0, %v5261_v15 }
 0xb25   :  { %v2740_v14 = vadd.f32 1.0, %v5263_v39  ;;  %v5265_v52 = vpop.eup %5264 }
 0xb26   :  { %5268 = vrcp.f32 %v2734_v43  ;;  %v5267_v16 = vpop.eup %5266  ;;  %v2747_v57 = vadd.f32 1.0, %v5265_v52 }
 0xb27   :  { %5270 = vrcp.f32 %v2740_v14 }
 0xb28   :  { %5272 = vrcp.f32 %v2747_v57 }
 0xb30   :  { %v5269_v20 = vpop.eup %5268 }
 0xb31   :  { %v5271_v60 = vpop.eup %5270  ;;  %v2751_v45 = vmul.f32 %v5269_v20, %v5267_v16 }
 0xb32   :  { %v2750_v18 = vmul.f32 %v5271_v60, %v6751_v9  ;;  %v5273_v44 = vpop.eup %5272 }
 0xb34   :  { %v6793_v37 = vadd.f32 %v2751_v45, %v2750_v18 }
 0xb36   :  { %5274 = vtanh.f32 %v6793_v37 }
 0xb40   :  { %v5275_v53 = vpop.eup %5274 }
 0xb41   :  { %v2754_v12 = vmul.f32 %v5275_v53, %v5273_v44 }
 0xb43   :  { %2824 = vmatmul.mubr.f32.vlgmr.msra.gmra.mrb[22].mxu0 %v2754_v12  ;;  %2895 = vmatmul.mubr.f32.vlgmr.msra.gmra.mrb[22].mxu1 %v2754_v12 }
 0xb44   :  { %4692 = vmatpush1.bf16.msra.mxu0 %v6375_v31  ;;  %4724 = vmatpush1.bf16.msra.mxu1 %v6384_v30 }
 0xb45   :  { %4694 = vmatprep.subr.bf16.mxu0 %v6398_v41  ;;  %4726 = vmatprep.subr.bf16.mxu1 %v6409_v2 }
 0xb46   :  { %2997 = vmatprep.mubr.f32.mxu0 %v5360_v3  ;;  %3068 = vmatprep.mubr.f32.mxu1 %v5360_v3 }
 0xb48   :  { %4696 = vmatpush1.bf16.msra.mxu0 %v6411_v55  ;;  %4728 = vmatpush1.bf16.msra.mxu1 %v6420_v48 }
 0xb49   :  { %4698 = vmatprep.subr.bf16.mxu0 %v6434_v29  ;;  %4730 = vmatprep.subr.bf16.mxu1 %v6445_v42 }
 0xb4c   :  { %4700 = vmatpush1.bf16.msra.mxu0 %v6447_v47  ;;  %4732 = vmatpush1.bf16.msra.mxu1 %v6456_v58 }
 0xb4d   :  { %4702 = vmatprep.subr.bf16.mxu0 %v6470_v8  ;;  %4734 = vmatprep.subr.bf16.mxu1 %v6481_v24 }
 0xb50   :  { %4704 = vmatpush1.bf16.msra.mxu0 %v6483_v28  ;;  %4736 = vmatpush1.bf16.msra.mxu1 %v6495_v46 }
 0xb51   :  { %4706 = vmatprep.subr.bf16.mxu0 %v6508_v0  ;;  %4738 = vmatprep.subr.bf16.mxu1 %v6510_v27 }
 0xb54   :  { %4708 = vmatpush1.bf16.msra.mxu0 %v6522_v59  ;;  %4740 = vmatpush1.bf16.msra.mxu1 %v6535_v17 }
 0xb55   :  { %4710 = vmatprep.subr.bf16.mxu0 %v6537_v32  ;;  %4742 = vmatprep.subr.bf16.mxu1 %v6548_v49 }
 0xb58   :  { %4712 = vmatpush1.bf16.msra.mxu0 %v6560_v22  ;;  %4744 = vmatpush1.bf16.msra.mxu1 %v6573_v38 }
 0xb59   :  { %4714 = vmatprep.subr.bf16.mxu0 %v6575_v50  ;;  %4746 = vmatprep.subr.bf16.mxu1 %v6587_v5 }
 0xb5c   :  { %4716 = vmatpush1.bf16.msra.mxu0 %v6596_v19  ;;  %4748 = vmatpush1.bf16.msra.mxu1 %v6600_v33 }
 0xb5d   :  { %4718 = vmatprep.subr.bf16.mxu0 %v6614_v56  ;;  %4750 = vmatprep.subr.bf16.mxu1 %v6625_v51 }
 0xb60   :  { %4720 = vmatpush1.bf16.msra.mxu0 %v6627_v36  ;;  %4752 = vmatpush1.bf16.msra.mxu1 %v6636_v21 }
 0xb61   :  { %4754 = vmatprep.subr.bf16.mxu0 %v6362_v23  ;;  %4786 = vmatprep.subr.bf16.mxu1 %v6373_v6 }
 0xc16   :  { %v2825_v9 = vpop.f32.mrb[22].mxu0  ;;  %v2896_v40 = vpop.f32.mrb[22].mxu1 }
 0xc17   :  { %v5007_v4 = vadd.f32 %v2825_v9, %v6691_v26  ;;  %v2827_v62 = vpop.f32.mrb[23].mxu0  ;;  %v2898_v7 = vpop.f32.mrb[23].mxu1  ;;  %v5023_v1 = vadd.f32 %v2896_v40, %v6706_v13 }
 0xc18   :  { %v5008_v25 = vadd.f32 %v2827_v62, %v6695_v63  ;;  %v5024_v54 = vadd.f32 %v2898_v7, %v6701_v11 }
 0xc19   :  { %v3781_v34 = vmul.f32 -1.442695, %v5007_v4 }
 0xc1a   :  { %v3782_v35 = vmul.f32 -1.442695, %v5008_v25  ;;  %v3783_v61 = vmul.f32 -1.442695, %v5024_v54 }
 0xc1b   :  { %5276 = vpow2.f32 %v3781_v34 }
 0xc1c   :  { %5278 = vpow2.f32 %v3782_v35 }
 0xc1d   :  { %5280 = vpow2.f32 %v3783_v61 }
 0xc1e   :  { %5282 = vtanh.f32 %v5023_v1 }
 0xc25   :  { %v5277_v10 = vpop.eup %5276 }
 0xc26   :  { %v5279_v15 = vpop.eup %5278  ;;  %v2908_v39 = vadd.f32 1.0, %v5277_v10 }
 0xc27   :  { %v2914_v43 = vadd.f32 1.0, %v5279_v15  ;;  %v5281_v14 = vpop.eup %5280 }
 0xc28   :  { %5284 = vrcp.f32 %v2908_v39  ;;  %v5283_v52 = vpop.eup %5282  ;;  %v2921_v45 = vadd.f32 1.0, %v5281_v14 }
 0xc29   :  { %5286 = vrcp.f32 %v2914_v43 }
 0xc2a   :  { %5288 = vrcp.f32 %v2921_v45 }
 0xc32   :  { %v5285_v16 = vpop.eup %5284 }
 0xc33   :  { %v5287_v20 = vpop.eup %5286  ;;  %v2925_v60 = vmul.f32 %v5285_v16, %v5283_v52 }
 0xc34   :  { %v2924_v57 = vmul.f32 %v5287_v20, %v6793_v37  ;;  %v5289_v44 = vpop.eup %5288 }
 0xc36   :  { %v6835_v18 = vadd.f32 %v2925_v60, %v2924_v57 }
 0xc38   :  { %5290 = vtanh.f32 %v6835_v18 }
 0xc42   :  { %v5291_v53 = vpop.eup %5290 }
 0xc43   :  { %v2928_v12 = vmul.f32 %v5291_v53, %v5289_v44 }
 0xc45   :  { %2998 = vmatmul.mubr.f32.vlgmr.msra.gmra.mrb[24].mxu0 %v2928_v12  ;;  %3069 = vmatmul.mubr.f32.vlgmr.msra.gmra.mrb[24].mxu1 %v2928_v12 }
 0xc46   :  { %4756 = vmatpush1.bf16.msra.mxu0 %v6375_v31  ;;  %4788 = vmatpush1.bf16.msra.mxu1 %v6384_v30 }
 0xc47   :  { %4758 = vmatprep.subr.bf16.mxu0 %v6398_v41  ;;  %4790 = vmatprep.subr.bf16.mxu1 %v6409_v2 }
 0xc48   :  { %3171 = vmatprep.mubr.f32.mxu0 %v5360_v3  ;;  %3242 = vmatprep.mubr.f32.mxu1 %v5360_v3 }
 0xc4a   :  { %4760 = vmatpush1.bf16.msra.mxu0 %v6411_v55  ;;  %4792 = vmatpush1.bf16.msra.mxu1 %v6420_v48 }
 0xc4b   :  { %4762 = vmatprep.subr.bf16.mxu0 %v6434_v29  ;;  %4794 = vmatprep.subr.bf16.mxu1 %v6445_v42 }
 0xc4e   :  { %4764 = vmatpush1.bf16.msra.mxu0 %v6447_v47  ;;  %4796 = vmatpush1.bf16.msra.mxu1 %v6456_v58 }
 0xc4f   :  { %4766 = vmatprep.subr.bf16.mxu0 %v6470_v8  ;;  %4798 = vmatprep.subr.bf16.mxu1 %v6481_v24 }
 0xc52   :  { %4768 = vmatpush1.bf16.msra.mxu0 %v6483_v28  ;;  %4800 = vmatpush1.bf16.msra.mxu1 %v6495_v46 }
 0xc53   :  { %4770 = vmatprep.subr.bf16.mxu0 %v6508_v0  ;;  %4802 = vmatprep.subr.bf16.mxu1 %v6510_v27 }
 0xc56   :  { %4772 = vmatpush1.bf16.msra.mxu0 %v6522_v59  ;;  %4804 = vmatpush1.bf16.msra.mxu1 %v6535_v17 }
 0xc57   :  { %4774 = vmatprep.subr.bf16.mxu0 %v6537_v32  ;;  %4806 = vmatprep.subr.bf16.mxu1 %v6548_v49 }
 0xc5a   :  { %4776 = vmatpush1.bf16.msra.mxu0 %v6560_v22  ;;  %4808 = vmatpush1.bf16.msra.mxu1 %v6573_v38 }
 0xc5b   :  { %4778 = vmatprep.subr.bf16.mxu0 %v6575_v50  ;;  %4810 = vmatprep.subr.bf16.mxu1 %v6587_v5 }
 0xc5e   :  { %4780 = vmatpush1.bf16.msra.mxu0 %v6596_v19  ;;  %4812 = vmatpush1.bf16.msra.mxu1 %v6600_v33 }
 0xc5f   :  { %4782 = vmatprep.subr.bf16.mxu0 %v6614_v56  ;;  %4814 = vmatprep.subr.bf16.mxu1 %v6625_v51 }
 0xc62   :  { %4784 = vmatpush1.bf16.msra.mxu0 %v6627_v36  ;;  %4816 = vmatpush1.bf16.msra.mxu1 %v6636_v21 }
 0xc63   :  { %4818 = vmatprep.subr.bf16.mxu0 %v6362_v23  ;;  %4850 = vmatprep.subr.bf16.mxu1 %v6373_v6 }
 0xd18   :  { %v2999_v37 = vpop.f32.mrb[24].mxu0  ;;  %v3070_v9 = vpop.f32.mrb[24].mxu1 }
 0xd19   :  { %v5009_v40 = vadd.f32 %v2999_v37, %v6691_v26  ;;  %v3001_v4 = vpop.f32.mrb[25].mxu0  ;;  %v3072_v62 = vpop.f32.mrb[25].mxu1  ;;  %v5025_v61 = vadd.f32 %v3070_v9, %v6706_v13 }
 0xd1a   :  { %v5010_v7 = vadd.f32 %v3001_v4, %v6695_v63  ;;  %v5026_v35 = vadd.f32 %v3072_v62, %v6701_v11 }
 0xd1b   :  { %v3784_v25 = vmul.f32 -1.442695, %v5009_v40 }
 0xd1c   :  { %v3785_v34 = vmul.f32 -1.442695, %v5010_v7  ;;  %v3786_v54 = vmul.f32 -1.442695, %v5026_v35 }
 0xd1d   :  { %5292 = vpow2.f32 %v3784_v25 }
 0xd1e   :  { %5294 = vpow2.f32 %v3785_v34 }
 0xd1f   :  { %5296 = vpow2.f32 %v3786_v54 }
 0xd20   :  { %5298 = vtanh.f32 %v5025_v61 }
 0xd27   :  { %v5293_v1 = vpop.eup %5292 }
 0xd28   :  { %v5295_v10 = vpop.eup %5294  ;;  %v3082_v15 = vadd.f32 1.0, %v5293_v1 }
 0xd29   :  { %v3088_v39 = vadd.f32 1.0, %v5295_v10  ;;  %v5297_v43 = vpop.eup %5296 }
 0xd2a   :  { %5300 = vrcp.f32 %v3082_v15  ;;  %v5299_v14 = vpop.eup %5298  ;;  %v3095_v60 = vadd.f32 1.0, %v5297_v43 }
 0xd2b   :  { %5302 = vrcp.f32 %v3088_v39 }
 0xd2c   :  { %5304 = vrcp.f32 %v3095_v60 }
 0xd34   :  { %v5301_v52 = vpop.eup %5300 }
 0xd35   :  { %v5303_v16 = vpop.eup %5302  ;;  %v3099_v20 = vmul.f32 %v5301_v52, %v5299_v14 }
 0xd36   :  { %v3098_v45 = vmul.f32 %v5303_v16, %v6835_v18  ;;  %v5305_v44 = vpop.eup %5304 }
 0xd38   :  { %v6877_v57 = vadd.f32 %v3099_v20, %v3098_v45 }
 0xd3a   :  { %5306 = vtanh.f32 %v6877_v57 }
 0xd44   :  { %v5307_v53 = vpop.eup %5306 }
 0xd45   :  { %v3102_v12 = vmul.f32 %v5307_v53, %v5305_v44  ;;  %v3628_v53 = vld [vmem:[%s7029_s7 + $0x18] sm:$0xff] }
 0xd47   :  { %3172 = vmatmul.mubr.f32.vlgmr.msra.gmra.mrb[26].mxu0 %v3102_v12  ;;  %3243 = vmatmul.mubr.f32.vlgmr.msra.gmra.mrb[26].mxu1 %v3102_v12 }
 0xd48   :  { %4820 = vmatpush1.bf16.msra.mxu0 %v6375_v31  ;;  %4852 = vmatpush1.bf16.msra.mxu1 %v6384_v30 }
 0xd49   :  { %4822 = vmatprep.subr.bf16.mxu0 %v6398_v41  ;;  %4854 = vmatprep.subr.bf16.mxu1 %v6409_v2 }
 0xd4a   :  { %3345 = vmatprep.mubr.f32.mxu0 %v5360_v3  ;;  %3416 = vmatprep.mubr.f32.mxu1 %v5360_v3 }
 0xd4c   :  { %4824 = vmatpush1.bf16.msra.mxu0 %v6411_v55  ;;  %4856 = vmatpush1.bf16.msra.mxu1 %v6420_v48 }
 0xd4d   :  { %4826 = vmatprep.subr.bf16.mxu0 %v6434_v29  ;;  %4858 = vmatprep.subr.bf16.mxu1 %v6445_v42 }
 0xd50   :  { %4828 = vmatpush1.bf16.msra.mxu0 %v6447_v47  ;;  %4860 = vmatpush1.bf16.msra.mxu1 %v6456_v58 }
 0xd51   :  { %4830 = vmatprep.subr.bf16.mxu0 %v6470_v8  ;;  %4862 = vmatprep.subr.bf16.mxu1 %v6481_v24 }
 0xd54   :  { %4832 = vmatpush1.bf16.msra.mxu0 %v6483_v28  ;;  %4864 = vmatpush1.bf16.msra.mxu1 %v6495_v46 }
 0xd55   :  { %4834 = vmatprep.subr.bf16.mxu0 %v6508_v0  ;;  %4866 = vmatprep.subr.bf16.mxu1 %v6510_v27 }
 0xd58   :  { %4836 = vmatpush1.bf16.msra.mxu0 %v6522_v59  ;;  %4868 = vmatpush1.bf16.msra.mxu1 %v6535_v17 }
 0xd59   :  { %4838 = vmatprep.subr.bf16.mxu0 %v6537_v32  ;;  %4870 = vmatprep.subr.bf16.mxu1 %v6548_v49 }
 0xd5c   :  { %4840 = vmatpush1.bf16.msra.mxu0 %v6560_v22  ;;  %4872 = vmatpush1.bf16.msra.mxu1 %v6573_v38 }
 0xd5d   :  { %4842 = vmatprep.subr.bf16.mxu0 %v6575_v50  ;;  %4874 = vmatprep.subr.bf16.mxu1 %v6587_v5 }
 0xd60   :  { %4844 = vmatpush1.bf16.msra.mxu0 %v6596_v19  ;;  %4876 = vmatpush1.bf16.msra.mxu1 %v6600_v33 }
 0xd61   :  { %4846 = vmatprep.subr.bf16.mxu0 %v6614_v56  ;;  %4878 = vmatprep.subr.bf16.mxu1 %v6625_v51 }
 0xd64   :  { %4848 = vmatpush1.bf16.msra.mxu0 %v6627_v36  ;;  %4880 = vmatpush1.bf16.msra.mxu1 %v6636_v21 }
 0xd65   :  { %4882 = vmatprep.subr.bf16.mxu0 %v6362_v23  ;;  %4914 = vmatprep.subr.bf16.mxu1 %v6373_v6 }
 0xe1a   :  { %v3173_v18 = vpop.f32.mrb[26].mxu0  ;;  %v3244_v37 = vpop.f32.mrb[26].mxu1 }
 0xe1b   :  { %v5011_v9 = vadd.f32 %v3173_v18, %v6691_v26  ;;  %v3175_v40 = vpop.f32.mrb[27].mxu0  ;;  %v3246_v4 = vpop.f32.mrb[27].mxu1  ;;  %v5027_v54 = vadd.f32 %v3244_v37, %v6706_v13  ;;  %v3629_v18 = vld [vmem:[%s7029_s7 + $0x20] sm:$0xff]  ;;  %v3630_v37 = vld [vmem:[%s7029_s7 + $0x28] sm:$0xff] }
 0xe1c   :  { %v5012_v62 = vadd.f32 %v3175_v40, %v6695_v63  ;;  %v5028_v34 = vadd.f32 %v3246_v4, %v6701_v11  ;;  %v3631_v40 = vld [vmem:[%s7029_s7 + $0x30] sm:$0xff]  ;;  %v3632_v4 = vld [vmem:[%s7029_s7 + $0x38] sm:$0xff] }
 0xe1d   :  { %v3787_v7 = vmul.f32 -1.442695, %v5011_v9  ;;  %v4952_v9 = vpack.c.bf16 %v3630_v37, %v3629_v18 }
 0xe1e   :  { %v3788_v25 = vmul.f32 -1.442695, %v5012_v62  ;;  %v3789_v35 = vmul.f32 -1.442695, %v5028_v34  ;;  %v4955_v62 = vpack.c.bf16 %v3632_v4, %v3631_v40 }
 0xe1f   :  { %5308 = vpow2.f32 %v3787_v7  ;;  %v3633_v7 = vld [vmem:[%s7029_s7 + $0x40] sm:$0xff] }
 0xe20   :  { %5310 = vpow2.f32 %v3788_v25  ;;  %v3634_v25 = vld [vmem:[%s7029_s7 + $0x48] sm:$0xff] }
 0xe21   :  { %5312 = vpow2.f32 %v3789_v35  ;;  %v4958_v34 = vpack.c.bf16 %v3634_v25, %v3633_v7  ;;  %v3635_v35 = vld [vmem:[%s7029_s7 + $0x50] sm:$0xff] }
 0xe22   :  { %5314 = vtanh.f32 %v5027_v54  ;;  %v3636_v54 = vld [vmem:[%s7029_s7 + $0x58] sm:$0xff] }
 0xe29   :  { %v5309_v23 = vpop.eup %5308 }
 0xe2a   :  { %v5311_v61 = vpop.eup %5310  ;;  %v3256_v6 = vadd.f32 1.0, %v5309_v23  ;;  %v3637_v23 = vld [vmem:[%s7029_s7 + $0x60] sm:$0xff] }
 0xe2b   :  { %v3262_v1 = vadd.f32 1.0, %v5311_v61  ;;  %v5313_v10 = vpop.eup %5312  ;;  %v4961_v61 = vpack.c.bf16 %v3636_v54, %v3635_v35 }
 0xe2c   :  { %5316 = vrcp.f32 %v3256_v6  ;;  %v5315_v15 = vpop.eup %5314  ;;  %v3269_v52 = vadd.f32 1.0, %v5313_v10  ;;  %v3638_v6 = vld [vmem:[%s7029_s7 + $0x68] sm:$0xff]  ;;  %v3639_v10 = vld [vmem:[%s7029_s7 + $0x70] sm:$0xff] }
 0xe2d   :  { %5318 = vrcp.f32 %v3262_v1  ;;  %v4964_v1 = vpack.c.bf16 %v3638_v6, %v3637_v23 }
 0xe2e   :  { %5320 = vrcp.f32 %v3269_v52 }
 0xe36   :  { %v5317_v39 = vpop.eup %5316 }
 0xe37   :  { %v5319_v43 = vpop.eup %5318  ;;  %v3273_v14 = vmul.f32 %v5317_v39, %v5315_v15  ;;  %v3640_v15 = vld [vmem:[%s7029_s7 + $0x78] sm:$0xff] }
 0xe38   :  { %v3272_v16 = vmul.f32 %v5319_v43, %v6877_v57  ;;  %v5321_v60 = vpop.eup %5320  ;;  %v3627_v57 = vld [vmem:[%s7029_s7 + $0x10] sm:$0xff]  ;;  %v4967_v39 = vpack.c.bf16 %v3640_v15, %v3639_v10 }
 0xe39   :  { %v4949_v12 = vpack.c.bf16 %v3628_v53, %v3627_v57 }
 0xe3a   :  { %v6919_v20 = vadd.f32 %v3273_v14, %v3272_v16 }
 0xe3c   :  { %5322 = vtanh.f32 %v6919_v20 }
 0xe46   :  { %v5323_v45 = vpop.eup %5322 }
 0xe47   :  { %v3276_v44 = vmul.f32 %v5323_v45, %v5321_v60 }
 0xe49   :  { %3346 = vmatmul.mubr.f32.vlgmr.msra.gmra.mrb[28].mxu0 %v3276_v44  ;;  %3417 = vmatmul.mubr.f32.vlgmr.msra.gmra.mrb[28].mxu1 %v3276_v44 }
 0xe4a   :  { %4884 = vmatpush1.bf16.msra.mxu0 %v6375_v31  ;;  %4916 = vmatpush1.bf16.msra.mxu1 %v6384_v30 }
 0xe4b   :  { %4886 = vmatprep.subr.bf16.mxu0 %v6398_v41  ;;  %4918 = vmatprep.subr.bf16.mxu1 %v6409_v2 }
 0xe4c   :  { %3519 = vmatprep.mubr.f32.mxu0 %v5360_v3  ;;  %3590 = vmatprep.mubr.f32.mxu1 %v5360_v3 }
 0xe4e   :  { %4888 = vmatpush1.bf16.msra.mxu0 %v6411_v55  ;;  %4920 = vmatpush1.bf16.msra.mxu1 %v6420_v48 }
 0xe4f   :  { %4890 = vmatprep.subr.bf16.mxu0 %v6434_v29  ;;  %4922 = vmatprep.subr.bf16.mxu1 %v6445_v42 }
 0xe52   :  { %4892 = vmatpush1.bf16.msra.mxu0 %v6447_v47  ;;  %4924 = vmatpush1.bf16.msra.mxu1 %v6456_v58 }
 0xe53   :  { %4894 = vmatprep.subr.bf16.mxu0 %v6470_v8  ;;  %4926 = vmatprep.subr.bf16.mxu1 %v6481_v24 }
 0xe56   :  { %4896 = vmatpush1.bf16.msra.mxu0 %v6483_v28  ;;  %4928 = vmatpush1.bf16.msra.mxu1 %v6495_v46 }
 0xe57   :  { %4898 = vmatprep.subr.bf16.mxu0 %v6508_v0  ;;  %4930 = vmatprep.subr.bf16.mxu1 %v6510_v27 }
 0xe5a   :  { %4900 = vmatpush1.bf16.msra.mxu0 %v6522_v59  ;;  %4932 = vmatpush1.bf16.msra.mxu1 %v6535_v17 }
 0xe5b   :  { %4902 = vmatprep.subr.bf16.mxu0 %v6537_v32  ;;  %4934 = vmatprep.subr.bf16.mxu1 %v6548_v49 }
 0xe5e   :  { %4904 = vmatpush1.bf16.msra.mxu0 %v6560_v22  ;;  %4936 = vmatpush1.bf16.msra.mxu1 %v6573_v38 }
 0xe5f   :  { %4906 = vmatprep.subr.bf16.mxu0 %v6575_v50  ;;  %4938 = vmatprep.subr.bf16.mxu1 %v6587_v5 }
 0xe62   :  { %4908 = vmatpush1.bf16.msra.mxu0 %v6596_v19  ;;  %4940 = vmatpush1.bf16.msra.mxu1 %v6600_v33 }
 0xe63   :  { %4910 = vmatprep.subr.bf16.mxu0 %v6614_v56  ;;  %4942 = vmatprep.subr.bf16.mxu1 %v6625_v51  ;;  %v3625_v56 = vld [vmem:[%s7029_s7] sm:$0xff]  ;;  %v3626_v51 = vld [vmem:[%s7029_s7 + $0x8] sm:$0xff] }
 0xe66   :  { %4912 = vmatpush1.bf16.msra.mxu0 %v6627_v36  ;;  %4944 = vmatpush1.bf16.msra.mxu1 %v6636_v21  ;;  %v4946_v36 = vpack.c.bf16 %v3626_v51, %v3625_v56  ;;  %v5361_v21 = vmov 0.0|0.0  }
 0xe67   :  { %4945 = vmatprep.subr.bf16.mxu0 %v5361_v21 }
 0xf1c   :  { %v3347_v31 = vpop.f32.mrb[28].mxu0  ;;  %v3418_v30 = vpop.f32.mrb[28].mxu1 }
 0xf1d   :  { %v5013_v41 = vadd.f32 %v3347_v31, %v6691_v26  ;;  %v3349_v2 = vpop.f32.mrb[29].mxu0  ;;  %v3420_v55 = vpop.f32.mrb[29].mxu1  ;;  %v5029_v8 = vadd.f32 %v3418_v30, %v6706_v13 }
 0xf1e   :  { %v5014_v48 = vadd.f32 %v3349_v2, %v6695_v63  ;;  %v5030_v47 = vadd.f32 %v3420_v55, %v6701_v11 }
 0xf1f   :  { %v3790_v29 = vmul.f32 -1.442695, %v5013_v41 }
 0xf20   :  { %v3791_v42 = vmul.f32 -1.442695, %v5014_v48  ;;  %v3792_v58 = vmul.f32 -1.442695, %v5030_v47 }
 0xf21   :  { %5324 = vpow2.f32 %v3790_v29 }
 0xf22   :  { %5326 = vpow2.f32 %v3791_v42 }
 0xf23   :  { %5328 = vpow2.f32 %v3792_v58 }
 0xf24   :  { %5330 = vtanh.f32 %v5029_v8 }
 0xf2b   :  { %v5325_v24 = vpop.eup %5324 }
 0xf2c   :  { %v5327_v28 = vpop.eup %5326  ;;  %v3430_v46 = vadd.f32 1.0, %v5325_v24 }
 0xf2d   :  { %v3436_v0 = vadd.f32 1.0, %v5327_v28  ;;  %v5329_v27 = vpop.eup %5328 }
 0xf2e   :  { %5332 = vrcp.f32 %v3430_v46  ;;  %v5331_v59 = vpop.eup %5330  ;;  %v3443_v22 = vadd.f32 1.0, %v5329_v27  ;;  %v3796_v46 = vld [vmem:[%s7030_s8] ss:$0 sm:$0xff] }
 0xf2f   :  { %5334 = vrcp.f32 %v3436_v0 }
 0xf30   :  { %5336 = vrcp.f32 %v3443_v22 }
 0xf38   :  { %v5333_v17 = vpop.eup %5332 }
 0xf39   :  { %v5335_v32 = vpop.eup %5334  ;;  %v3447_v49 = vmul.f32 %v5333_v17, %v5331_v59 }
 0xf3a   :  { %v3446_v38 = vmul.f32 %v5335_v32, %v6919_v20  ;;  %v5337_v5 = vpop.eup %5336 }
 0xf3c   :  { %v6959_v50 = vadd.f32 %v3447_v49, %v3446_v38 }
 0xf3e   :  { %5338 = vtanh.f32 %v6959_v50 }
 0xf48   :  { %v5339_v19 = vpop.eup %5338 }
 0xf49   :  { %v3450_v33 = vmul.f32 %v5339_v19, %v5337_v5 }
 0xf4b   :  { %3520 = vmatmul.mubr.f32.vlgmr.msra.gmra.mrb[30].mxu0 %v3450_v33  ;;  %3591 = vmatmul.mubr.f32.vlgmr.msra.gmra.mrb[30].mxu1 %v3450_v33 }
 0xf4c   :  { %4947 = vmatpush3.bf16.msra.mxu0 %v4946_v36  ;;  %3846 = vmatprep.mubr.msk.f32.mxu0 %vm5362_vm1, %v5360_v3 }
 0xf4d   :  { %4948 = vmatprep.subr.bf16.mxu0 %v5361_v21 }
 0xf50   :  { %4950 = vmatpush3.bf16.msra.mxu0 %v4949_v12 }
 0xf51   :  { %4951 = vmatprep.subr.bf16.mxu0 %v5361_v21 }
 0xf54   :  { %4953 = vmatpush3.bf16.msra.mxu0 %v4952_v9 }
 0xf55   :  { %4954 = vmatprep.subr.bf16.mxu0 %v5361_v21 }
 0xf58   :  { %4956 = vmatpush3.bf16.msra.mxu0 %v4955_v62 }
 0xf59   :  { %4957 = vmatprep.subr.bf16.mxu0 %v5361_v21 }
 0xf5c   :  { %4959 = vmatpush3.bf16.msra.mxu0 %v4958_v34 }
 0xf5d   :  { %4960 = vmatprep.subr.bf16.mxu0 %v5361_v21 }
 0xf60   :  { %4962 = vmatpush3.bf16.msra.mxu0 %v4961_v61 }
 0xf61   :  { %4963 = vmatprep.subr.bf16.mxu0 %v5361_v21 }
 0xf64   :  { %4965 = vmatpush3.bf16.msra.mxu0 %v4964_v1 }
 0xf65   :  { %4966 = vmatprep.subr.bf16.mxu0 %v5361_v21 }
 0xf68   :  { %4968 = vmatpush3.bf16.msra.mxu0 %v4967_v39 }
0x101e   :  { %v3521_v43 = vpop.f32.mrb[30].mxu0  ;;  %v3592_v14 = vpop.f32.mrb[30].mxu1 }
0x101f   :  { %v5015_v52 = vadd.f32 %v3521_v43, %v6691_v26  ;;  %v3523_v3 = vpop.f32.mrb[31].mxu0  ;;  %v3594_v16 = vpop.f32.mrb[31].mxu1  ;;  %v5031_v30 = vadd.f32 %v3592_v14, %v6706_v13 }
0x1020   :  { %v5016_v20 = vadd.f32 %v3523_v3, %v6695_v63  ;;  %v5032_v44 = vadd.f32 %v3594_v16, %v6701_v11 }
0x1021   :  { %v3793_v60 = vmul.f32 -1.442695, %v5015_v52 }
0x1022   :  { %v3794_v45 = vmul.f32 -1.442695, %v5016_v20  ;;  %v3795_v31 = vmul.f32 -1.442695, %v5032_v44 }
0x1023   :  { %5340 = vpow2.f32 %v3793_v60 }
0x1024   :  { %5342 = vpow2.f32 %v3794_v45 }
0x1025   :  { %5344 = vpow2.f32 %v3795_v31 }
0x1026   :  { %5346 = vtanh.f32 %v5031_v30 }
0x102d   :  { %v5341_v41 = vpop.eup %5340 }
0x102e   :  { %v5343_v2 = vpop.eup %5342  ;;  %v3604_v55 = vadd.f32 1.0, %v5341_v41 }
0x102f   :  { %v3610_v48 = vadd.f32 1.0, %v5343_v2  ;;  %v5345_v26 = vpop.eup %5344 }
0x1030   :  { %5348 = vrcp.f32 %v3604_v55  ;;  %v5347_v29 = vpop.eup %5346  ;;  %v3617_v58 = vadd.f32 1.0, %v5345_v26 }
0x1031   :  { %5350 = vrcp.f32 %v3610_v48 }
0x1032   :  { %5352 = vrcp.f32 %v3617_v58 }
0x103a   :  { %v5349_v63 = vpop.eup %5348 }
0x103b   :  { %v5351_v42 = vpop.eup %5350  ;;  %v3621_v47 = vmul.f32 %v5349_v63, %v5347_v29 }
0x103c   :  { %v3620_v8 = vmul.f32 %v5351_v42, %v6959_v50  ;;  %v5353_v13 = vpop.eup %5352 }
0x103e   :  { %v3622_v11 = vadd.f32 %v3621_v47, %v3620_v8 }
0x1040   :  { %5354 = vtanh.f32 %v3622_v11 }
0x104a   :  { %v5355_v24 = vpop.eup %5354 }
0x104b   :  { %v3624_v28 = vmul.f32 %v5355_v24, %v5353_v13 }
0x104d   :  { %3847 = vmatmul.mubr.f32.vlgmr.msra.gmra.mrb[32].mxu0 %v3624_v28 }
0x1120   :  { %v3714_v0 = vpop.f32.mrb[32].mxu0 }
0x1121   :  { %v3715_v27 = vadd.f32 %v3796_v46, %v3714_v0  ;;  %v3848_v59 = vpop.f32.mrb[33].mxu0 }
0x1123   :  { %3718 = vmax.xlane.f32.xlu0 %v3715_v27 }
0x11b0   :  { %v3719_v17 = vpop.xlane.xlu0 %3718 }
0x11b1   :  { %v3720_v32 = vsub.f32 %v3715_v27, %v3719_v17 }
0x11b3   :  { %v3721_v49 = vmul.f32 1.442695, %v3720_v32 }
0x11b5   :  { %5356 = vpow2.f32 %v3721_v49 }
0x11bf   :  { %v5357_v22 = vpop.eup %5356 }
0x11c0   :  { %3723 = vadd.xlane.f32.xlu0 %v5357_v22 }
0x124d   :  { %v3724_v38 = vpop.xlane.xlu0 %3723 }
0x124e   :  { %5358 = vrcp.f32 %v3724_v38 }
0x1258   :  { %v5359_v50 = vpop.eup %5358 }
0x1259   :  { %v3726_v5 = vmul.f32 %v5359_v50, %v5357_v22 }
0x125b   :  { %3727 = vst [vmem:[%s7031_s9] sm:$0xff] %v3726_v5 }

</bundles_post_ra>
